<compile_context>
chip_gen: v7x
topology: tpu7x:2x2x1
jax: 0.10.0
libtpu: 0.0.40
codegen_flags: <defaults>
</compile_context>

<pallas_src>
import functools

import jax
import jax.numpy as jnp
from jax.experimental import pallas as pl
from jax.experimental.pallas import tpu as pltpu

LEAKY_SLOPE = 0.01   # nn.LeakyReLU default
BN_EPS = 1e-5        # nn.BatchNorm default
CONV_TM = 512        # row tile for the big conv matmuls


def _round_up(v, m):
    return (v + m - 1) // m * m


def _leaky(y):
    return jnp.where(y >= 0.0, y, LEAKY_SLOPE * y)


# ----------------------------------------------------------------------------
# Pallas kernel 1: fused  leaky_relu(X @ W + c)   (conv layers, via im2col)
# ----------------------------------------------------------------------------
def _mm_bias_lrelu_kernel(x_ref, w_ref, c_ref, o_ref):
    acc = jnp.dot(x_ref[...], w_ref[...], preferred_element_type=jnp.float32)
    o_ref[...] = _leaky(acc + c_ref[...]).astype(o_ref.dtype)


def fused_matmul_lrelu(x, w, c, *, tm=CONV_TM, out_dtype=jnp.bfloat16):
    """x: (M, K), w: (K, Np) bf16 (BN folded), c: (1, Np) f32 -> (Mp, Np)."""
    M, K = x.shape
    Kw, Np = w.shape
    assert K == Kw and Np % 128 == 0

    tm_eff = min(tm, _round_up(M, 16))     # no 128/512-row padding of tiny layers
    Mp = _round_up(M, tm_eff)

    xp = x.astype(jnp.bfloat16)
    if Mp != M:
        xp = jnp.pad(xp, ((0, Mp - M), (0, 0)))

    out = pl.pallas_call(
        _mm_bias_lrelu_kernel,
        out_shape=jax.ShapeDtypeStruct((Mp, Np), out_dtype),
        grid=(Mp // tm_eff,),
        in_specs=[
            pl.BlockSpec((tm_eff, K), lambda i: (i, 0)),   # K == full dim, no 128-pad
            pl.BlockSpec((K, Np), lambda i: (0, 0)),
            pl.BlockSpec((1, Np), lambda i: (0, 0)),
        ],
        out_specs=pl.BlockSpec((tm_eff, Np), lambda i: (i, 0)),
        compiler_params=pltpu.CompilerParams(
            dimension_semantics=("parallel",)),
    )(xp, w, c)
    return out


# ----------------------------------------------------------------------------
# Pallas kernel 2: whole FC chain fused, everything resident in VMEM
#   h1 = lrelu(x @ w1 + c1)   (fc1 + bn6)
#   h2 = lrelu(h1 @ w2 + c2)  (fc2 + bn7)
#   h3 = lrelu(h2 @ w3 + c3)  (fc3)
#   y  = lrelu(h3 @ w4 + c4)  (fc4)
# ----------------------------------------------------------------------------
def _fc_chain_kernel(x_ref, w1_ref, c1_ref, w2_ref, c2_ref,
                     w3_ref, c3_ref, w4_ref, c4_ref, o_ref):
    def layer(h, w_ref, c_ref):
        y = jnp.dot(h, w_ref[...], preferred_element_type=jnp.float32)
        return _leaky(y + c_ref[...])

    h = layer(x_ref[...], w1_ref, c1_ref)
    h = layer(h.astype(jnp.bfloat16), w2_ref, c2_ref)
    h = layer(h.astype(jnp.bfloat16), w3_ref, c3_ref)
    h = layer(h.astype(jnp.bfloat16), w4_ref, c4_ref)
    o_ref[...] = h


def fc_chain(feats, fc):
    """feats: (B, 448) bf16 (NHWC-flatten order; fc1 weights pre-permuted)."""
    B = feats.shape[0]
    Bp = max(8, _round_up(B, 8))
    xp = feats
    if Bp != B:
        xp = jnp.pad(xp, ((0, Bp - B), (0, 0)))
    out = pl.pallas_call(
        _fc_chain_kernel,
        out_shape=jax.ShapeDtypeStruct((Bp, 128), jnp.float32),
    )(xp, fc["w1"], fc["c1"], fc["w2"], fc["c2"],
      fc["w3"], fc["c3"], fc["w4"], fc["c4"])
    return out[:B, :3]


# ----------------------------------------------------------------------------
# JAX glue: NHWC im2col, parameter init, BN/bias folding, forward pass
# ----------------------------------------------------------------------------
def im2col_nhwc(x, kh, kw, stride):
    """x: (B, H, W, C) -> (B*Ho*Wo, kh*kw*C).  K ordering = (i, j, c)."""
    B, H, W, C = x.shape
    Ho = (H - kh) // stride + 1
    Wo = (W - kw) // stride + 1
    patches = []
    for i in range(kh):
        for j in range(kw):
            patches.append(x[:, i::stride, j::stride, :][:, :Ho, :Wo, :])
    p = jnp.stack(patches, axis=3)                 # (B, Ho, Wo, kh*kw, C)
    return p.reshape(B * Ho * Wo, kh * kw * C), Ho, Wo


def _uniform(key, shape, bound):
    return jax.random.uniform(key, shape, jnp.float32, -bound, bound)


CONV_DEFS = [
    ("conv1", 3, 24, (4, 4), 2),
    ("conv2", 24, 36, (5, 5), 2),
    ("conv3", 36, 48, (4, 3), 2),
    ("conv4", 48, 64, (3, 3), 2),
    ("conv5", 64, 64, (3, 3), 2),
]
FC_DEFS = [
    ("fc1", 448, 100),
    ("fc2", 100, 50),
    ("fc3", 50, 10),
    ("fc4", 10, 3),
]
BN_FOR_CONV = ["bn1", "bn2", "bn3", "bn4", "bn5"]
FLAT_HWC = (1, 7, 64)   # conv5 output spatial/channels feeding nn.Flatten


def init_params(key):
    params = {}
    keys = jax.random.split(key, 2 * (len(CONV_DEFS) + len(FC_DEFS)))
    ki = 0
    for name, cin, cout, (kh, kw), _ in CONV_DEFS:
        fan_in = cin * kh * kw
        bound = 1.0 / (fan_in ** 0.5)
        params[name] = {
            "w": _uniform(keys[ki], (cout, cin, kh, kw), bound),   # PyTorch OIHW
            "b": _uniform(keys[ki + 1], (cout,), bound),
        }
        ki += 2
    for name, fin, fout in FC_DEFS:
        bound = 1.0 / (fin ** 0.5)
        params[name] = {
            "w": _uniform(keys[ki], (fout, fin), bound),           # PyTorch (out, in)
            "b": _uniform(keys[ki + 1], (fout,), bound),
        }
        ki += 2
    # BatchNorm params: PyTorch defaults (gamma=1, beta=0, mean=0, var=1).
    bn_sizes = {"bn1": 24, "bn2": 36, "bn3": 48, "bn4": 64, "bn5": 64,
                "bn6": 100, "bn7": 50}
    for name, n in bn_sizes.items():
        params[name] = {
            "gamma": jnp.ones((n,), jnp.float32),
            "beta": jnp.zeros((n,), jnp.float32),
            "mean": jnp.zeros((n,), jnp.float32),
            "var": jnp.ones((n,), jnp.float32),
        }
    return params


def bn_affine(bn):
    scale = bn["gamma"] / jnp.sqrt(bn["var"] + BN_EPS)
    shift = bn["beta"] - bn["mean"] * scale
    return scale, shift


def _fold_and_pad(wm, b, scale, shift):
    """wm: (K, N) f32.  Fold BN into weights/bias, pad N to 128, cast bf16."""
    K, N = wm.shape
    Np = _round_up(N, 128)
    wm = wm * scale[None, :]
    c = b * scale + shift
    wm = jnp.pad(wm, ((0, 0), (0, Np - N))).astype(jnp.bfloat16)
    c = jnp.pad(c, (0, Np - N)).reshape(1, Np).astype(jnp.float32)
    return wm, c


def prepare_params(params):
    """One-time host-side prep: fold BN, reorder, pad, cast to bf16."""
    prepped = {"conv": [], "fc": {}}

    for li, (name, cin, cout, (kh, kw), _) in enumerate(CONV_DEFS):
        scale, shift = bn_affine(params[BN_FOR_CONV[li]])
        # OIHW -> (kh, kw, cin, cout) -> (K, cout); K order matches im2col_nhwc.
        wm = params[name]["w"].transpose(2, 3, 1, 0).reshape(kh * kw * cin, cout)
        prepped["conv"].append(_fold_and_pad(wm, params[name]["b"], scale, shift))

    # fc1 (+bn6): permute input rows from PyTorch NCHW-flatten order (c,h,w)
    # to our NHWC-flatten order (h,w,c).
    Hf, Wf, Cf = FLAT_HWC
    n1 = FC_DEFS[0][2]
    w1t = params["fc1"]["w"].T                                    # (448, 100), rows = (c,h,w)
    w1t = w1t.reshape(Cf, Hf, Wf, n1).transpose(1, 2, 0, 3).reshape(Hf * Wf * Cf, n1)
    s6, t6 = bn_affine(params["bn6"])
    w1, c1 = _fold_and_pad(w1t, params["fc1"]["b"], s6, t6)       # (448, 128)

    s7, t7 = bn_affine(params["bn7"])
    w2, c2 = _fold_and_pad(params["fc2"]["w"].T, params["fc2"]["b"], s7, t7)

    ones10, zeros10 = jnp.ones((10,), jnp.float32), jnp.zeros((10,), jnp.float32)
    ones3, zeros3 = jnp.ones((3,), jnp.float32), jnp.zeros((3,), jnp.float32)
    w3, c3 = _fold_and_pad(params["fc3"]["w"].T, params["fc3"]["b"], ones10, zeros10)
    w4, c4 = _fold_and_pad(params["fc4"]["w"].T, params["fc4"]["b"], ones3, zeros3)

    # Pad the K (input) axis of fc2..fc4 weights to 128 so the fused FC chain
    # consumes the 128-wide padded intermediates (padded rows are zero, and the
    # padded intermediate columns are exactly zero since lrelu(0) == 0).
    def pad_k(w, kp):
        return jnp.pad(w, ((0, kp - w.shape[0]), (0, 0)))

    prepped["fc"] = {
        "w1": w1, "c1": c1,
        "w2": pad_k(w2, 128), "c2": c2,
        "w3": pad_k(w3, 128), "c3": c3,
        "w4": pad_k(w4, 128), "c4": c4,
    }
    return prepped


def pilotnet_forward(prepped, x):
    """x: (B, 3, H, W) NCHW float32 -> (B, 3) float32."""
    # Go NHWC + bf16 once at the entry; stay NHWC through the conv stack.
    h = jnp.transpose(x, (0, 2, 3, 1)).astype(jnp.bfloat16)

    for li, (name, cin, cout, (kh, kw), stride) in enumerate(CONV_DEFS):
        B = h.shape[0]
        cols, Ho, Wo = im2col_nhwc(h, kh, kw, stride)
        wm, c = prepped["conv"][li]
        out = fused_matmul_lrelu(cols, wm, c)
        h = out[:B * Ho * Wo, :cout].reshape(B, Ho, Wo, cout)

    # Flatten in NHWC order; fc1 weights were pre-permuted to match PyTorch's
    # NCHW flatten, so no transpose is needed here.
    B = h.shape[0]
    feats = h.reshape(B, -1)                                      # (B, 448) bf16
    return fc_chain(feats, prepped["fc"])                         # (B, 3) f32


if __name__ == "__main__":
    # fc1 expects 448 = 64*1*7 flattened features, which pins the minimal
    # valid spatial input to 72 x 260 with the given conv stack.
    key = jax.random.PRNGKey(0)
    pkey, xkey = jax.random.split(key)
    params = init_params(pkey)
    prepped = prepare_params(params)
    x = jax.random.normal(xkey, (2, 3, 72, 260), jnp.float32)

    out = jax.jit(functools.partial(pilotnet_forward, prepped))(x)
    out = jax.block_until_ready(out)
    assert out.shape == (2, 3), out.shape
    assert jnp.all(jnp.isfinite(out))
    print("KERNEL_OK")
</pallas_src>

<mosaic_0001>
module attributes {stable_mosaic.version = 11 : i64} {
  func.func @_mm_bias_lrelu_kernel(%arg0: i32, %arg1: memref<512x48xbf16, #tpu.memory_space<vmem>>, %arg2: memref<48x128xbf16, #tpu.memory_space<vmem>>, %arg3: memref<1x128xf32, #tpu.memory_space<vmem>>, %arg4: memref<512x128xbf16, #tpu.memory_space<vmem>>) attributes {dimension_semantics = [#tpu.dimension_semantics<parallel>], iteration_bounds = array<i64: 18>, scalar_prefetch = 0 : i64, scratch_operands = 0 : i64, tpu.core_type = #tpu.core_type<tc>, window_params = [{transform_indices = @transform_0, window_bounds = array<i64: 512, 48>}, {pipeline_mode = #tpu.pipeline_mode<synchronous>, transform_indices = @transform_1, window_bounds = array<i64: 48, 128>}, {pipeline_mode = #tpu.pipeline_mode<synchronous>, transform_indices = @transform_2, window_bounds = array<i64: 1, 128>}, {transform_indices = @transform_3, window_bounds = array<i64: 512, 128>}]} {
    %c0 = arith.constant 0 : index
    %c0_0 = arith.constant 0 : index
    %0 = vector.load %arg1[%c0, %c0_0] : memref<512x48xbf16, #tpu.memory_space<vmem>>, vector<512x48xbf16>
    %c0_1 = arith.constant 0 : index
    %c0_2 = arith.constant 0 : index
    %1 = vector.load %arg2[%c0_1, %c0_2] : memref<48x128xbf16, #tpu.memory_space<vmem>>, vector<48x128xbf16>
    %cst = arith.constant dense<0.000000e+00> : vector<512x128xf32>
    %2 = tpu.matmul %0, %1, %cst {dimension_numbers = #tpu.dot_dimension_numbers<[1], [0], [0], [1], [0, 0, 1, 1], [], []>} : vector<512x48xbf16>, vector<48x128xbf16>, vector<512x128xf32> -> vector<512x128xf32>
    %c0_3 = arith.constant 0 : index
    %c0_4 = arith.constant 0 : index
    %3 = vector.load %arg3[%c0_3, %c0_4] : memref<1x128xf32, #tpu.memory_space<vmem>>, vector<1x128xf32>
    %4 = vector.broadcast %3 : vector<1x128xf32> to vector<512x128xf32>
    %5 = arith.addf %2, %4 : vector<512x128xf32>
    %cst_5 = arith.constant 0.000000e+00 : f32
    %6 = vector.broadcast %cst_5 : f32 to vector<512x128xf32>
    %7 = arith.cmpf oge, %5, %6 : vector<512x128xf32>
    %cst_6 = arith.constant 0.00999999977 : f32
    %8 = vector.broadcast %cst_6 : f32 to vector<512x128xf32>
    %9 = arith.mulf %8, %5 : vector<512x128xf32>
    %10 = arith.select %7, %5, %9 : vector<512x128xi1>, vector<512x128xf32>
    %11 = arith.truncf %10 : vector<512x128xf32> to vector<512x128xbf16>
    %c0_7 = arith.constant 0 : index
    %c0_8 = arith.constant 0 : index
    %12 = vector.load %arg4[%c0_7, %c0_8] : memref<512x128xbf16, #tpu.memory_space<vmem>>, vector<512x128xbf16>
    tpu.vector_store %arg4[%c0_7, %c0_8], %11 {strides = array<i32>} : memref<512x128xbf16, #tpu.memory_space<vmem>>, vector<512x128xbf16>,
    return
  }
  func.func @transform_0(%arg0: i32) -> (i32, i32) {
    %c0_i32 = arith.constant 0 : i32
    %c0_i32_0 = arith.constant 0 : i32
    return %arg0, %c0_i32 : i32, i32
  }
  func.func @transform_1(%arg0: i32) -> (i32, i32) {
    %c0_i32 = arith.constant 0 : i32
    %c0_i32_0 = arith.constant 0 : i32
    %c0_i32_1 = arith.constant 0 : i32
    return %c0_i32, %c0_i32_0 : i32, i32
  }
  func.func @transform_2(%arg0: i32) -> (i32, i32) {
    %c0_i32 = arith.constant 0 : i32
    %c0_i32_0 = arith.constant 0 : i32
    %c0_i32_1 = arith.constant 0 : i32
    return %c0_i32, %c0_i32_0 : i32, i32
  }
  func.func @transform_3(%arg0: i32) -> (i32, i32) {
    %c0_i32 = arith.constant 0 : i32
    %c0_i32_0 = arith.constant 0 : i32
    return %arg0, %c0_i32 : i32, i32
  }
}

module attributes {stable_mosaic.version = 11 : i64} {
  func.func @_mm_bias_lrelu_kernel(%arg0: i32, %arg1: memref<512x600xbf16, #tpu.memory_space<vmem>>, %arg2: memref<600x128xbf16, #tpu.memory_space<vmem>>, %arg3: memref<1x128xf32, #tpu.memory_space<vmem>>, %arg4: memref<512x128xbf16, #tpu.memory_space<vmem>>) attributes {dimension_semantics = [#tpu.dimension_semantics<parallel>], iteration_bounds = array<i64: 4>, scalar_prefetch = 0 : i64, scratch_operands = 0 : i64, tpu.core_type = #tpu.core_type<tc>, window_params = [{transform_indices = @transform_0, window_bounds = array<i64: 512, 600>}, {pipeline_mode = #tpu.pipeline_mode<synchronous>, transform_indices = @transform_1, window_bounds = array<i64: 600, 128>}, {pipeline_mode = #tpu.pipeline_mode<synchronous>, transform_indices = @transform_2, window_bounds = array<i64: 1, 128>}, {transform_indices = @transform_3, window_bounds = array<i64: 512, 128>}]} {
    %c0 = arith.constant 0 : index
    %c0_0 = arith.constant 0 : index
    %0 = vector.load %arg1[%c0, %c0_0] : memref<512x600xbf16, #tpu.memory_space<vmem>>, vector<512x600xbf16>
    %c0_1 = arith.constant 0 : index
    %c0_2 = arith.constant 0 : index
    %1 = vector.load %arg2[%c0_1, %c0_2] : memref<600x128xbf16, #tpu.memory_space<vmem>>, vector<600x128xbf16>
    %cst = arith.constant dense<0.000000e+00> : vector<512x128xf32>
    %2 = tpu.matmul %0, %1, %cst {dimension_numbers = #tpu.dot_dimension_numbers<[1], [0], [0], [1], [0, 0, 1, 1], [], []>} : vector<512x600xbf16>, vector<600x128xbf16>, vector<512x128xf32> -> vector<512x128xf32>
    %c0_3 = arith.constant 0 : index
    %c0_4 = arith.constant 0 : index
    %3 = vector.load %arg3[%c0_3, %c0_4] : memref<1x128xf32, #tpu.memory_space<vmem>>, vector<1x128xf32>
    %4 = vector.broadcast %3 : vector<1x128xf32> to vector<512x128xf32>
    %5 = arith.addf %2, %4 : vector<512x128xf32>
    %cst_5 = arith.constant 0.000000e+00 : f32
    %6 = vector.broadcast %cst_5 : f32 to vector<512x128xf32>
    %7 = arith.cmpf oge, %5, %6 : vector<512x128xf32>
    %cst_6 = arith.constant 0.00999999977 : f32
    %8 = vector.broadcast %cst_6 : f32 to vector<512x128xf32>
    %9 = arith.mulf %8, %5 : vector<512x128xf32>
    %10 = arith.select %7, %5, %9 : vector<512x128xi1>, vector<512x128xf32>
    %11 = arith.truncf %10 : vector<512x128xf32> to vector<512x128xbf16>
    %c0_7 = arith.constant 0 : index
    %c0_8 = arith.constant 0 : index
    %12 = vector.load %arg4[%c0_7, %c0_8] : memref<512x128xbf16, #tpu.memory_space<vmem>>, vector<512x128xbf16>
    tpu.vector_store %arg4[%c0_7, %c0_8], %11 {strides = array<i32>} : memref<512x128xbf16, #tpu.memory_space<vmem>>, vector<512x128xbf16>,
    return
  }
  func.func @transform_0(%arg0: i32) -> (i32, i32) {
    %c0_i32 = arith.constant 0 : i32
    %c0_i32_0 = arith.constant 0 : i32
    return %arg0, %c0_i32 : i32, i32
  }
  func.func @transform_1(%arg0: i32) -> (i32, i32) {
    %c0_i32 = arith.constant 0 : i32
    %c0_i32_0 = arith.constant 0 : i32
    %c0_i32_1 = arith.constant 0 : i32
    return %c0_i32, %c0_i32_0 : i32, i32
  }
  func.func @transform_2(%arg0: i32) -> (i32, i32) {
    %c0_i32 = arith.constant 0 : i32
    %c0_i32_0 = arith.constant 0 : i32
    %c0_i32_1 = arith.constant 0 : i32
    return %c0_i32, %c0_i32_0 : i32, i32
  }
  func.func @transform_3(%arg0: i32) -> (i32, i32) {
    %c0_i32 = arith.constant 0 : i32
    %c0_i32_0 = arith.constant 0 : i32
    return %arg0, %c0_i32 : i32, i32
  }
}

module attributes {stable_mosaic.version = 11 : i64} {
  func.func @_mm_bias_lrelu_kernel(%arg0: i32, %arg1: memref<448x432xbf16, #tpu.memory_space<vmem>>, %arg2: memref<432x128xbf16, #tpu.memory_space<vmem>>, %arg3: memref<1x128xf32, #tpu.memory_space<vmem>>, %arg4: memref<448x128xbf16, #tpu.memory_space<vmem>>) attributes {dimension_semantics = [#tpu.dimension_semantics<parallel>], iteration_bounds = array<i64: 1>, scalar_prefetch = 0 : i64, scratch_operands = 0 : i64, tpu.core_type = #tpu.core_type<tc>, window_params = [{transform_indices = @transform_0, window_bounds = array<i64: 448, 432>}, {pipeline_mode = #tpu.pipeline_mode<synchronous>, transform_indices = @transform_1, window_bounds = array<i64: 432, 128>}, {pipeline_mode = #tpu.pipeline_mode<synchronous>, transform_indices = @transform_2, window_bounds = array<i64: 1, 128>}, {transform_indices = @transform_3, window_bounds = array<i64: 448, 128>}]} {
    %c0 = arith.constant 0 : index
    %c0_0 = arith.constant 0 : index
    %0 = vector.load %arg1[%c0, %c0_0] : memref<448x432xbf16, #tpu.memory_space<vmem>>, vector<448x432xbf16>
    %c0_1 = arith.constant 0 : index
    %c0_2 = arith.constant 0 : index
    %1 = vector.load %arg2[%c0_1, %c0_2] : memref<432x128xbf16, #tpu.memory_space<vmem>>, vector<432x128xbf16>
    %cst = arith.constant dense<0.000000e+00> : vector<448x128xf32>
    %2 = tpu.matmul %0, %1, %cst {dimension_numbers = #tpu.dot_dimension_numbers<[1], [0], [0], [1], [0, 0, 1, 1], [], []>} : vector<448x432xbf16>, vector<432x128xbf16>, vector<448x128xf32> -> vector<448x128xf32>
    %c0_3 = arith.constant 0 : index
    %c0_4 = arith.constant 0 : index
    %3 = vector.load %arg3[%c0_3, %c0_4] : memref<1x128xf32, #tpu.memory_space<vmem>>, vector<1x128xf32>
    %4 = vector.broadcast %3 : vector<1x128xf32> to vector<448x128xf32>
    %5 = arith.addf %2, %4 : vector<448x128xf32>
    %cst_5 = arith.constant 0.000000e+00 : f32
    %6 = vector.broadcast %cst_5 : f32 to vector<448x128xf32>
    %7 = arith.cmpf oge, %5, %6 : vector<448x128xf32>
    %cst_6 = arith.constant 0.00999999977 : f32
    %8 = vector.broadcast %cst_6 : f32 to vector<448x128xf32>
    %9 = arith.mulf %8, %5 : vector<448x128xf32>
    %10 = arith.select %7, %5, %9 : vector<448x128xi1>, vector<448x128xf32>
    %11 = arith.truncf %10 : vector<448x128xf32> to vector<448x128xbf16>
    %c0_7 = arith.constant 0 : index
    %c0_8 = arith.constant 0 : index
    %12 = vector.load %arg4[%c0_7, %c0_8] : memref<448x128xbf16, #tpu.memory_space<vmem>>, vector<448x128xbf16>
    tpu.vector_store %arg4[%c0_7, %c0_8], %11 {strides = array<i32>} : memref<448x128xbf16, #tpu.memory_space<vmem>>, vector<448x128xbf16>,
    return
  }
  func.func @transform_0(%arg0: i32) -> (i32, i32) {
    %c0_i32 = arith.constant 0 : i32
    %c0_i32_0 = arith.constant 0 : i32
    return %arg0, %c0_i32 : i32, i32
  }
  func.func @transform_1(%arg0: i32) -> (i32, i32) {
    %c0_i32 = arith.constant 0 : i32
    %c0_i32_0 = arith.constant 0 : i32
    %c0_i32_1 = arith.constant 0 : i32
    return %c0_i32, %c0_i32_0 : i32, i32
  }
  func.func @transform_2(%arg0: i32) -> (i32, i32) {
    %c0_i32 = arith.constant 0 : i32
    %c0_i32_0 = arith.constant 0 : i32
    %c0_i32_1 = arith.constant 0 : i32
    return %c0_i32, %c0_i32_0 : i32, i32
  }
  func.func @transform_3(%arg0: i32) -> (i32, i32) {
    %c0_i32 = arith.constant 0 : i32
    %c0_i32_0 = arith.constant 0 : i32
    return %arg0, %c0_i32 : i32, i32
  }
}

module attributes {stable_mosaic.version = 11 : i64} {
  func.func @_mm_bias_lrelu_kernel(%arg0: i32, %arg1: memref<96x432xbf16, #tpu.memory_space<vmem>>, %arg2: memref<432x128xbf16, #tpu.memory_space<vmem>>, %arg3: memref<1x128xf32, #tpu.memory_space<vmem>>, %arg4: memref<96x128xbf16, #tpu.memory_space<vmem>>) attributes {dimension_semantics = [#tpu.dimension_semantics<parallel>], iteration_bounds = array<i64: 1>, scalar_prefetch = 0 : i64, scratch_operands = 0 : i64, tpu.core_type = #tpu.core_type<tc>, window_params = [{transform_indices = @transform_0, window_bounds = array<i64: 96, 432>}, {pipeline_mode = #tpu.pipeline_mode<synchronous>, transform_indices = @transform_1, window_bounds = array<i64: 432, 128>}, {pipeline_mode = #tpu.pipeline_mode<synchronous>, transform_indices = @transform_2, window_bounds = array<i64: 1, 128>}, {transform_indices = @transform_3, window_bounds = array<i64: 96, 128>}]} {
    %c0 = arith.constant 0 : index
    %c0_0 = arith.constant 0 : index
    %0 = vector.load %arg1[%c0, %c0_0] : memref<96x432xbf16, #tpu.memory_space<vmem>>, vector<96x432xbf16>
    %c0_1 = arith.constant 0 : index
    %c0_2 = arith.constant 0 : index
    %1 = vector.load %arg2[%c0_1, %c0_2] : memref<432x128xbf16, #tpu.memory_space<vmem>>, vector<432x128xbf16>
    %cst = arith.constant dense<0.000000e+00> : vector<96x128xf32>
    %2 = tpu.matmul %0, %1, %cst {dimension_numbers = #tpu.dot_dimension_numbers<[1], [0], [0], [1], [0, 0, 1, 1], [], []>} : vector<96x432xbf16>, vector<432x128xbf16>, vector<96x128xf32> -> vector<96x128xf32>
    %c0_3 = arith.constant 0 : index
    %c0_4 = arith.constant 0 : index
    %3 = vector.load %arg3[%c0_3, %c0_4] : memref<1x128xf32, #tpu.memory_space<vmem>>, vector<1x128xf32>
    %4 = vector.broadcast %3 : vector<1x128xf32> to vector<96x128xf32>
    %5 = arith.addf %2, %4 : vector<96x128xf32>
    %cst_5 = arith.constant 0.000000e+00 : f32
    %6 = vector.broadcast %cst_5 : f32 to vector<96x128xf32>
    %7 = arith.cmpf oge, %5, %6 : vector<96x128xf32>
    %cst_6 = arith.constant 0.00999999977 : f32
    %8 = vector.broadcast %cst_6 : f32 to vector<96x128xf32>
    %9 = arith.mulf %8, %5 : vector<96x128xf32>
    %10 = arith.select %7, %5, %9 : vector<96x128xi1>, vector<96x128xf32>
    %11 = arith.truncf %10 : vector<96x128xf32> to vector<96x128xbf16>
    %c0_7 = arith.constant 0 : index
    %c0_8 = arith.constant 0 : index
    %12 = vector.load %arg4[%c0_7, %c0_8] : memref<96x128xbf16, #tpu.memory_space<vmem>>, vector<96x128xbf16>
    tpu.vector_store %arg4[%c0_7, %c0_8], %11 {strides = array<i32>} : memref<96x128xbf16, #tpu.memory_space<vmem>>, vector<96x128xbf16>,
    return
  }
  func.func @transform_0(%arg0: i32) -> (i32, i32) {
    %c0_i32 = arith.constant 0 : i32
    %c0_i32_0 = arith.constant 0 : i32
    return %arg0, %c0_i32 : i32, i32
  }
  func.func @transform_1(%arg0: i32) -> (i32, i32) {
    %c0_i32 = arith.constant 0 : i32
    %c0_i32_0 = arith.constant 0 : i32
    %c0_i32_1 = arith.constant 0 : i32
    return %c0_i32, %c0_i32_0 : i32, i32
  }
  func.func @transform_2(%arg0: i32) -> (i32, i32) {
    %c0_i32 = arith.constant 0 : i32
    %c0_i32_0 = arith.constant 0 : i32
    %c0_i32_1 = arith.constant 0 : i32
    return %c0_i32, %c0_i32_0 : i32, i32
  }
  func.func @transform_3(%arg0: i32) -> (i32, i32) {
    %c0_i32 = arith.constant 0 : i32
    %c0_i32_0 = arith.constant 0 : i32
    return %arg0, %c0_i32 : i32, i32
  }
}

module attributes {stable_mosaic.version = 11 : i64} {
  func.func @_mm_bias_lrelu_kernel(%arg0: i32, %arg1: memref<16x576xbf16, #tpu.memory_space<vmem>>, %arg2: memref<576x128xbf16, #tpu.memory_space<vmem>>, %arg3: memref<1x128xf32, #tpu.memory_space<vmem>>, %arg4: memref<16x128xbf16, #tpu.memory_space<vmem>>) attributes {dimension_semantics = [#tpu.dimension_semantics<parallel>], iteration_bounds = array<i64: 1>, scalar_prefetch = 0 : i64, scratch_operands = 0 : i64, tpu.core_type = #tpu.core_type<tc>, window_params = [{transform_indices = @transform_0, window_bounds = array<i64: 16, 576>}, {pipeline_mode = #tpu.pipeline_mode<synchronous>, transform_indices = @transform_1, window_bounds = array<i64: 576, 128>}, {pipeline_mode = #tpu.pipeline_mode<synchronous>, transform_indices = @transform_2, window_bounds = array<i64: 1, 128>}, {transform_indices = @transform_3, window_bounds = array<i64: 16, 128>}]} {
    %c0 = arith.constant 0 : index
    %c0_0 = arith.constant 0 : index
    %0 = vector.load %arg1[%c0, %c0_0] : memref<16x576xbf16, #tpu.memory_space<vmem>>, vector<16x576xbf16>
    %c0_1 = arith.constant 0 : index
    %c0_2 = arith.constant 0 : index
    %1 = vector.load %arg2[%c0_1, %c0_2] : memref<576x128xbf16, #tpu.memory_space<vmem>>, vector<576x128xbf16>
    %cst = arith.constant dense<0.000000e+00> : vector<16x128xf32>
    %2 = tpu.matmul %0, %1, %cst {dimension_numbers = #tpu.dot_dimension_numbers<[1], [0], [0], [1], [0, 0, 1, 1], [], []>} : vector<16x576xbf16>, vector<576x128xbf16>, vector<16x128xf32> -> vector<16x128xf32>
    %c0_3 = arith.constant 0 : index
    %c0_4 = arith.constant 0 : index
    %3 = vector.load %arg3[%c0_3, %c0_4] : memref<1x128xf32, #tpu.memory_space<vmem>>, vector<1x128xf32>
    %4 = vector.broadcast %3 : vector<1x128xf32> to vector<16x128xf32>
    %5 = arith.addf %2, %4 : vector<16x128xf32>
    %cst_5 = arith.constant 0.000000e+00 : f32
    %6 = vector.broadcast %cst_5 : f32 to vector<16x128xf32>
    %7 = arith.cmpf oge, %5, %6 : vector<16x128xf32>
    %cst_6 = arith.constant 0.00999999977 : f32
    %8 = vector.broadcast %cst_6 : f32 to vector<16x128xf32>
    %9 = arith.mulf %8, %5 : vector<16x128xf32>
    %10 = arith.select %7, %5, %9 : vector<16x128xi1>, vector<16x128xf32>
    %11 = arith.truncf %10 : vector<16x128xf32> to vector<16x128xbf16>
    %c0_7 = arith.constant 0 : index
    %c0_8 = arith.constant 0 : index
    %12 = vector.load %arg4[%c0_7, %c0_8] : memref<16x128xbf16, #tpu.memory_space<vmem>>, vector<16x128xbf16>
    tpu.vector_store %arg4[%c0_7, %c0_8], %11 {strides = array<i32>} : memref<16x128xbf16, #tpu.memory_space<vmem>>, vector<16x128xbf16>,
    return
  }
  func.func @transform_0(%arg0: i32) -> (i32, i32) {
    %c0_i32 = arith.constant 0 : i32
    %c0_i32_0 = arith.constant 0 : i32
    return %arg0, %c0_i32 : i32, i32
  }
  func.func @transform_1(%arg0: i32) -> (i32, i32) {
    %c0_i32 = arith.constant 0 : i32
    %c0_i32_0 = arith.constant 0 : i32
    %c0_i32_1 = arith.constant 0 : i32
    return %c0_i32, %c0_i32_0 : i32, i32
  }
  func.func @transform_2(%arg0: i32) -> (i32, i32) {
    %c0_i32 = arith.constant 0 : i32
    %c0_i32_0 = arith.constant 0 : i32
    %c0_i32_1 = arith.constant 0 : i32
    return %c0_i32, %c0_i32_0 : i32, i32
  }
  func.func @transform_3(%arg0: i32) -> (i32, i32) {
    %c0_i32 = arith.constant 0 : i32
    %c0_i32_0 = arith.constant 0 : i32
    return %arg0, %c0_i32 : i32, i32
  }
}

module attributes {stable_mosaic.version = 11 : i64} {
  func.func @_fc_chain_kernel(%arg0: memref<8x448xbf16, #tpu.memory_space<vmem>>, %arg1: memref<448x128xbf16, #tpu.memory_space<vmem>>, %arg2: memref<1x128xf32, #tpu.memory_space<vmem>>, %arg3: memref<128x128xbf16, #tpu.memory_space<vmem>>, %arg4: memref<1x128xf32, #tpu.memory_space<vmem>>, %arg5: memref<128x128xbf16, #tpu.memory_space<vmem>>, %arg6: memref<1x128xf32, #tpu.memory_space<vmem>>, %arg7: memref<128x128xbf16, #tpu.memory_space<vmem>>, %arg8: memref<1x128xf32, #tpu.memory_space<vmem>>, %arg9: memref<8x128xf32, #tpu.memory_space<vmem>>) attributes {dimension_semantics = [], scalar_prefetch = 0 : i64, scratch_operands = 0 : i64, tpu.core_type = #tpu.core_type<tc>} {
    %c0 = arith.constant 0 : index
    %c0_0 = arith.constant 0 : index
    %0 = vector.load %arg0[%c0, %c0_0] : memref<8x448xbf16, #tpu.memory_space<vmem>>, vector<8x448xbf16>
    %c0_1 = arith.constant 0 : index
    %c0_2 = arith.constant 0 : index
    %1 = vector.load %arg1[%c0_1, %c0_2] : memref<448x128xbf16, #tpu.memory_space<vmem>>, vector<448x128xbf16>
    %cst = arith.constant dense<0.000000e+00> : vector<8x128xf32>
    %2 = tpu.matmul %0, %1, %cst {dimension_numbers = #tpu.dot_dimension_numbers<[1], [0], [0], [1], [0, 0, 1, 1], [], []>} : vector<8x448xbf16>, vector<448x128xbf16>, vector<8x128xf32> -> vector<8x128xf32>
    %c0_3 = arith.constant 0 : index
    %c0_4 = arith.constant 0 : index
    %3 = vector.load %arg2[%c0_3, %c0_4] : memref<1x128xf32, #tpu.memory_space<vmem>>, vector<1x128xf32>
    %4 = vector.broadcast %3 : vector<1x128xf32> to vector<8x128xf32>
    %5 = arith.addf %2, %4 : vector<8x128xf32>
    %cst_5 = arith.constant 0.000000e+00 : f32
    %6 = vector.broadcast %cst_5 : f32 to vector<8x128xf32>
    %7 = arith.cmpf oge, %5, %6 : vector<8x128xf32>
    %cst_6 = arith.constant 0.00999999977 : f32
    %8 = vector.broadcast %cst_6 : f32 to vector<8x128xf32>
    %9 = arith.mulf %8, %5 : vector<8x128xf32>
    %10 = arith.select %7, %5, %9 : vector<8x128xi1>, vector<8x128xf32>
    %11 = arith.truncf %10 : vector<8x128xf32> to vector<8x128xbf16>
    %c0_7 = arith.constant 0 : index
    %c0_8 = arith.constant 0 : index
    %12 = vector.load %arg3[%c0_7, %c0_8] : memref<128x128xbf16, #tpu.memory_space<vmem>>, vector<128x128xbf16>
    %cst_9 = arith.constant dense<0.000000e+00> : vector<8x128xf32>
    %13 = tpu.matmul %11, %12, %cst_9 {dimension_numbers = #tpu.dot_dimension_numbers<[1], [0], [0], [1], [0, 0, 1, 1], [], []>} : vector<8x128xbf16>, vector<128x128xbf16>, vector<8x128xf32> -> vector<8x128xf32>
    %c0_10 = arith.constant 0 : index
    %c0_11 = arith.constant 0 : index
    %14 = vector.load %arg4[%c0_10, %c0_11] : memref<1x128xf32, #tpu.memory_space<vmem>>, vector<1x128xf32>
    %15 = vector.broadcast %14 : vector<1x128xf32> to vector<8x128xf32>
    %16 = arith.addf %13, %15 : vector<8x128xf32>
    %cst_12 = arith.constant 0.000000e+00 : f32
    %17 = vector.broadcast %cst_12 : f32 to vector<8x128xf32>
    %18 = arith.cmpf oge, %16, %17 : vector<8x128xf32>
    %cst_13 = arith.constant 0.00999999977 : f32
    %19 = vector.broadcast %cst_13 : f32 to vector<8x128xf32>
    %20 = arith.mulf %19, %16 : vector<8x128xf32>
    %21 = arith.select %18, %16, %20 : vector<8x128xi1>, vector<8x128xf32>
    %22 = arith.truncf %21 : vector<8x128xf32> to vector<8x128xbf16>
    %c0_14 = arith.constant 0 : index
    %c0_15 = arith.constant 0 : index
    %23 = vector.load %arg5[%c0_14, %c0_15] : memref<128x128xbf16, #tpu.memory_space<vmem>>, vector<128x128xbf16>
    %cst_16 = arith.constant dense<0.000000e+00> : vector<8x128xf32>
    %24 = tpu.matmul %22, %23, %cst_16 {dimension_numbers = #tpu.dot_dimension_numbers<[1], [0], [0], [1], [0, 0, 1, 1], [], []>} : vector<8x128xbf16>, vector<128x128xbf16>, vector<8x128xf32> -> vector<8x128xf32>
    %c0_17 = arith.constant 0 : index
    %c0_18 = arith.constant 0 : index
    %25 = vector.load %arg6[%c0_17, %c0_18] : memref<1x128xf32, #tpu.memory_space<vmem>>, vector<1x128xf32>
    %26 = vector.broadcast %25 : vector<1x128xf32> to vector<8x128xf32>
    %27 = arith.addf %24, %26 : vector<8x128xf32>
    %cst_19 = arith.constant 0.000000e+00 : f32
    %28 = vector.broadcast %cst_19 : f32 to vector<8x128xf32>
    %29 = arith.cmpf oge, %27, %28 : vector<8x128xf32>
    %cst_20 = arith.constant 0.00999999977 : f32
    %30 = vector.broadcast %cst_20 : f32 to vector<8x128xf32>
    %31 = arith.mulf %30, %27 : vector<8x128xf32>
    %32 = arith.select %29, %27, %31 : vector<8x128xi1>, vector<8x128xf32>
    %33 = arith.truncf %32 : vector<8x128xf32> to vector<8x128xbf16>
    %c0_21 = arith.constant 0 : index
    %c0_22 = arith.constant 0 : index
    %34 = vector.load %arg7[%c0_21, %c0_22] : memref<128x128xbf16, #tpu.memory_space<vmem>>, vector<128x128xbf16>
    %cst_23 = arith.constant dense<0.000000e+00> : vector<8x128xf32>
    %35 = tpu.matmul %33, %34, %cst_23 {dimension_numbers = #tpu.dot_dimension_numbers<[1], [0], [0], [1], [0, 0, 1, 1], [], []>} : vector<8x128xbf16>, vector<128x128xbf16>, vector<8x128xf32> -> vector<8x128xf32>
    %c0_24 = arith.constant 0 : index
    %c0_25 = arith.constant 0 : index
    %36 = vector.load %arg8[%c0_24, %c0_25] : memref<1x128xf32, #tpu.memory_space<vmem>>, vector<1x128xf32>
    %37 = vector.broadcast %36 : vector<1x128xf32> to vector<8x128xf32>
    %38 = arith.addf %35, %37 : vector<8x128xf32>
    %cst_26 = arith.constant 0.000000e+00 : f32
    %39 = vector.broadcast %cst_26 : f32 to vector<8x128xf32>
    %40 = arith.cmpf oge, %38, %39 : vector<8x128xf32>
    %cst_27 = arith.constant 0.00999999977 : f32
    %41 = vector.broadcast %cst_27 : f32 to vector<8x128xf32>
    %42 = arith.mulf %41, %38 : vector<8x128xf32>
    %43 = arith.select %40, %38, %42 : vector<8x128xi1>, vector<8x128xf32>
    %c0_28 = arith.constant 0 : index
    %c0_29 = arith.constant 0 : index
    %44 = vector.load %arg9[%c0_28, %c0_29] : memref<8x128xf32, #tpu.memory_space<vmem>>, vector<8x128xf32>
    tpu.vector_store %arg9[%c0_28, %c0_29], %43 {strides = array<i32>} : memref<8x128xf32, #tpu.memory_space<vmem>>, vector<8x128xf32>,
    return
  }
}

</mosaic_0001>

<bundles_post_ra>
// kernel: pilotnet_forward.6
= control target key start
LH: loop header
LB: loop body
LE: loop exit
PB: predicated region body
PF: predicated region fallthrough
CT: control target
= control target key end

     0   :  { %s1964_s12 = smov 0   ;;  %s2175_s0 = inlined_call_operand.vmem [shape: bf16[9216,48], index: 0, kind: input, shape index: {}]   ;;  %s2176_s1 = inlined_call_operand.vmem [shape: bf16[48,128], index: 1, kind: input, shape index: {}]   ;;  %s2177_s2 = inlined_call_operand.vmem [shape: f32[1,128], index: 2, kind: input, shape index: {}]   ;;  %s2178_s3 = inlined_call_operand.vmem [shape: bf16[9216,128], index: 3, kind: output, shape index: {}]  }
   0x1 LB: > { %s1384_s13 = sadd.s32 4294967295, %s1942_s12   ;;  %p1388_p0 = scmp.ge.s32.totalorder %s1942_s12, 1  ;;  %s1942_s12 = sphi %s1964_s12, %s13_s12  }
   0x2   : > { %p138_p1 = scmp.lt.s32.totalorder %s1942_s12, 19 }
   0x4   : > { %p139_p2 = pnand %p1388_p0, %p138_p1 }
   0x5   : > { %v1901_v0 = vld [vmem:[%s2176_s1] sm:$0xff] (!%p139_p2)   ;;  %s1389_s16 = sshll.u32 (!%p139_p2), %s1384_s13, 6  ;;  %v1902_v1 = vld [vmem:[%s2176_s1 + $0x8] sm:$0xff] (!%p139_p2)   ;;  %v1903_v2 = vld [vmem:[%s2176_s1 + $0x10] sm:$0xff] (!%p139_p2)   ;;  %vm430_vm0 = vcmask (!%p139_p2), 392192  }
   0x6   : > { %142 = sbr.rel (%p139_p2) target bundleno = 307 (0x133), region = 32  ;;  %p163_p3 = scmp.lt.s32.totalorder (!%p139_p2), %s1389_s16, 1151  ;;  %1817 = vmatprep.subr.bf16.mxu0 (!%p139_p2), %v1901_v0  ;;  %1887 = vmatprep.subr.bf16.mxu1 (!%p139_p2), %v1901_v0  ;;  %v2058_v35 = vld [vmem:[%s2177_s2] ss:$0 sm:$0xff] (!%p139_p2) }
   0x7   : > { %1818 = vmatpush3.bf16.msra.mxu0 (!%p139_p2), %v1901_v0  ;;  %1890 = vmatpush3.bf16.msra.mxu1 (!%p139_p2), %v1901_v0 }
   0x8   : > { %1819 = vmatprep.subr.bf16.mxu0 (!%p139_p2), %v1902_v1  ;;  %1888 = vmatprep.subr.bf16.mxu1 (!%p139_p2), %v1902_v1 }
   0xb   : > { %1820 = vmatpush3.bf16.msra.mxu0 (!%p139_p2), %v1902_v1  ;;  %1891 = vmatpush3.bf16.msra.mxu1 (!%p139_p2), %v1902_v1 }
   0xc   : > { %1821 = vmatprep.subr.bf16.mxu0 (!%p139_p2), %v1903_v2  ;;  %1889 = vmatprep.subr.bf16.mxu1 (!%p139_p2), %v1903_v2 }
   0xd   : > { %s2180_s16 = smov (!%p163_p3, %s1389_s16), 1151 }
   0xe   : > { %s1390_s21 = sshll.u32 %s2180_s16, 2 }
   0xf   : > { %s1989_s24 = scalar_lea.vmem %s2175_s0, %s1390_s21  ;;  %1822 = vmatpush3.bf16.msra.mxu0 %v1903_v2  ;;  %1892 = vmatpush3.bf16.msra.mxu1 %v1903_v2  ;;  %s2075_s29 = scalar_lea.vmem %s2178_s3, %s1390_s21 }
  0x10   : > { %v1904_v3 = vld [vmem:[%s1989_s24] sm:$0xff]   ;;  %v1906_v5 = vld [vmem:[%s1989_s24 + $0x8] sm:$0xff]   ;;  %v1908_v7 = vld [vmem:[%s1989_s24 + $0x10] sm:$0xff]  }
  0x11   : > { %v1905_v4 = vld [vmem:[%s1989_s24 + $0x80] sm:$0xff]   ;;  %1823 = vmatprep.mubr.msk.bf16.mxu0 %vm430_vm0, %v1904_v3  ;;  %v1907_v6 = vld [vmem:[%s1989_s24 + $0x88] sm:$0xff]   ;;  %v1909_v8 = vld [vmem:[%s1989_s24 + $0x90] sm:$0xff]  }
  0x12   : > { %1855 = vmatprep.mubr.msk.bf16.mxu1 %vm430_vm0, %v1905_v4  ;;  %1824 = vmatmul.mubr.msk.bf16.vlgmr.msra.gmra.mrb[0].mxu0 %vm430_vm0, %v1906_v5  ;;  %v1910_v9 = vld [vmem:[%s1989_s24 + $0x18] sm:$0xff]   ;;  %v1912_v11 = vld [vmem:[%s1989_s24 + $0x20] sm:$0xff]   ;;  %v1914_v13 = vld [vmem:[%s1989_s24 + $0x28] sm:$0xff]  }
  0x13   : > { %1856 = vmatmul.mubr.msk.bf16.vlgmr.msra.gmra.mrb[0].mxu1 %vm430_vm0, %v1907_v6  ;;  %1827 = vmatprep.mubr.msk.bf16.mxu0 %vm430_vm0, %v1908_v7  ;;  %v1911_v10 = vld [vmem:[%s1989_s24 + $0x98] sm:$0xff]   ;;  %v1913_v12 = vld [vmem:[%s1989_s24 + $0xa0] sm:$0xff]   ;;  %v1915_v14 = vld [vmem:[%s1989_s24 + $0xa8] sm:$0xff]  }
  0x14   : > { %1859 = vmatprep.mubr.msk.bf16.mxu1 %vm430_vm0, %v1909_v8  ;;  %v1916_v15 = vld [vmem:[%s1989_s24 + $0x30] sm:$0xff]   ;;  %v1918_v17 = vld [vmem:[%s1989_s24 + $0x38] sm:$0xff]   ;;  %v1920_v19 = vld [vmem:[%s1989_s24 + $0x40] sm:$0xff]  }
  0x15   : > { %v1917_v16 = vld [vmem:[%s1989_s24 + $0xb0] sm:$0xff]   ;;  %v1919_v18 = vld [vmem:[%s1989_s24 + $0xb8] sm:$0xff]   ;;  %v1921_v20 = vld [vmem:[%s1989_s24 + $0xc0] sm:$0xff]  }
  0x16   : > { %v1922_v21 = vld [vmem:[%s1989_s24 + $0x48] sm:$0xff]   ;;  %v1924_v23 = vld [vmem:[%s1989_s24 + $0x50] sm:$0xff]   ;;  %v1926_v25 = vld [vmem:[%s1989_s24 + $0x58] sm:$0xff]  }
  0x17   : > { %v1923_v22 = vld [vmem:[%s1989_s24 + $0xc8] sm:$0xff]   ;;  %v1925_v24 = vld [vmem:[%s1989_s24 + $0xd0] sm:$0xff]   ;;  %v1927_v26 = vld [vmem:[%s1989_s24 + $0xd8] sm:$0xff]  }
  0x18   : > { %v1928_v27 = vld [vmem:[%s1989_s24 + $0x60] sm:$0xff]   ;;  %v1930_v29 = vld [vmem:[%s1989_s24 + $0x68] sm:$0xff]   ;;  %v1932_v31 = vld [vmem:[%s1989_s24 + $0x70] sm:$0xff]  }
  0x19   : > { %v1929_v28 = vld [vmem:[%s1989_s24 + $0xe0] sm:$0xff]   ;;  %v1931_v30 = vld [vmem:[%s1989_s24 + $0xe8] sm:$0xff]   ;;  %v1933_v32 = vld [vmem:[%s1989_s24 + $0xf0] sm:$0xff]  }
  0x1a   : > { %1828 = vmatmul.mubr.msk.bf16.gmra.mrb[4].mxu0 %vm430_vm0, %v1910_v9  ;;  %v1934_v33 = vld [vmem:[%s1989_s24 + $0x78] sm:$0xff]  }
  0x1b   : > { %1860 = vmatmul.mubr.msk.bf16.gmra.mrb[4].mxu1 %vm430_vm0, %v1911_v10  ;;  %1831 = vmatprep.mubr.msk.bf16.mxu0 %vm430_vm0, %v1912_v11  ;;  %v1935_v34 = vld [vmem:[%s1989_s24 + $0xf8] sm:$0xff]  }
  0x1c   : > { %1863 = vmatprep.mubr.msk.bf16.mxu1 %vm430_vm0, %v1913_v12 }
  0x22   : > { %1832 = vmatmul.mubr.msk.bf16.gmra.mrb[8].mxu0 %vm430_vm0, %v1914_v13 }
  0x23   : > { %1864 = vmatmul.mubr.msk.bf16.gmra.mrb[8].mxu1 %vm430_vm0, %v1915_v14  ;;  %1835 = vmatprep.mubr.msk.bf16.mxu0 %vm430_vm0, %v1916_v15 }
  0x24   : > { %1867 = vmatprep.mubr.msk.bf16.mxu1 %vm430_vm0, %v1917_v16 }
  0x2a   : > { %1836 = vmatmul.mubr.msk.bf16.gmra.mrb[12].mxu0 %vm430_vm0, %v1918_v17 }
  0x2b   : > { %1868 = vmatmul.mubr.msk.bf16.gmra.mrb[12].mxu1 %vm430_vm0, %v1919_v18  ;;  %1839 = vmatprep.mubr.msk.bf16.mxu0 %vm430_vm0, %v1920_v19 }
  0x2c   : > { %1871 = vmatprep.mubr.msk.bf16.mxu1 %vm430_vm0, %v1921_v20 }
  0x32   : > { %1840 = vmatmul.mubr.msk.bf16.gmra.mrb[16].mxu0 %vm430_vm0, %v1922_v21 }
  0x33   : > { %1872 = vmatmul.mubr.msk.bf16.gmra.mrb[16].mxu1 %vm430_vm0, %v1923_v22  ;;  %1843 = vmatprep.mubr.msk.bf16.mxu0 %vm430_vm0, %v1924_v23 }
  0x34   : > { %1875 = vmatprep.mubr.msk.bf16.mxu1 %vm430_vm0, %v1925_v24 }
  0x3a   : > { %1844 = vmatmul.mubr.msk.bf16.gmra.mrb[20].mxu0 %vm430_vm0, %v1926_v25 }
  0x3b   : > { %1876 = vmatmul.mubr.msk.bf16.gmra.mrb[20].mxu1 %vm430_vm0, %v1927_v26  ;;  %1847 = vmatprep.mubr.msk.bf16.mxu0 %vm430_vm0, %v1928_v27 }
  0x3c   : > { %1879 = vmatprep.mubr.msk.bf16.mxu1 %vm430_vm0, %v1929_v28 }
  0x42   : > { %1848 = vmatmul.mubr.msk.bf16.gmra.mrb[24].mxu0 %vm430_vm0, %v1930_v29 }
  0x43   : > { %1880 = vmatmul.mubr.msk.bf16.gmra.mrb[24].mxu1 %vm430_vm0, %v1931_v30  ;;  %1851 = vmatprep.mubr.msk.bf16.mxu0 %vm430_vm0, %v1932_v31 }
  0x44   : > { %1883 = vmatprep.mubr.msk.bf16.mxu1 %vm430_vm0, %v1933_v32 }
  0x4a   : > { %1852 = vmatmul.mubr.msk.bf16.gmra.mrb[28].mxu0 %vm430_vm0, %v1934_v33 }
  0x4b   : > { %1884 = vmatmul.mubr.msk.bf16.gmra.mrb[28].mxu1 %vm430_vm0, %v1935_v34 }
  0xe5   : > { %v1825_v36 = vpop.f32.mrb[0].mxu0 }
  0xe6   : > { %v1857_v37 = vpop.f32.mrb[0].mxu1  ;;  %v570_v38 = vadd.f32 %v1825_v36, %v2058_v35  ;;  %v561_v40 = vpop.f32.mrb[1].mxu0 }
  0xe7   : > { %v698_v39 = vadd.f32 %v1857_v37, %v2058_v35  ;;  %v689_v41 = vpop.f32.mrb[1].mxu1  ;;  %v562_v42 = vadd.f32 %v2058_v35, %v561_v40  ;;  %v1826_v44 = vpop.f32.mrb[2].mxu0 }
  0xe8   : > { %v690_v43 = vadd.f32 %v2058_v35, %v689_v41  ;;  %v1858_v45 = vpop.f32.mrb[2].mxu1  ;;  %vm818_vm1 = vcmp.ge.f32.partialorder %v570_v38, 0.0  ;;  %v882_v46 = vmul.f32 0.01, %v570_v38  ;;  %v573_v50 = vadd.f32 %v1826_v44, %v2058_v35  ;;  %v564_v52 = vpop.f32.mrb[3].mxu0 }
  0xe9   : > { %vm850_vm2 = vcmp.ge.f32.partialorder %v698_v39, 0.0  ;;  %v914_v47 = vmul.f32 0.01, %v698_v39  ;;  %vm816_vm3 = vcmp.ge.f32.partialorder %v562_v42, 0.0  ;;  %v880_v48 = vmul.f32 0.01, %v562_v42 }
  0xea   : > { %vm848_vm4 = vcmp.ge.f32.partialorder %v690_v43, 0.0  ;;  %v912_v49 = vmul.f32 0.01, %v690_v43  ;;  %v701_v51 = vadd.f32 %v1858_v45, %v2058_v35  ;;  %v692_v53 = vpop.f32.mrb[3].mxu1  ;;  %v946_v54 = vsel %vm818_vm1, %v570_v38, %v882_v46 }
  0xeb   : > { %v978_v55 = vsel %vm850_vm2, %v698_v39, %v914_v47  ;;  %v565_v56 = vadd.f32 %v2058_v35, %v564_v52  ;;  %v693_v57 = vadd.f32 %v2058_v35, %v692_v53  ;;  %vm819_vm5 = vcmp.ge.f32.partialorder %v573_v50, 0.0 }
  0xec   : > { %v883_v58 = vmul.f32 0.01, %v573_v50  ;;  %vm851_vm6 = vcmp.ge.f32.partialorder %v701_v51, 0.0  ;;  %v915_v59 = vmul.f32 0.01, %v701_v51  ;;  %v944_v62 = vsel %vm816_vm3, %v562_v42, %v880_v48 }
  0xed   : > { %vm817_vm7 = vcmp.ge.f32.partialorder %v565_v56, 0.0  ;;  %v881_v60 = vmul.f32 0.01, %v565_v56  ;;  %vm849_vm8 = vcmp.ge.f32.partialorder %v693_v57, 0.0  ;;  %v913_v61 = vmul.f32 0.01, %v693_v57 }
  0xee   : > { %v976_v63 = vsel %vm848_vm4, %v690_v43, %v912_v49  ;;  %v947_v0 = vsel %vm819_vm5, %v573_v50, %v883_v58  ;;  %v979_v1 = vsel %vm851_vm6, %v701_v51, %v915_v59  ;;  %v1829_v2 = vpop.f32.mrb[4].mxu0  ;;  %v1861_v3 = vpop.f32.mrb[4].mxu1 }
  0xef   : > { %v1599_v4 = vpack.c.bf16 %v947_v0, %v946_v54  ;;  %v1679_v5 = vpack.c.bf16 %v979_v1, %v978_v55  ;;  %v945_v6 = vsel %vm817_vm7, %v565_v56, %v881_v60  ;;  %v977_v7 = vsel %vm849_vm8, %v693_v57, %v913_v61  ;;  %v577_v8 = vpop.f32.mrb[5].mxu0  ;;  %v705_v9 = vpop.f32.mrb[5].mxu1 }
  0xf0   : > { %v1594_v10 = vpack.c.bf16 %v945_v6, %v944_v62  ;;  %v1674_v11 = vpack.c.bf16 %v977_v7, %v976_v63  ;;  %v586_v12 = vadd.f32 %v1829_v2, %v2058_v35  ;;  %v714_v13 = vadd.f32 %v1861_v3, %v2058_v35  ;;  %v1830_v14 = vpop.f32.mrb[6].mxu0  ;;  %v1862_v15 = vpop.f32.mrb[6].mxu1 }
  0xf1   : > { %1751 = vst [vmem:[%s2075_s29 + $0x8] sm:$0xff] %v1599_v4   ;;  %1767 = vst [vmem:[%s2075_s29 + $0x88] sm:$0xff] %v1679_v5   ;;  %v578_v16 = vadd.f32 %v2058_v35, %v577_v8  ;;  %v706_v17 = vadd.f32 %v2058_v35, %v705_v9  ;;  %v589_v18 = vadd.f32 %v1830_v14, %v2058_v35  ;;  %v580_v20 = vpop.f32.mrb[7].mxu0  ;;  %v708_v21 = vpop.f32.mrb[7].mxu1 }
  0xf2   : > { %v717_v19 = vadd.f32 %v1862_v15, %v2058_v35  ;;  %1595 = vst [vmem:[%s2075_s29] sm:$0xff] %v1594_v10   ;;  %1766 = vst [vmem:[%s2075_s29 + $0x80] sm:$0xff] %v1674_v11   ;;  %vm822_vm9 = vcmp.ge.f32.partialorder %v586_v12, 0.0  ;;  %v886_v22 = vmul.f32 0.01, %v586_v12  ;;  %vm854_vm10 = vcmp.ge.f32.partialorder %v714_v13, 0.0 }
  0xf3   : > { %v918_v23 = vmul.f32 0.01, %v714_v13  ;;  %vm820_vm11 = vcmp.ge.f32.partialorder %v578_v16, 0.0  ;;  %v884_v24 = vmul.f32 0.01, %v578_v16  ;;  %vm852_vm12 = vcmp.ge.f32.partialorder %v706_v17, 0.0 }
  0xf4   : > { %v916_v25 = vmul.f32 0.01, %v706_v17  ;;  %v950_v26 = vsel %vm822_vm9, %v586_v12, %v886_v22  ;;  %vm823_vm13 = vcmp.ge.f32.partialorder %v589_v18, 0.0  ;;  %v887_v28 = vmul.f32 0.01, %v589_v18 }
  0xf5   : > { %v982_v27 = vsel %vm854_vm10, %v714_v13, %v918_v23  ;;  %v948_v29 = vsel %vm820_vm11, %v578_v16, %v884_v24  ;;  %vm855_vm14 = vcmp.ge.f32.partialorder %v717_v19, 0.0  ;;  %v919_v31 = vmul.f32 0.01, %v717_v19  ;;  %v1833_v32 = vpop.f32.mrb[8].mxu0 }
  0xf6   : > { %v980_v30 = vsel %vm852_vm12, %v706_v17, %v916_v25  ;;  %v1865_v33 = vpop.f32.mrb[8].mxu1  ;;  %v951_v34 = vsel %vm823_vm13, %v589_v18, %v887_v28  ;;  %v581_v36 = vadd.f32 %v2058_v35, %v580_v20  ;;  %v709_v37 = vadd.f32 %v2058_v35, %v708_v21  ;;  %v593_v39 = vpop.f32.mrb[9].mxu0 }
  0xf7   : > { %v602_v38 = vadd.f32 %v1833_v32, %v2058_v35  ;;  %v721_v40 = vpop.f32.mrb[9].mxu1  ;;  %v1609_v41 = vpack.c.bf16 %v951_v34, %v950_v26  ;;  %v983_v42 = vsel %vm855_vm14, %v717_v19, %v919_v31  ;;  %v730_v43 = vadd.f32 %v1865_v33, %v2058_v35  ;;  %v1834_v45 = vpop.f32.mrb[10].mxu0 }
  0xf8   : > { %v594_v44 = vadd.f32 %v2058_v35, %v593_v39  ;;  %v1866_v46 = vpop.f32.mrb[10].mxu1  ;;  %v1689_v47 = vpack.c.bf16 %v983_v42, %v982_v27  ;;  %vm821_vm15 = vcmp.ge.f32.partialorder %v581_v36, 0.0  ;;  %v885_v48 = vmul.f32 0.01, %v581_v36  ;;  %v596_v49 = vpop.f32.mrb[11].mxu0 }
  0xf9   : > { %vm853_vm0 = vcmp.ge.f32.partialorder %v709_v37, 0.0  ;;  %v724_v50 = vpop.f32.mrb[11].mxu1  ;;  %1753 = vst [vmem:[%s2075_s29 + $0x18] sm:$0xff] %v1609_v41   ;;  %v917_v51 = vmul.f32 0.01, %v709_v37  ;;  %vm826_vm1 = vcmp.ge.f32.partialorder %v602_v38, 0.0  ;;  %v722_v59 = vadd.f32 %v2058_v35, %v721_v40 }
  0xfa   : > { %v890_v52 = vmul.f32 0.01, %v602_v38  ;;  %vm858_vm2 = vcmp.ge.f32.partialorder %v730_v43, 0.0  ;;  %1769 = vst [vmem:[%s2075_s29 + $0x98] sm:$0xff] %v1689_v47   ;;  %v949_v53 = vsel %vm821_vm15, %v581_v36, %v885_v48  ;;  %v922_v54 = vmul.f32 0.01, %v730_v43 }
  0xfb   : > { %vm824_vm3 = vcmp.ge.f32.partialorder %v594_v44, 0.0  ;;  %v888_v55 = vmul.f32 0.01, %v594_v44  ;;  %v1604_v56 = vpack.c.bf16 %v949_v53, %v948_v29  ;;  %v981_v57 = vsel %vm853_vm0, %v709_v37, %v917_v51 }
  0xfc   : > { %v954_v58 = vsel %vm826_vm1, %v602_v38, %v890_v52  ;;  %v1684_v60 = vpack.c.bf16 %v981_v57, %v980_v30  ;;  %v986_v61 = vsel %vm858_vm2, %v730_v43, %v922_v54  ;;  %v605_v63 = vadd.f32 %v1834_v45, %v2058_v35 }
  0xfd   : > { %v952_v62 = vsel %vm824_vm3, %v594_v44, %v888_v55  ;;  %1752 = vst [vmem:[%s2075_s29 + $0x10] sm:$0xff] %v1604_v56   ;;  %vm856_vm4 = vcmp.ge.f32.partialorder %v722_v59, 0.0  ;;  %v920_v0 = vmul.f32 0.01, %v722_v59  ;;  %v733_v1 = vadd.f32 %v1866_v46, %v2058_v35  ;;  %v1837_v3 = vpop.f32.mrb[12].mxu0 }
  0xfe   : > { %v597_v2 = vadd.f32 %v2058_v35, %v596_v49  ;;  %v1869_v4 = vpop.f32.mrb[12].mxu1  ;;  %1768 = vst [vmem:[%s2075_s29 + $0x90] sm:$0xff] %v1684_v60   ;;  %vm827_vm5 = vcmp.ge.f32.partialorder %v605_v63, 0.0  ;;  %v891_v5 = vmul.f32 0.01, %v605_v63  ;;  %v725_v6 = vadd.f32 %v2058_v35, %v724_v50  ;;  %v609_v8 = vpop.f32.mrb[13].mxu0 }
  0xff   : > { %v618_v7 = vadd.f32 %v1837_v3, %v2058_v35  ;;  %v737_v9 = vpop.f32.mrb[13].mxu1  ;;  %v984_v10 = vsel %vm856_vm4, %v722_v59, %v920_v0  ;;  %vm859_vm6 = vcmp.ge.f32.partialorder %v733_v1, 0.0  ;;  %v923_v11 = vmul.f32 0.01, %v733_v1  ;;  %v1838_v12 = vpop.f32.mrb[14].mxu0 }
 0x100   : > { %vm825_vm7 = vcmp.ge.f32.partialorder %v597_v2, 0.0  ;;  %v1870_v13 = vpop.f32.mrb[14].mxu1  ;;  %v955_v14 = vsel %vm827_vm5, %v605_v63, %v891_v5  ;;  %v889_v15 = vmul.f32 0.01, %v597_v2  ;;  %vm857_vm8 = vcmp.ge.f32.partialorder %v725_v6, 0.0  ;;  %v612_v17 = vpop.f32.mrb[15].mxu0 }
 0x101   : > { %v921_v16 = vmul.f32 0.01, %v725_v6  ;;  %v1619_v18 = vpack.c.bf16 %v955_v14, %v954_v58  ;;  %v987_v19 = vsel %vm859_vm6, %v733_v1, %v923_v11  ;;  %vm830_vm9 = vcmp.ge.f32.partialorder %v618_v7, 0.0  ;;  %v740_v21 = vpop.f32.mrb[15].mxu1 }
 0x102   : > { %v894_v20 = vmul.f32 0.01, %v618_v7  ;;  %v1699_v22 = vpack.c.bf16 %v987_v19, %v986_v61  ;;  %v953_v23 = vsel %vm825_vm7, %v597_v2, %v889_v15  ;;  %v746_v25 = vadd.f32 %v1869_v4, %v2058_v35 }
 0x103   : > { %v985_v24 = vsel %vm857_vm8, %v725_v6, %v921_v16  ;;  %1755 = vst [vmem:[%s2075_s29 + $0x28] sm:$0xff] %v1619_v18   ;;  %v1614_v26 = vpack.c.bf16 %v953_v23, %v952_v62  ;;  %v610_v29 = vadd.f32 %v2058_v35, %v609_v8  ;;  %v738_v31 = vadd.f32 %v2058_v35, %v737_v9 }
 0x104   : > { %v1694_v27 = vpack.c.bf16 %v985_v24, %v984_v10  ;;  %v958_v28 = vsel %vm830_vm9, %v618_v7, %v894_v20  ;;  %1771 = vst [vmem:[%s2075_s29 + $0xa8] sm:$0xff] %v1699_v22   ;;  %vm862_vm10 = vcmp.ge.f32.partialorder %v746_v25, 0.0  ;;  %v926_v30 = vmul.f32 0.01, %v746_v25 }
 0x105   : > { %v621_v32 = vadd.f32 %v1838_v12, %v2058_v35  ;;  %1754 = vst [vmem:[%s2075_s29 + $0x20] sm:$0xff] %v1614_v26   ;;  %vm828_vm11 = vcmp.ge.f32.partialorder %v610_v29, 0.0  ;;  %v892_v33 = vmul.f32 0.01, %v610_v29  ;;  %v749_v34 = vadd.f32 %v1870_v13, %v2058_v35  ;;  %v1841_v37 = vpop.f32.mrb[16].mxu0 }
 0x106   : > { %1770 = vst [vmem:[%s2075_s29 + $0xa0] sm:$0xff] %v1694_v27   ;;  %v613_v36 = vadd.f32 %v2058_v35, %v612_v17  ;;  %v1873_v38 = vpop.f32.mrb[16].mxu1  ;;  %v990_v39 = vsel %vm862_vm10, %v746_v25, %v926_v30  ;;  %vm860_vm12 = vcmp.ge.f32.partialorder %v738_v31, 0.0  ;;  %v924_v40 = vmul.f32 0.01, %v738_v31  ;;  %v625_v41 = vpop.f32.mrb[17].mxu0 }
 0x107   : > { %vm831_vm13 = vcmp.ge.f32.partialorder %v621_v32, 0.0  ;;  %v753_v42 = vpop.f32.mrb[17].mxu1  ;;  %v956_v43 = vsel %vm828_vm11, %v610_v29, %v892_v33  ;;  %v895_v44 = vmul.f32 0.01, %v621_v32  ;;  %vm863_vm14 = vcmp.ge.f32.partialorder %v749_v34, 0.0  ;;  %v1842_v46 = vpop.f32.mrb[18].mxu0 }
 0x108   : > { %v927_v45 = vmul.f32 0.01, %v749_v34  ;;  %v988_v47 = vsel %vm860_vm12, %v738_v31, %v924_v40  ;;  %vm829_vm15 = vcmp.ge.f32.partialorder %v613_v36, 0.0  ;;  %v893_v48 = vmul.f32 0.01, %v613_v36  ;;  %v1874_v50 = vpop.f32.mrb[18].mxu1 }
 0x109   : > { %v741_v49 = vadd.f32 %v2058_v35, %v740_v21  ;;  %v628_v51 = vpop.f32.mrb[19].mxu0  ;;  %v959_v52 = vsel %vm831_vm13, %v621_v32, %v895_v44  ;;  %v634_v54 = vadd.f32 %v1841_v37, %v2058_v35  ;;  %v762_v55 = vadd.f32 %v1873_v38, %v2058_v35  ;;  %v756_v56 = vpop.f32.mrb[19].mxu1 }
 0x10a   : > { %v991_v53 = vsel %vm863_vm14, %v749_v34, %v927_v45  ;;  %v1629_v57 = vpack.c.bf16 %v959_v52, %v958_v28  ;;  %v957_v59 = vsel %vm829_vm15, %v613_v36, %v893_v48  ;;  %v626_v0 = vadd.f32 %v2058_v35, %v625_v41 }
 0x10b   : > { %v1709_v58 = vpack.c.bf16 %v991_v53, %v990_v39  ;;  %vm861_vm0 = vcmp.ge.f32.partialorder %v741_v49, 0.0  ;;  %v1624_v60 = vpack.c.bf16 %v957_v59, %v956_v43  ;;  %v925_v61 = vmul.f32 0.01, %v741_v49 }
 0x10c   : > { %vm834_vm1 = vcmp.ge.f32.partialorder %v634_v54, 0.0  ;;  %v898_v62 = vmul.f32 0.01, %v634_v54  ;;  %1757 = vst [vmem:[%s2075_s29 + $0x38] sm:$0xff] %v1629_v57   ;;  %vm866_vm2 = vcmp.ge.f32.partialorder %v762_v55, 0.0  ;;  %v754_v1 = vadd.f32 %v2058_v35, %v753_v42 }
 0x10d   : > { %1773 = vst [vmem:[%s2075_s29 + $0xb8] sm:$0xff] %v1709_v58   ;;  %v930_v63 = vmul.f32 0.01, %v762_v55  ;;  %1756 = vst [vmem:[%s2075_s29 + $0x30] sm:$0xff] %v1624_v60   ;;  %v989_v2 = vsel %vm861_vm0, %v741_v49, %v925_v61  ;;  %v637_v4 = vadd.f32 %v1842_v46, %v2058_v35  ;;  %v765_v5 = vadd.f32 %v1874_v50, %v2058_v35  ;;  %v1845_v6 = vpop.f32.mrb[20].mxu0 }
 0x10e   : > { %v962_v3 = vsel %vm834_vm1, %v634_v54, %v898_v62  ;;  %v1877_v7 = vpop.f32.mrb[20].mxu1  ;;  %v1704_v8 = vpack.c.bf16 %v989_v2, %v988_v47  ;;  %vm832_vm3 = vcmp.ge.f32.partialorder %v626_v0, 0.0  ;;  %v896_v10 = vmul.f32 0.01, %v626_v0  ;;  %v641_v11 = vpop.f32.mrb[21].mxu0 }
 0x10f   : > { %v994_v9 = vsel %vm866_vm2, %v762_v55, %v930_v63  ;;  %v769_v12 = vpop.f32.mrb[21].mxu1  ;;  %vm864_vm4 = vcmp.ge.f32.partialorder %v754_v1, 0.0  ;;  %v928_v13 = vmul.f32 0.01, %v754_v1  ;;  %vm835_vm5 = vcmp.ge.f32.partialorder %v637_v4, 0.0  ;;  %v1846_v18 = vpop.f32.mrb[22].mxu0 }
 0x110   : > { %v899_v14 = vmul.f32 0.01, %v637_v4  ;;  %1772 = vst [vmem:[%s2075_s29 + $0xb0] sm:$0xff] %v1704_v8   ;;  %v960_v15 = vsel %vm832_vm3, %v626_v0, %v896_v10  ;;  %vm867_vm6 = vcmp.ge.f32.partialorder %v765_v5, 0.0  ;;  %v931_v16 = vmul.f32 0.01, %v765_v5 }
 0x111   : > { %v629_v17 = vadd.f32 %v2058_v35, %v628_v51  ;;  %v1878_v19 = vpop.f32.mrb[22].mxu1  ;;  %v992_v20 = vsel %vm864_vm4, %v754_v1, %v928_v13  ;;  %v757_v22 = vadd.f32 %v2058_v35, %v756_v56  ;;  %v650_v23 = vadd.f32 %v1845_v6, %v2058_v35  ;;  %v644_v24 = vpop.f32.mrb[23].mxu0 }
 0x112   : > { %v963_v21 = vsel %vm835_vm5, %v637_v4, %v899_v14  ;;  %v772_v25 = vpop.f32.mrb[23].mxu1  ;;  %v995_v27 = vsel %vm867_vm6, %v765_v5, %v931_v16  ;;  %v778_v33 = vadd.f32 %v1877_v7, %v2058_v35  ;;  %v642_v34 = vadd.f32 %v2058_v35, %v641_v11 }
 0x113   : > { %v1639_v26 = vpack.c.bf16 %v963_v21, %v962_v3  ;;  %vm833_vm7 = vcmp.ge.f32.partialorder %v629_v17, 0.0  ;;  %v897_v28 = vmul.f32 0.01, %v629_v17  ;;  %v1719_v29 = vpack.c.bf16 %v995_v27, %v994_v9 }
 0x114   : > { %vm865_vm8 = vcmp.ge.f32.partialorder %v757_v22, 0.0  ;;  %v929_v30 = vmul.f32 0.01, %v757_v22  ;;  %vm838_vm9 = vcmp.ge.f32.partialorder %v650_v23, 0.0  ;;  %v902_v32 = vmul.f32 0.01, %v650_v23 }
 0x115   : > { %1759 = vst [vmem:[%s2075_s29 + $0x48] sm:$0xff] %v1639_v26   ;;  %v961_v31 = vsel %vm833_vm7, %v629_v17, %v897_v28  ;;  %1775 = vst [vmem:[%s2075_s29 + $0xc8] sm:$0xff] %v1719_v29   ;;  %v770_v38 = vadd.f32 %v2058_v35, %v769_v12  ;;  %v653_v39 = vadd.f32 %v1846_v18, %v2058_v35  ;;  %v1849_v40 = vpop.f32.mrb[24].mxu0  ;;  %vm870_vm10 = vcmp.ge.f32.partialorder %v778_v33, 0.0 }
 0x116   : > { %v1634_v36 = vpack.c.bf16 %v961_v31, %v960_v15  ;;  %v993_v37 = vsel %vm865_vm8, %v757_v22, %v929_v30  ;;  %v1881_v41 = vpop.f32.mrb[24].mxu1  ;;  %v934_v43 = vmul.f32 0.01, %v778_v33  ;;  %v657_v44 = vpop.f32.mrb[25].mxu0  ;;  %v966_v46 = vsel %vm838_vm9, %v650_v23, %v902_v32 }
 0x117   : > { %v1714_v42 = vpack.c.bf16 %v993_v37, %v992_v20  ;;  %v785_v45 = vpop.f32.mrb[25].mxu1  ;;  %vm836_vm11 = vcmp.ge.f32.partialorder %v642_v34, 0.0  ;;  %v900_v47 = vmul.f32 0.01, %v642_v34  ;;  %v932_v48 = vmul.f32 0.01, %v770_v38 }
 0x118   : > { %1758 = vst [vmem:[%s2075_s29 + $0x40] sm:$0xff] %v1634_v36   ;;  %vm868_vm12 = vcmp.ge.f32.partialorder %v770_v38, 0.0  ;;  %vm839_vm13 = vcmp.ge.f32.partialorder %v653_v39, 0.0  ;;  %v903_v49 = vmul.f32 0.01, %v653_v39  ;;  %v781_v50 = vadd.f32 %v1878_v19, %v2058_v35  ;;  %v1850_v51 = vpop.f32.mrb[26].mxu0 }
 0x119   : > { %1774 = vst [vmem:[%s2075_s29 + $0xc0] sm:$0xff] %v1714_v42   ;;  %v1882_v52 = vpop.f32.mrb[26].mxu1  ;;  %v998_v53 = vsel %vm870_vm10, %v778_v33, %v934_v43  ;;  %v964_v54 = vsel %vm836_vm11, %v642_v34, %v900_v47  ;;  %v645_v55 = vadd.f32 %v2058_v35, %v644_v24  ;;  %v773_v56 = vadd.f32 %v2058_v35, %v772_v25  ;;  %v660_v57 = vpop.f32.mrb[27].mxu0 }
 0x11a   : > { %v788_v58 = vpop.f32.mrb[27].mxu1  ;;  %v967_v59 = vsel %vm839_vm13, %v653_v39, %v903_v49  ;;  %vm871_vm14 = vcmp.ge.f32.partialorder %v781_v50, 0.0  ;;  %v935_v60 = vmul.f32 0.01, %v781_v50  ;;  %v666_v61 = vadd.f32 %v1849_v40, %v2058_v35 }
 0x11b   : > { %v1649_v62 = vpack.c.bf16 %v967_v59, %v966_v46  ;;  %vm837_vm15 = vcmp.ge.f32.partialorder %v645_v55, 0.0  ;;  %v901_v63 = vmul.f32 0.01, %v645_v55  ;;  %vm869_vm0 = vcmp.ge.f32.partialorder %v773_v56, 0.0 }
 0x11c   : > { %v999_v0 = vsel %vm871_vm14, %v781_v50, %v935_v60  ;;  %v933_v1 = vmul.f32 0.01, %v773_v56  ;;  %vm842_vm1 = vcmp.ge.f32.partialorder %v666_v61, 0.0  ;;  %v906_v2 = vmul.f32 0.01, %v666_v61 }
 0x11d   : > { %1761 = vst [vmem:[%s2075_s29 + $0x58] sm:$0xff] %v1649_v62   ;;  %v1729_v3 = vpack.c.bf16 %v999_v0, %v998_v53  ;;  %v965_v4 = vsel %vm837_vm15, %v645_v55, %v901_v63  ;;  %v794_v5 = vadd.f32 %v1881_v41, %v2058_v35  ;;  %v658_v6 = vadd.f32 %v2058_v35, %v657_v44  ;;  %v1853_v7 = vpop.f32.mrb[28].mxu0 }
 0x11e   : > { %v1885_v8 = vpop.f32.mrb[28].mxu1  ;;  %v996_v9 = vsel %vm868_vm12, %v770_v38, %v932_v48  ;;  %v1644_v10 = vpack.c.bf16 %v965_v4, %v964_v54  ;;  %v997_v11 = vsel %vm869_vm0, %v773_v56, %v933_v1  ;;  %v786_v12 = vadd.f32 %v2058_v35, %v785_v45  ;;  %v673_v13 = vpop.f32.mrb[29].mxu0 }
 0x11f   : > { %v801_v14 = vpop.f32.mrb[29].mxu1  ;;  %1777 = vst [vmem:[%s2075_s29 + $0xd8] sm:$0xff] %v1729_v3   ;;  %v1724_v15 = vpack.c.bf16 %v997_v11, %v996_v9  ;;  %vm874_vm2 = vcmp.ge.f32.partialorder %v794_v5, 0.0  ;;  %v938_v16 = vmul.f32 0.01, %v794_v5  ;;  %vm840_vm3 = vcmp.ge.f32.partialorder %v658_v6, 0.0 }
 0x120   : > { %v1854_v17 = vpop.f32.mrb[30].mxu0  ;;  %v1886_v18 = vpop.f32.mrb[30].mxu1  ;;  %1760 = vst [vmem:[%s2075_s29 + $0x50] sm:$0xff] %v1644_v10   ;;  %v970_v19 = vsel %vm842_vm1, %v666_v61, %v906_v2  ;;  %v904_v20 = vmul.f32 0.01, %v658_v6  ;;  %vm872_vm4 = vcmp.ge.f32.partialorder %v786_v12, 0.0  ;;  %v669_v21 = vadd.f32 %v1850_v51, %v2058_v35 }
 0x121   : > { %v676_v22 = vpop.f32.mrb[31].mxu0  ;;  %1776 = vst [vmem:[%s2075_s29 + $0xd0] sm:$0xff] %v1724_v15   ;;  %v936_v23 = vmul.f32 0.01, %v786_v12  ;;  %v797_v24 = vadd.f32 %v1882_v52, %v2058_v35  ;;  %v661_v25 = vadd.f32 %v2058_v35, %v660_v57  ;;  %v789_v26 = vadd.f32 %v2058_v35, %v788_v58  ;;  %v804_v27 = vpop.f32.mrb[31].mxu1 }
 0x122   : > { %v1002_v28 = vsel %vm874_vm2, %v794_v5, %v938_v16  ;;  %v968_v29 = vsel %vm840_vm3, %v658_v6, %v904_v20  ;;  %vm843_vm5 = vcmp.ge.f32.partialorder %v669_v21, 0.0  ;;  %v907_v30 = vmul.f32 0.01, %v669_v21 }
 0x123   : > { %vm875_vm6 = vcmp.ge.f32.partialorder %v797_v24, 0.0  ;;  %v939_v31 = vmul.f32 0.01, %v797_v24  ;;  %vm841_vm7 = vcmp.ge.f32.partialorder %v661_v25, 0.0  ;;  %v905_v32 = vmul.f32 0.01, %v661_v25 }
 0x124   : > { %v971_v33 = vsel %vm843_vm5, %v669_v21, %v907_v30  ;;  %vm873_vm8 = vcmp.ge.f32.partialorder %v789_v26, 0.0  ;;  %v937_v34 = vmul.f32 0.01, %v789_v26  ;;  %v682_v36 = vadd.f32 %v1853_v7, %v2058_v35 }
 0x125   : > { %v1659_v37 = vpack.c.bf16 %v971_v33, %v970_v19  ;;  %v1003_v38 = vsel %vm875_vm6, %v797_v24, %v939_v31  ;;  %v969_v39 = vsel %vm841_vm7, %v661_v25, %v905_v32  ;;  %v810_v40 = vadd.f32 %v1885_v8, %v2058_v35 }
 0x126   : > { %v1000_v41 = vsel %vm872_vm4, %v786_v12, %v936_v23  ;;  %v1739_v42 = vpack.c.bf16 %v1003_v38, %v1002_v28  ;;  %v1654_v43 = vpack.c.bf16 %v969_v39, %v968_v29  ;;  %v1001_v44 = vsel %vm873_vm8, %v789_v26, %v937_v34 }
 0x127   : > { %1763 = vst [vmem:[%s2075_s29 + $0x68] sm:$0xff] %v1659_v37   ;;  %v1734_v45 = vpack.c.bf16 %v1001_v44, %v1000_v41  ;;  %vm846_vm9 = vcmp.ge.f32.partialorder %v682_v36, 0.0  ;;  %v910_v46 = vmul.f32 0.01, %v682_v36  ;;  %v942_v47 = vmul.f32 0.01, %v810_v40 }
 0x128   : > { %1779 = vst [vmem:[%s2075_s29 + $0xe8] sm:$0xff] %v1739_v42   ;;  %1762 = vst [vmem:[%s2075_s29 + $0x60] sm:$0xff] %v1654_v43   ;;  %v674_v48 = vadd.f32 %v2058_v35, %v673_v13  ;;  %v802_v49 = vadd.f32 %v2058_v35, %v801_v14  ;;  %v685_v50 = vadd.f32 %v1854_v17, %v2058_v35  ;;  %vm878_vm10 = vcmp.ge.f32.partialorder %v810_v40, 0.0 }
 0x129   : > { %v813_v51 = vadd.f32 %v1886_v18, %v2058_v35  ;;  %1778 = vst [vmem:[%s2075_s29 + $0xe0] sm:$0xff] %v1734_v45   ;;  %v677_v52 = vadd.f32 %v2058_v35, %v676_v22  ;;  %v805_v53 = vadd.f32 %v2058_v35, %v804_v27  ;;  %v974_v54 = vsel %vm846_vm9, %v682_v36, %v910_v46 }
 0x12a   : > { %vm844_vm11 = vcmp.ge.f32.partialorder %v674_v48, 0.0  ;;  %v908_v55 = vmul.f32 0.01, %v674_v48  ;;  %v940_v56 = vmul.f32 0.01, %v802_v49  ;;  %vm847_vm12 = vcmp.ge.f32.partialorder %v685_v50, 0.0 }
 0x12b   : > { %v911_v57 = vmul.f32 0.01, %v685_v50  ;;  %vm879_vm13 = vcmp.ge.f32.partialorder %v813_v51, 0.0  ;;  %v943_v58 = vmul.f32 0.01, %v813_v51  ;;  %v1006_v59 = vsel %vm878_vm10, %v810_v40, %v942_v47 }
 0x12c   : > { %vm876_vm14 = vcmp.ge.f32.partialorder %v802_v49, 0.0  ;;  %vm845_vm15 = vcmp.ge.f32.partialorder %v677_v52, 0.0  ;;  %v909_v60 = vmul.f32 0.01, %v677_v52  ;;  %vm877_vm0 = vcmp.ge.f32.partialorder %v805_v53, 0.0 }
 0x12d   : > { %v975_v61 = vsel %vm847_vm12, %v685_v50, %v911_v57  ;;  %v1007_v62 = vsel %vm879_vm13, %v813_v51, %v943_v58  ;;  %v941_v35 = vmul.f32 0.01, %v805_v53  ;;  %v972_v63 = vsel %vm844_vm11, %v674_v48, %v908_v55 }
 0x12e   : > { %v1669_v0 = vpack.c.bf16 %v975_v61, %v974_v54  ;;  %v1749_v1 = vpack.c.bf16 %v1007_v62, %v1006_v59  ;;  %v973_v2 = vsel %vm845_vm15, %v677_v52, %v909_v60  ;;  %v1004_v3 = vsel %vm876_vm14, %v802_v49, %v940_v56 }
 0x12f   : > { %v1664_v4 = vpack.c.bf16 %v973_v2, %v972_v63  ;;  %v1005_v5 = vsel %vm877_vm0, %v805_v53, %v941_v35 }
 0x130   : > { %1765 = vst [vmem:[%s2075_s29 + $0x78] sm:$0xff] %v1669_v0   ;;  %1781 = vst [vmem:[%s2075_s29 + $0xf8] sm:$0xff] %v1749_v1   ;;  %v1744_v6 = vpack.c.bf16 %v1005_v5, %v1004_v3 }
 0x131   : > { %1764 = vst [vmem:[%s2075_s29 + $0x70] sm:$0xff] %v1664_v4  }
 0x132   : > { %1780 = vst [vmem:[%s2075_s29 + $0xf0] sm:$0xff] %v1744_v6  }
 0x133 PF: > { %s13_s12 = sadd.s32 1, %s1942_s12  }
 0x134   : > { %p10_p4 = scmp.ge.s32.totalorder %s13_s12, 20  }
 0x136   :  { %12 = sbr.rel (!%p10_p4) target bundleno = 1 (0x1), region = 62 }

// kernel: pilotnet_forward.7
= control target key start
LH: loop header
LB: loop body
LE: loop exit
PB: predicated region body
PF: predicated region fallthrough
CT: control target
= control target key end

     0   :  { %s4167_s12 = smov 0   ;;  %s4970_s0 = inlined_call_operand.vmem [shape: bf16[2048,600], index: 0, kind: input, shape index: {}]   ;;  %s4971_s1 = inlined_call_operand.vmem [shape: bf16[600,128], index: 1, kind: input, shape index: {}]   ;;  %s4972_s2 = inlined_call_operand.vmem [shape: f32[1,128], index: 2, kind: input, shape index: {}]   ;;  %s4973_s3 = inlined_call_operand.vmem [shape: bf16[2048,128], index: 3, kind: output, shape index: {}]  }
   0x1 LB: > { %s3013_s13 = sadd.s32 4294967295, %s4144_s12   ;;  %p3017_p0 = scmp.ge.s32.totalorder %s4144_s12, 1  ;;  %s4144_s12 = sphi %s4167_s12, %s13_s12  }
   0x2   : > { %p139_p1 = scmp.lt.s32.totalorder %s4144_s12, 5 }
   0x4   : > { %p140_p2 = pnand %p3017_p0, %p139_p1 }
   0x6   : > { %143 = sbr.rel (%p140_p2) target bundleno = 614 (0x266), region = 32 }
   0xd   : > { %v3875_v0 = vld [vmem:[%s4971_s1] sm:$0xff]   ;;  %v4146_v1 = vmov 0   ;;  %s3018_s16 = sshll.u32 %s3013_s13, 6  ;;  %v3876_v2 = vld [vmem:[%s4971_s1 + $0x8] sm:$0xff]   ;;  %v3877_v3 = vld [vmem:[%s4971_s1 + $0x10] sm:$0xff]   ;;  %vm1574_vm0 = vcmask 1043456  }
   0xe   : > { %1578 = vmatprep.subr.bf16.mxu0 %v4146_v1  ;;  %3688 = vmatprep.subr.bf16.mxu1 %v4146_v1  ;;  %p165_p3 = scmp.lt.s32.totalorder %s3018_s16, 255  ;;  %v3878_v4 = vld [vmem:[%s4971_s1 + $0x18] sm:$0xff]   ;;  %v3879_v5 = vld [vmem:[%s4971_s1 + $0x20] sm:$0xff]   ;;  %v3880_v7 = vld [vmem:[%s4971_s1 + $0x28] sm:$0xff]   ;;  %vm1477_vm1 = vcmask 719872  }
   0xf   : > { %1579 = vmatpush1.bf16.msra.mxu0 %v3875_v0  ;;  %3704 = vmatpush1.bf16.msra.mxu1 %v3875_v0  ;;  %v3881_v9 = vld [vmem:[%s4971_s1 + $0x30] sm:$0xff]   ;;  %v3882_v10 = vld [vmem:[%s4971_s1 + $0x38] sm:$0xff]   ;;  %v3883_v11 = vld [vmem:[%s4971_s1 + $0x40] sm:$0xff]  }
  0x10   : > { %1580 = vmatprep.subr.bf16.mxu0 %v4146_v1  ;;  %3689 = vmatprep.subr.bf16.mxu1 %v4146_v1  ;;  %s5009_s16 = smov (!%p165_p3, %s3018_s16), 255  ;;  %v3884_v12 = vld [vmem:[%s4971_s1 + $0x48] sm:$0xff]   ;;  %v3885_v13 = vld [vmem:[%s4971_s1 + $0x50] sm:$0xff]   ;;  %v3886_v14 = vld [vmem:[%s4971_s1 + $0x58] sm:$0xff]  }
  0x11   : > { %s3865_s23 = smul.u32 20, %s5009_s16  ;;  %v3887_v15 = vld [vmem:[%s4971_s1 + $0x60] sm:$0xff]   ;;  %v3888_v16 = vld [vmem:[%s4971_s1 + $0x68] sm:$0xff]   ;;  %v3889_v17 = vld [vmem:[%s4971_s1 + $0x70] sm:$0xff]  }
  0x12   : > { %v3890_v18 = vld [vmem:[%s4971_s1 + $0x78] sm:$0xff]   ;;  %v3898_v19 = vld [vmem:[%s4971_s1 + $0x100] sm:$0xff]   ;;  %v3931_v25 = vld [vmem:[%s4971_s1 + $0x108] sm:$0xff]  }
  0x13   : > { %1581 = vmatpush1.bf16.msra.mxu0 %v3876_v2  ;;  %3705 = vmatpush1.bf16.msra.mxu1 %v3876_v2  ;;  %s4204_s28 = scalar_lea.vmem %s4970_s0, %s3865_s23  ;;  %v3897_v22 = vld [vmem:[%s4971_s1 + $0x80] sm:$0xff]   ;;  %v3899_v26 = vld [vmem:[%s4971_s1 + $0x88] sm:$0xff]   ;;  %v3963_v27 = vld [vmem:[%s4971_s1 + $0x110] sm:$0xff]   ;;  %s3021_s23 = sshll.u32 %s5009_s16, 2 }
  0x14   : > { %1582 = vmatprep.subr.bf16.mxu0 %v4146_v1  ;;  %3690 = vmatprep.subr.bf16.mxu1 %v4146_v1  ;;  %v3893_v6 = vld [vmem:[%s4204_s28 + $0x4] ss:$20 sps:$4 sm:$0xff]   ;;  %v3891_v20 = vld [vmem:[%s4204_s28] ss:$20 sps:$4 sm:$0xff]   ;;  %v3904_v28 = vld [vmem:[%s4204_s28 + $0x28] ss:$20 sps:$4 sm:$0xff]   ;;  %s4760_s16 = scalar_lea.vmem %s4973_s3, %s3021_s23 }
  0x15   : > { %v3896_v8 = vld [vmem:[%s4204_s28 + $0x144] ss:$20 sps:$4 sm:$0xff]   ;;  %1610 = vmatprep.mubr.bf16.mxu0 %v3893_v6  ;;  %v3894_v21 = vld [vmem:[%s4204_s28 + $0x140] ss:$20 sps:$4 sm:$0xff]   ;;  %v3905_v29 = vld [vmem:[%s4204_s28 + $0x168] ss:$20 sps:$4 sm:$0xff]  }
  0x16   : > { %1674 = vmatprep.mubr.bf16.mxu1 %v3896_v8  ;;  %v3900_v23 = vld [vmem:[%s4204_s28 + $0x2c] ss:$20 sps:$4 sm:$0xff]   ;;  %v3906_v30 = vld [vmem:[%s4971_s1 + $0x90] sm:$0xff]   ;;  %v3988_v33 = vld [vmem:[%s4971_s1 + $0x118] sm:$0xff]  }
  0x17   : > { %1583 = vmatpush1.bf16.msra.mxu0 %v3877_v3  ;;  %3706 = vmatpush1.bf16.msra.mxu1 %v3877_v3  ;;  %v3902_v24 = vld [vmem:[%s4204_s28 + $0x16c] ss:$20 sps:$4 sm:$0xff]   ;;  %v3908_v31 = vld [vmem:[%s4204_s28 + $0x54] ss:$20 sps:$4 sm:$0xff]   ;;  %v3907_v34 = vld [vmem:[%s4971_s1 + $0x98] sm:$0xff]  }
  0x18   : > { %1584 = vmatprep.subr.bf16.mxu0 %v4146_v1  ;;  %3691 = vmatprep.subr.bf16.mxu1 %v4146_v1  ;;  %v3910_v32 = vld [vmem:[%s4204_s28 + $0x194] ss:$20 sps:$4 sm:$0xff]   ;;  %v3912_v35 = vld [vmem:[%s4204_s28 + $0x50] ss:$20 sps:$4 sm:$0xff]   ;;  %v3920_v42 = vld [vmem:[%s4204_s28 + $0x78] ss:$20 sps:$4 sm:$0xff]  }
  0x19   : > { %v3913_v36 = vld [vmem:[%s4204_s28 + $0x190] ss:$20 sps:$4 sm:$0xff]   ;;  %v3915_v40 = vld [vmem:[%s4971_s1 + $0xa8] sm:$0xff]   ;;  %v3923_v47 = vld [vmem:[%s4971_s1 + $0xb8] sm:$0xff]  }
  0x1a   : > { %v3914_v37 = vld [vmem:[%s4971_s1 + $0xa0] sm:$0xff]   ;;  %v3916_v38 = vld [vmem:[%s4204_s28 + $0x7c] ss:$20 sps:$4 sm:$0xff]   ;;  %v3921_v43 = vld [vmem:[%s4204_s28 + $0x1b8] ss:$20 sps:$4 sm:$0xff]  }
  0x1b   : > { %1585 = vmatpush1.bf16.msra.mxu0 %v3878_v4  ;;  %3707 = vmatpush1.bf16.msra.mxu1 %v3878_v4  ;;  %v3918_v39 = vld [vmem:[%s4204_s28 + $0x1bc] ss:$20 sps:$4 sm:$0xff]   ;;  %v4013_v41 = vld [vmem:[%s4971_s1 + $0x120] sm:$0xff]   ;;  %v4038_v53 = vld [vmem:[%s4971_s1 + $0x128] ss:$0 sps:$4 sm:$0xff]  }
  0x1c   : > { %1586 = vmatprep.subr.bf16.mxu0 %v4146_v1  ;;  %3692 = vmatprep.subr.bf16.mxu1 %v4146_v1  ;;  %v3922_v44 = vld [vmem:[%s4971_s1 + $0xb0] sm:$0xff]   ;;  %v3924_v45 = vld [vmem:[%s4204_s28 + $0xa4] ss:$20 sps:$4 sm:$0xff]   ;;  %v3933_v51 = vld [vmem:[%s4204_s28 + $0xcc] ss:$20 sps:$4 sm:$0xff]   ;;  %v1576_v57 = vsel %vm1574_vm0, %v4038_v53, 0 }
  0x1d   : > { %v3926_v46 = vld [vmem:[%s4204_s28 + $0x1e4] ss:$20 sps:$4 sm:$0xff]   ;;  %v3928_v48 = vld [vmem:[%s4204_s28 + $0xa0] ss:$20 sps:$4 sm:$0xff]   ;;  %v3932_v54 = vld [vmem:[%s4971_s1 + $0xc8] sm:$0xff]  }
  0x1e   : > { %v3929_v49 = vld [vmem:[%s4204_s28 + $0x1e0] ss:$20 sps:$4 sm:$0xff]   ;;  %v3937_v55 = vld [vmem:[%s4204_s28 + $0xc8] ss:$20 sps:$4 sm:$0xff]   ;;  %v3945_v62 = vld [vmem:[%s4204_s28 + $0xf0] ss:$20 sps:$4 sm:$0xff]  }
  0x1f   : > { %1587 = vmatpush1.bf16.msra.mxu0 %v3879_v5  ;;  %3708 = vmatpush1.bf16.msra.mxu1 %v3879_v5  ;;  %v3930_v50 = vld [vmem:[%s4971_s1 + $0xc0] sm:$0xff]   ;;  %v3938_v56 = vld [vmem:[%s4204_s28 + $0x208] ss:$20 sps:$4 sm:$0xff]   ;;  %v3939_v58 = vld [vmem:[%s4971_s1 + $0xd0] sm:$0xff]  }
  0x20   : > { %1588 = vmatprep.subr.bf16.mxu0 %v4146_v1  ;;  %3693 = vmatprep.subr.bf16.mxu1 %v4146_v1  ;;  %v3935_v52 = vld [vmem:[%s4204_s28 + $0x20c] ss:$20 sps:$4 sm:$0xff]   ;;  %v3941_v59 = vld [vmem:[%s4204_s28 + $0xf4] ss:$20 sps:$4 sm:$0xff]   ;;  %v3940_v61 = vld [vmem:[%s4971_s1 + $0xd8] sm:$0xff]  }
  0x21   : > { %v3943_v60 = vld [vmem:[%s4204_s28 + $0x234] ss:$20 sps:$4 sm:$0xff]   ;;  %v3946_v63 = vld [vmem:[%s4204_s28 + $0x230] ss:$20 sps:$4 sm:$0xff]   ;;  %v3953_v5 = vld [vmem:[%s4204_s28 + $0x118] ss:$20 sps:$4 sm:$0xff]  }
  0x22   : > { %v3947_v0 = vld [vmem:[%s4971_s1 + $0xe0] sm:$0xff]   ;;  %v3949_v2 = vld [vmem:[%s4204_s28 + $0x11c] ss:$20 sps:$4 sm:$0xff]   ;;  %v3948_v4 = vld [vmem:[%s4971_s1 + $0xe8] sm:$0xff]  }
  0x23   : > { %1589 = vmatpush1.bf16.msra.mxu0 %v3880_v7  ;;  %3709 = vmatpush1.bf16.msra.mxu1 %v3880_v7  ;;  %v3951_v3 = vld [vmem:[%s4204_s28 + $0x25c] ss:$20 sps:$4 sm:$0xff]   ;;  %v3954_v6 = vld [vmem:[%s4204_s28 + $0x258] ss:$20 sps:$4 sm:$0xff]  }
  0x24   : > { %1590 = vmatprep.subr.bf16.mxu0 %v4146_v1  ;;  %3694 = vmatprep.subr.bf16.mxu1 %v4146_v1  ;;  %v3955_v7 = vld [vmem:[%s4971_s1 + $0xf0] sm:$0xff]   ;;  %v3957_v8 = vld [vmem:[%s4204_s28 + $0x284] ss:$20 sps:$4 sm:$0xff]  }
  0x27   : > { %1591 = vmatpush1.bf16.msra.mxu0 %v3881_v9  ;;  %3710 = vmatpush1.bf16.msra.mxu1 %v3881_v9  ;;  %v3961_v9 = vld [vmem:[%s4204_s28 + $0xc] ss:$20 sps:$4 sm:$0xff]  }
  0x28   : > { %1592 = vmatprep.subr.bf16.mxu0 %v4146_v1  ;;  %3695 = vmatprep.subr.bf16.mxu1 %v4146_v1 }
  0x2b   : > { %1593 = vmatpush1.bf16.msra.mxu0 %v3882_v10  ;;  %3711 = vmatpush1.bf16.msra.mxu1 %v3882_v10  ;;  %v3956_v10 = vld [vmem:[%s4971_s1 + $0xf8] sm:$0xff]  }
  0x2c   : > { %1594 = vmatprep.subr.bf16.mxu0 %v4146_v1  ;;  %3696 = vmatprep.subr.bf16.mxu1 %v4146_v1 }
  0x2f   : > { %1595 = vmatpush1.bf16.msra.mxu0 %v3883_v11  ;;  %3712 = vmatpush1.bf16.msra.mxu1 %v3883_v11  ;;  %v3959_v11 = vld [vmem:[%s4204_s28 + $0x8] ss:$20 sps:$4 sm:$0xff]  }
  0x30   : > { %1596 = vmatprep.subr.bf16.mxu0 %v4146_v1  ;;  %3697 = vmatprep.subr.bf16.mxu1 %v4146_v1 }
  0x33   : > { %1597 = vmatpush1.bf16.msra.mxu0 %v3884_v12  ;;  %3713 = vmatpush1.bf16.msra.mxu1 %v3884_v12  ;;  %v3962_v12 = vld [vmem:[%s4204_s28 + $0x280] ss:$20 sps:$4 sm:$0xff]  }
  0x34   : > { %1598 = vmatprep.subr.bf16.mxu0 %v4146_v1  ;;  %3698 = vmatprep.subr.bf16.mxu1 %v4146_v1 }
  0x37   : > { %1599 = vmatpush1.bf16.msra.mxu0 %v3885_v13  ;;  %3714 = vmatpush1.bf16.msra.mxu1 %v3885_v13  ;;  %v3964_v13 = vld [vmem:[%s4204_s28 + $0x2ac] ss:$20 sps:$4 sm:$0xff]  }
  0x38   : > { %1600 = vmatprep.subr.bf16.mxu0 %v4146_v1  ;;  %3699 = vmatprep.subr.bf16.mxu1 %v4146_v1 }
  0x3b   : > { %1601 = vmatpush1.bf16.msra.mxu0 %v3886_v14  ;;  %3715 = vmatpush1.bf16.msra.mxu1 %v3886_v14  ;;  %v3966_v14 = vld [vmem:[%s4204_s28 + $0x34] ss:$20 sps:$4 sm:$0xff]  }
  0x3c   : > { %1602 = vmatprep.subr.bf16.mxu0 %v4146_v1  ;;  %3700 = vmatprep.subr.bf16.mxu1 %v4146_v1 }
  0x3f   : > { %1603 = vmatpush1.bf16.msra.mxu0 %v3887_v15  ;;  %3716 = vmatpush1.bf16.msra.mxu1 %v3887_v15  ;;  %v3968_v15 = vld [vmem:[%s4204_s28 + $0x2a8] ss:$20 sps:$4 sm:$0xff]  }
  0x40   : > { %1604 = vmatprep.subr.bf16.mxu0 %v4146_v1  ;;  %3701 = vmatprep.subr.bf16.mxu1 %v4146_v1 }
  0x43   : > { %1605 = vmatpush1.bf16.msra.mxu0 %v3888_v16  ;;  %3717 = vmatpush1.bf16.msra.mxu1 %v3888_v16  ;;  %v3969_v16 = vld [vmem:[%s4204_s28 + $0x30] ss:$20 sps:$4 sm:$0xff]  }
  0x44   : > { %1606 = vmatprep.subr.bf16.mxu0 %v4146_v1  ;;  %3702 = vmatprep.subr.bf16.mxu1 %v4146_v1 }
  0x47   : > { %1607 = vmatpush1.bf16.msra.mxu0 %v3889_v17  ;;  %3718 = vmatpush1.bf16.msra.mxu1 %v3889_v17  ;;  %v3970_v17 = vld [vmem:[%s4204_s28 + $0x2d4] ss:$20 sps:$4 sm:$0xff]  }
  0x48   : > { %1608 = vmatprep.subr.bf16.mxu0 %v4146_v1  ;;  %3703 = vmatprep.subr.bf16.mxu1 %v4146_v1 }
  0x4b   : > { %1609 = vmatpush1.bf16.msra.mxu0 %v3890_v18  ;;  %3719 = vmatpush1.bf16.msra.mxu1 %v3890_v18  ;;  %v3974_v18 = vld [vmem:[%s4204_s28 + $0x2d0] ss:$20 sps:$4 sm:$0xff]  }
  0x4c   : > { %1867 = vmatprep.subr.bf16.mxu0 %v4146_v1  ;;  %3612 = vmatprep.subr.bf16.mxu1 %v3898_v19 }
  0x4e   : > { %1611 = vmatmul.mubr.bf16.vlgmr.msra.gmra.mrb[0].mxu0 %v3891_v20  ;;  %1675 = vmatmul.mubr.bf16.vlgmr.msra.gmra.mrb[0].mxu1 %v3894_v21  ;;  %v3976_v20 = vld [vmem:[%s4204_s28 + $0x2fc] ss:$20 sps:$4 sm:$0xff]   ;;  %v3978_v21 = vld [vmem:[%s4204_s28 + $0x84] ss:$20 sps:$4 sm:$0xff]  }
  0x4f   : > { %1868 = vmatpush1.bf16.msra.mxu0 %v3897_v22  ;;  %3613 = vmatpush3.bf16.msra.mxu1 %v3898_v19  ;;  %v3975_v19 = vld [vmem:[%s4204_s28 + $0x58] ss:$20 sps:$4 sm:$0xff]  }
  0x50   : > { %1869 = vmatprep.subr.bf16.mxu0 %v4146_v1  ;;  %1618 = vmatprep.mubr.bf16.mxu0 %v3900_v23  ;;  %v3980_v22 = vld [vmem:[%s4204_s28 + $0x2f8] ss:$20 sps:$4 sm:$0xff]   ;;  %v3981_v23 = vld [vmem:[%s4204_s28 + $0x80] ss:$20 sps:$4 sm:$0xff]  }
  0x51   : > { %1682 = vmatprep.mubr.bf16.mxu1 %v3902_v24  ;;  %3614 = vmatprep.subr.bf16.mxu1 %v3931_v25  ;;  %v3982_v24 = vld [vmem:[%s4204_s28 + $0x324] ss:$20 sps:$4 sm:$0xff]  }
  0x53   : > { %1870 = vmatpush1.bf16.msra.mxu0 %v3899_v26  ;;  %3615 = vmatpush3.bf16.msra.mxu1 %v3931_v25  ;;  %v3984_v25 = vld [vmem:[%s4204_s28 + $0xac] ss:$20 sps:$4 sm:$0xff]  }
  0x54   : > { %1871 = vmatprep.subr.bf16.mxu0 %v4146_v1  ;;  %3616 = vmatprep.subr.bf16.mxu1 %v3963_v27  ;;  %v3986_v26 = vld [vmem:[%s4204_s28 + $0x320] ss:$20 sps:$4 sm:$0xff]  }
  0x56   : > { %1619 = vmatmul.mubr.bf16.gmra.mrb[4].mxu0 %v3904_v28  ;;  %1683 = vmatmul.mubr.bf16.gmra.mrb[4].mxu1 %v3905_v29  ;;  %v3989_v28 = vld [vmem:[%s4204_s28 + $0x34c] ss:$20 sps:$4 sm:$0xff]   ;;  %v3991_v29 = vld [vmem:[%s4204_s28 + $0xd4] ss:$20 sps:$4 sm:$0xff]  }
  0x57   : > { %1872 = vmatpush1.bf16.msra.mxu0 %v3906_v30  ;;  %1626 = vmatprep.mubr.bf16.mxu0 %v3908_v31  ;;  %v3993_v30 = vld [vmem:[%s4204_s28 + $0x348] ss:$20 sps:$4 sm:$0xff]   ;;  %v3994_v31 = vld [vmem:[%s4204_s28 + $0xd0] ss:$20 sps:$4 sm:$0xff]  }
  0x58   : > { %1873 = vmatprep.subr.bf16.mxu0 %v4146_v1  ;;  %1690 = vmatprep.mubr.bf16.mxu1 %v3910_v32  ;;  %v3995_v32 = vld [vmem:[%s4204_s28 + $0x374] ss:$20 sps:$4 sm:$0xff]  }
  0x59   : > { %3617 = vmatpush3.bf16.msra.mxu1 %v3963_v27  ;;  %v3987_v27 = vld [vmem:[%s4204_s28 + $0xa8] ss:$20 sps:$4 sm:$0xff]  }
  0x5a   : > { %3618 = vmatprep.subr.bf16.mxu1 %v3988_v33 }
  0x5b   : > { %1874 = vmatpush1.bf16.msra.mxu0 %v3907_v34  ;;  %v3999_v34 = vld [vmem:[%s4204_s28 + $0x370] ss:$20 sps:$4 sm:$0xff]  }
  0x5c   : > { %1875 = vmatprep.subr.bf16.mxu0 %v4146_v1 }
  0x5d   : > { %3619 = vmatpush3.bf16.msra.mxu1 %v3988_v33  ;;  %v3997_v33 = vld [vmem:[%s4204_s28 + $0xfc] ss:$20 sps:$4 sm:$0xff]  }
  0x5e   : > { %1627 = vmatmul.mubr.bf16.gmra.mrb[8].mxu0 %v3912_v35  ;;  %1691 = vmatmul.mubr.bf16.gmra.mrb[8].mxu1 %v3913_v36  ;;  %v4000_v35 = vld [vmem:[%s4204_s28 + $0xf8] ss:$20 sps:$4 sm:$0xff]   ;;  %v4001_v36 = vld [vmem:[%s4204_s28 + $0x39c] ss:$20 sps:$4 sm:$0xff]  }
  0x5f   : > { %1876 = vmatpush1.bf16.msra.mxu0 %v3914_v37  ;;  %1634 = vmatprep.mubr.bf16.mxu0 %v3916_v38  ;;  %v4003_v37 = vld [vmem:[%s4204_s28 + $0x124] ss:$20 sps:$4 sm:$0xff]  }
  0x60   : > { %1877 = vmatprep.subr.bf16.mxu0 %v4146_v1  ;;  %1698 = vmatprep.mubr.bf16.mxu1 %v3918_v39  ;;  %v4005_v38 = vld [vmem:[%s4204_s28 + $0x398] ss:$20 sps:$4 sm:$0xff]   ;;  %v4006_v39 = vld [vmem:[%s4204_s28 + $0x120] ss:$20 sps:$4 sm:$0xff]  }
  0x61   : > { %3620 = vmatprep.subr.bf16.mxu1 %v4013_v41 }
  0x62   : > { %3621 = vmatpush3.bf16.msra.mxu1 %v4013_v41  ;;  %v4009_v41 = vld [vmem:[%s4204_s28 + $0x14c] ss:$20 sps:$4 sm:$0xff]  }
  0x63   : > { %1878 = vmatpush1.bf16.msra.mxu0 %v3915_v40  ;;  %3864 = vmatprep.subr.msk.bf16.mxu1 %vm1574_vm0, %v4038_v53  ;;  %v4007_v40 = vld [vmem:[%s4204_s28 + $0x3c4] ss:$20 sps:$4 sm:$0xff]  }
  0x64   : > { %1879 = vmatprep.subr.bf16.mxu0 %v4146_v1  ;;  %v4028_v53 = vld [vmem:[%s4204_s28 + $0x1c4] ss:$20 sps:$4 sm:$0xff]  }
  0x66   : > { %1635 = vmatmul.mubr.bf16.gmra.mrb[12].mxu0 %v3920_v42  ;;  %1699 = vmatmul.mubr.bf16.gmra.mrb[12].mxu1 %v3921_v43  ;;  %v4011_v42 = vld [vmem:[%s4204_s28 + $0x3c0] ss:$20 sps:$4 sm:$0xff]   ;;  %v4012_v43 = vld [vmem:[%s4204_s28 + $0x148] ss:$20 sps:$4 sm:$0xff]  }
  0x67   : > { %1880 = vmatpush1.bf16.msra.mxu0 %v3922_v44  ;;  %1642 = vmatprep.mubr.bf16.mxu0 %v3924_v45  ;;  %v4014_v44 = vld [vmem:[%s4204_s28 + $0x3ec] ss:$20 sps:$4 sm:$0xff]   ;;  %v4016_v45 = vld [vmem:[%s4204_s28 + $0x174] ss:$20 sps:$4 sm:$0xff]  }
  0x68   : > { %1881 = vmatprep.subr.bf16.mxu0 %v4146_v1  ;;  %1706 = vmatprep.mubr.bf16.mxu1 %v3926_v46  ;;  %v4018_v46 = vld [vmem:[%s4204_s28 + $0x3e8] ss:$20 sps:$4 sm:$0xff]  }
  0x69   : > { %3623 = vmatpush3.bf16.msra.mxu1 %v1576_v57  ;;  %v4034_v57 = vld [vmem:[%s4204_s28 + $0x1ec] ss:$20 sps:$4 sm:$0xff]  }
  0x6b   : > { %1882 = vmatpush1.bf16.msra.mxu0 %v3923_v47  ;;  %v4019_v47 = vld [vmem:[%s4204_s28 + $0x170] ss:$20 sps:$4 sm:$0xff]  }
  0x6c   : > { %1883 = vmatprep.subr.bf16.mxu0 %v4146_v1 }
  0x6e   : > { %1643 = vmatmul.mubr.bf16.gmra.mrb[16].mxu0 %v3928_v48  ;;  %1707 = vmatmul.mubr.bf16.gmra.mrb[16].mxu1 %v3929_v49  ;;  %v4020_v48 = vld [vmem:[%s4204_s28 + $0x414] ss:$20 sps:$4 sm:$0xff]   ;;  %v4022_v49 = vld [vmem:[%s4204_s28 + $0x19c] ss:$20 sps:$4 sm:$0xff]  }
  0x6f   : > { %1884 = vmatpush1.bf16.msra.mxu0 %v3930_v50  ;;  %1650 = vmatprep.mubr.bf16.mxu0 %v3933_v51  ;;  %v4024_v50 = vld [vmem:[%s4204_s28 + $0x410] ss:$20 sps:$4 sm:$0xff]   ;;  %v4025_v51 = vld [vmem:[%s4204_s28 + $0x198] ss:$20 sps:$4 sm:$0xff]  }
  0x70   : > { %1885 = vmatprep.subr.bf16.mxu0 %v4146_v1  ;;  %1714 = vmatprep.mubr.bf16.mxu1 %v3935_v52  ;;  %v4026_v52 = vld [vmem:[%s4204_s28 + $0x43c] ss:$20 sps:$4 sm:$0xff]  }
  0x73   : > { %1886 = vmatpush1.bf16.msra.mxu0 %v3932_v54  ;;  %v4030_v54 = vld [vmem:[%s4204_s28 + $0x438] ss:$20 sps:$4 sm:$0xff]  }
  0x74   : > { %1887 = vmatprep.subr.bf16.mxu0 %v4146_v1 }
  0x76   : > { %1651 = vmatmul.mubr.bf16.gmra.mrb[20].mxu0 %v3937_v55  ;;  %1715 = vmatmul.mubr.bf16.gmra.mrb[20].mxu1 %v3938_v56  ;;  %v4031_v55 = vld [vmem:[%s4204_s28 + $0x1c0] ss:$20 sps:$4 sm:$0xff]   ;;  %v4032_v56 = vld [vmem:[%s4204_s28 + $0x464] ss:$20 sps:$4 sm:$0xff]  }
  0x77   : > { %1888 = vmatpush1.bf16.msra.mxu0 %v3939_v58  ;;  %1658 = vmatprep.mubr.bf16.mxu0 %v3941_v59  ;;  %v4036_v58 = vld [vmem:[%s4204_s28 + $0x460] ss:$20 sps:$4 sm:$0xff]   ;;  %v4037_v59 = vld [vmem:[%s4204_s28 + $0x1e8] ss:$20 sps:$4 sm:$0xff]  }
  0x78   : > { %1889 = vmatprep.subr.bf16.mxu0 %v4146_v1  ;;  %1722 = vmatprep.mubr.bf16.mxu1 %v3943_v60  ;;  %v4039_v60 = vld [vmem:[%s4204_s28 + $0x48c] ss:$20 sps:$4 sm:$0xff]  }
  0x7b   : > { %1890 = vmatpush1.bf16.msra.mxu0 %v3940_v61  ;;  %v4041_v61 = vld [vmem:[%s4204_s28 + $0x214] ss:$20 sps:$4 sm:$0xff]  }
  0x7c   : > { %1891 = vmatprep.subr.bf16.mxu0 %v4146_v1 }
  0x7e   : > { %1659 = vmatmul.mubr.bf16.gmra.mrb[24].mxu0 %v3945_v62  ;;  %1723 = vmatmul.mubr.bf16.gmra.mrb[24].mxu1 %v3946_v63  ;;  %v4043_v62 = vld [vmem:[%s4204_s28 + $0x488] ss:$20 sps:$4 sm:$0xff]   ;;  %v4044_v63 = vld [vmem:[%s4204_s28 + $0x210] ss:$20 sps:$4 sm:$0xff]  }
  0x7f   : > { %1892 = vmatpush1.bf16.msra.mxu0 %v3947_v0  ;;  %1666 = vmatprep.mubr.bf16.mxu0 %v3949_v2  ;;  %v4045_v0 = vld [vmem:[%s4204_s28 + $0x4b4] ss:$20 sps:$4 sm:$0xff]   ;;  %v4047_v2 = vld [vmem:[%s4204_s28 + $0x23c] ss:$20 sps:$4 sm:$0xff]  }
  0x80   : > { %1893 = vmatprep.subr.bf16.mxu0 %v4146_v1  ;;  %1730 = vmatprep.mubr.bf16.mxu1 %v3951_v3  ;;  %v4049_v3 = vld [vmem:[%s4204_s28 + $0x4b0] ss:$20 sps:$4 sm:$0xff]  }
  0x83   : > { %1894 = vmatpush1.bf16.msra.mxu0 %v3948_v4  ;;  %v4050_v4 = vld [vmem:[%s4204_s28 + $0x238] ss:$20 sps:$4 sm:$0xff]  }
  0x84   : > { %1895 = vmatprep.subr.bf16.mxu0 %v4146_v1 }
  0x86   : > { %1667 = vmatmul.mubr.bf16.gmra.mrb[28].mxu0 %v3953_v5  ;;  %1731 = vmatmul.mubr.bf16.gmra.mrb[28].mxu1 %v3954_v6  ;;  %v4051_v5 = vld [vmem:[%s4204_s28 + $0x4dc] ss:$20 sps:$4 sm:$0xff]   ;;  %v4053_v6 = vld [vmem:[%s4204_s28 + $0x264] ss:$20 sps:$4 sm:$0xff]  }
  0x87   : > { %1896 = vmatpush1.bf16.msra.mxu0 %v3955_v7  ;;  %1738 = vmatprep.mubr.bf16.mxu1 %v3957_v8  ;;  %v4055_v7 = vld [vmem:[%s4204_s28 + $0x4d8] ss:$20 sps:$4 sm:$0xff]   ;;  %v4056_v8 = vld [vmem:[%s4204_s28 + $0x260] ss:$20 sps:$4 sm:$0xff]  }
  0x88   : > { %1897 = vmatprep.subr.bf16.mxu0 %v4146_v1  ;;  %1899 = vmatprep.mubr.bf16.mxu0 %v3961_v9  ;;  %v3972_v1 = vld [vmem:[%s4204_s28 + $0x5c] ss:$20 sps:$4 sm:$0xff]   ;;  %v4057_v9 = vld [vmem:[%s4204_s28 + $0x28c] ss:$20 sps:$4 sm:$0xff]  }
  0x8b   : > { %1898 = vmatpush1.bf16.msra.mxu0 %v3956_v10  ;;  %v4059_v10 = vld [vmem:[%s4204_s28 + $0x10] ss:$20 sps:$4 sm:$0xff]  }
  0x8e   : > { %1739 = vmatmul.mubr.bf16.gmra.mrb[32].mxu1 %v3962_v12  ;;  %1900 = vmatmul.mubr.bf16.vlgmr.msra.gmra.mrb[0].mxu0 %v3959_v11  ;;  %v4060_v11 = vld [vmem:[%s4204_s28 + $0x288] ss:$20 sps:$4 sm:$0xff]   ;;  %v4061_v12 = vld [vmem:[%s4204_s28 + $0x38] ss:$20 sps:$4 sm:$0xff]  }
  0x8f   : > { %1746 = vmatprep.mubr.bf16.mxu1 %v3964_v13  ;;  %1907 = vmatprep.mubr.bf16.mxu0 %v3966_v14  ;;  %v4062_v13 = vld [vmem:[%s4204_s28 + $0x2b4] ss:$20 sps:$4 sm:$0xff]  }
  0x90   : > { %v4064_v14 = vld [vmem:[%s4204_s28 + $0x60] ss:$20 sps:$4 sm:$0xff]  }
  0x96   : > { %1747 = vmatmul.mubr.bf16.gmra.mrb[36].mxu1 %v3968_v15  ;;  %1908 = vmatmul.mubr.bf16.gmra.mrb[4].mxu0 %v3969_v16  ;;  %v4065_v15 = vld [vmem:[%s4204_s28 + $0x2b0] ss:$20 sps:$4 sm:$0xff]   ;;  %v4066_v16 = vld [vmem:[%s4204_s28 + $0x88] ss:$20 sps:$4 sm:$0xff]  }
  0x97   : > { %1754 = vmatprep.mubr.bf16.mxu1 %v3970_v17  ;;  %1915 = vmatprep.mubr.bf16.mxu0 %v3972_v1  ;;  %v4067_v17 = vld [vmem:[%s4204_s28 + $0x2dc] ss:$20 sps:$4 sm:$0xff]  }
  0x98   : > { %v4069_v1 = vld [vmem:[%s4204_s28 + $0xb0] ss:$20 sps:$4 sm:$0xff]  }
  0x9e   : > { %1755 = vmatmul.mubr.bf16.gmra.mrb[40].mxu1 %v3974_v18  ;;  %1916 = vmatmul.mubr.bf16.gmra.mrb[8].mxu0 %v3975_v19  ;;  %v4070_v18 = vld [vmem:[%s4204_s28 + $0x2d8] ss:$20 sps:$4 sm:$0xff]  }
  0x9f   : > { %1762 = vmatprep.mubr.bf16.mxu1 %v3976_v20  ;;  %1923 = vmatprep.mubr.bf16.mxu0 %v3978_v21  ;;  %v4071_v19 = vld [vmem:[%s4204_s28 + $0xd8] ss:$20 sps:$4 sm:$0xff]   ;;  %v4074_v21 = vld [vmem:[%s4204_s28 + $0x100] ss:$20 sps:$4 sm:$0xff]  }
  0xa0   : > { %v4072_v20 = vld [vmem:[%s4204_s28 + $0x304] ss:$20 sps:$4 sm:$0xff]  }
  0xa6   : > { %1763 = vmatmul.mubr.bf16.gmra.mrb[44].mxu1 %v3980_v22  ;;  %1924 = vmatmul.mubr.bf16.gmra.mrb[12].mxu0 %v3981_v23 }
  0xa7   : > { %1770 = vmatprep.mubr.bf16.mxu1 %v3982_v24  ;;  %1931 = vmatprep.mubr.bf16.mxu0 %v3984_v25  ;;  %v4075_v24 = vld [vmem:[%s4204_s28 + $0x300] ss:$20 sps:$4 sm:$0xff]   ;;  %v4076_v25 = vld [vmem:[%s4204_s28 + $0x128] ss:$20 sps:$4 sm:$0xff]  }
  0xae   : > { %1771 = vmatmul.mubr.bf16.gmra.mrb[48].mxu1 %v3986_v26  ;;  %1932 = vmatmul.mubr.bf16.gmra.mrb[16].mxu0 %v3987_v27  ;;  %v4077_v27 = vld [vmem:[%s4204_s28 + $0x32c] ss:$20 sps:$4 sm:$0xff]  }
  0xaf   : > { %1778 = vmatprep.mubr.bf16.mxu1 %v3989_v28  ;;  %1939 = vmatprep.mubr.bf16.mxu0 %v3991_v29  ;;  %v4079_v28 = vld [vmem:[%s4204_s28 + $0x150] ss:$20 sps:$4 sm:$0xff]  }
  0xb6   : > { %1779 = vmatmul.mubr.bf16.gmra.mrb[52].mxu1 %v3993_v30  ;;  %1940 = vmatmul.mubr.bf16.gmra.mrb[20].mxu0 %v3994_v31 }
  0xb7   : > { %1786 = vmatprep.mubr.bf16.mxu1 %v3995_v32  ;;  %1947 = vmatprep.mubr.bf16.mxu0 %v3997_v33  ;;  %v4080_v32 = vld [vmem:[%s4204_s28 + $0x328] ss:$20 sps:$4 sm:$0xff]   ;;  %v4081_v33 = vld [vmem:[%s4204_s28 + $0x178] ss:$20 sps:$4 sm:$0xff]  }
  0xbe   : > { %1787 = vmatmul.mubr.bf16.gmra.mrb[56].mxu1 %v3999_v34  ;;  %1948 = vmatmul.mubr.bf16.gmra.mrb[24].mxu0 %v4000_v35  ;;  %v4082_v35 = vld [vmem:[%s4204_s28 + $0x354] ss:$20 sps:$4 sm:$0xff]  }
  0xbf   : > { %1794 = vmatprep.mubr.bf16.mxu1 %v4001_v36  ;;  %1955 = vmatprep.mubr.bf16.mxu0 %v4003_v37  ;;  %v4084_v36 = vld [vmem:[%s4204_s28 + $0x1a0] ss:$20 sps:$4 sm:$0xff]  }
  0xc6   : > { %1795 = vmatmul.mubr.bf16.gmra.mrb[60].mxu1 %v4005_v38  ;;  %1956 = vmatmul.mubr.bf16.gmra.mrb[28].mxu0 %v4006_v39 }
  0xc7   : > { %1802 = vmatprep.mubr.bf16.mxu1 %v4007_v40  ;;  %1963 = vmatprep.mubr.bf16.mxu0 %v4009_v41  ;;  %v4085_v40 = vld [vmem:[%s4204_s28 + $0x350] ss:$20 sps:$4 sm:$0xff]   ;;  %v4086_v41 = vld [vmem:[%s4204_s28 + $0x1c8] ss:$20 sps:$4 sm:$0xff]  }
  0xce   : > { %1803 = vmatmul.mubr.bf16.gmra.mrb[64].mxu1 %v4011_v42  ;;  %1964 = vmatmul.mubr.bf16.gmra.mrb[32].mxu0 %v4012_v43  ;;  %v4087_v43 = vld [vmem:[%s4204_s28 + $0x37c] ss:$20 sps:$4 sm:$0xff]  }
  0xcf   : > { %1810 = vmatprep.mubr.bf16.mxu1 %v4014_v44  ;;  %1971 = vmatprep.mubr.bf16.mxu0 %v4016_v45  ;;  %v4089_v44 = vld [vmem:[%s4204_s28 + $0x1f0] ss:$20 sps:$4 sm:$0xff]  }
  0xd6   : > { %1811 = vmatmul.mubr.bf16.gmra.mrb[68].mxu1 %v4018_v46  ;;  %1972 = vmatmul.mubr.bf16.gmra.mrb[36].mxu0 %v4019_v47 }
  0xd7   : > { %1818 = vmatprep.mubr.bf16.mxu1 %v4020_v48  ;;  %1979 = vmatprep.mubr.bf16.mxu0 %v4022_v49  ;;  %v4090_v48 = vld [vmem:[%s4204_s28 + $0x378] ss:$20 sps:$4 sm:$0xff]  }
  0xd8   : > { %v4091_v49 = vld [vmem:[%s4204_s28 + $0x218] ss:$20 sps:$4 sm:$0xff]  }
  0xde   : > { %1819 = vmatmul.mubr.bf16.gmra.mrb[72].mxu1 %v4024_v50  ;;  %1980 = vmatmul.mubr.bf16.gmra.mrb[40].mxu0 %v4025_v51  ;;  %v4092_v51 = vld [vmem:[%s4204_s28 + $0x3a4] ss:$20 sps:$4 sm:$0xff]  }
  0xdf   : > { %1826 = vmatprep.mubr.bf16.mxu1 %v4026_v52  ;;  %1987 = vmatprep.mubr.bf16.mxu0 %v4028_v53  ;;  %v4094_v52 = vld [vmem:[%s4204_s28 + $0x240] ss:$20 sps:$4 sm:$0xff]  }
  0xe6   : > { %1827 = vmatmul.mubr.bf16.gmra.mrb[76].mxu1 %v4030_v54  ;;  %1988 = vmatmul.mubr.bf16.gmra.mrb[44].mxu0 %v4031_v55 }
  0xe7   : > { %1834 = vmatprep.mubr.bf16.mxu1 %v4032_v56  ;;  %1995 = vmatprep.mubr.bf16.mxu0 %v4034_v57  ;;  %v4095_v56 = vld [vmem:[%s4204_s28 + $0x3a0] ss:$20 sps:$4 sm:$0xff]   ;;  %v4096_v57 = vld [vmem:[%s4204_s28 + $0x268] ss:$20 sps:$4 sm:$0xff]  }
  0xee   : > { %1835 = vmatmul.mubr.bf16.gmra.mrb[80].mxu1 %v4036_v58  ;;  %1996 = vmatmul.mubr.bf16.gmra.mrb[48].mxu0 %v4037_v59  ;;  %v4097_v59 = vld [vmem:[%s4204_s28 + $0x3cc] ss:$20 sps:$4 sm:$0xff]  }
  0xef   : > { %1842 = vmatprep.mubr.bf16.mxu1 %v4039_v60  ;;  %2003 = vmatprep.mubr.bf16.mxu0 %v4041_v61  ;;  %v4099_v60 = vld [vmem:[%s4204_s28 + $0x290] ss:$20 sps:$4 sm:$0xff]  }
  0xf6   : > { %1843 = vmatmul.mubr.bf16.gmra.mrb[84].mxu1 %v4043_v62  ;;  %2004 = vmatmul.mubr.bf16.gmra.mrb[52].mxu0 %v4044_v63 }
  0xf7   : > { %1850 = vmatprep.mubr.bf16.mxu1 %v4045_v0  ;;  %2011 = vmatprep.mubr.bf16.mxu0 %v4047_v2  ;;  %v4100_v0 = vld [vmem:[%s4204_s28 + $0x3c8] ss:$20 sps:$4 sm:$0xff]   ;;  %v4101_v2 = vld [vmem:[%s4204_s28 + $0x2b8] ss:$20 sps:$4 sm:$0xff]  }
  0xfe   : > { %1851 = vmatmul.mubr.bf16.gmra.mrb[88].mxu1 %v4049_v3  ;;  %2012 = vmatmul.mubr.bf16.gmra.mrb[56].mxu0 %v4050_v4  ;;  %v4102_v4 = vld [vmem:[%s4204_s28 + $0x3f4] ss:$20 sps:$4 sm:$0xff]  }
  0xff   : > { %1858 = vmatprep.mubr.bf16.mxu1 %v4051_v5  ;;  %2019 = vmatprep.mubr.bf16.mxu0 %v4053_v6  ;;  %v4104_v5 = vld [vmem:[%s4204_s28 + $0x2e0] ss:$20 sps:$4 sm:$0xff]  }
 0x106   : > { %1859 = vmatmul.mubr.bf16.gmra.mrb[92].mxu1 %v4055_v7  ;;  %2020 = vmatmul.mubr.bf16.gmra.mrb[60].mxu0 %v4056_v8 }
 0x107   : > { %2027 = vmatprep.mubr.bf16.mxu0 %v4057_v9  ;;  %3624 = vmatprep.mubr.msk.bf16.mxu1 %vm1477_vm1, %v4059_v10  ;;  %v4105_v9 = vld [vmem:[%s4204_s28 + $0x3f0] ss:$20 sps:$4 sm:$0xff]   ;;  %v4106_v10 = vld [vmem:[%s4204_s28 + $0x308] ss:$20 sps:$4 sm:$0xff]  }
 0x10e   : > { %2028 = vmatmul.mubr.bf16.gmra.mrb[64].mxu0 %v4060_v11  ;;  %3625 = vmatmul.mubr.msk.bf16.vlgmr.msra.gmra.mrb[96].mxu1 %vm1477_vm1, %v4061_v12  ;;  %v4107_v12 = vld [vmem:[%s4204_s28 + $0x41c] ss:$20 sps:$4 sm:$0xff]  }
 0x10f   : > { %2035 = vmatprep.mubr.bf16.mxu0 %v4062_v13  ;;  %3628 = vmatprep.mubr.msk.bf16.mxu1 %vm1477_vm1, %v4064_v14  ;;  %v4109_v13 = vld [vmem:[%s4204_s28 + $0x330] ss:$20 sps:$4 sm:$0xff]  }
 0x116   : > { %2036 = vmatmul.mubr.bf16.gmra.mrb[68].mxu0 %v4065_v15  ;;  %3629 = vmatmul.mubr.msk.bf16.gmra.mrb[100].mxu1 %vm1477_vm1, %v4066_v16 }
 0x117   : > { %2043 = vmatprep.mubr.bf16.mxu0 %v4067_v17  ;;  %3632 = vmatprep.mubr.msk.bf16.mxu1 %vm1477_vm1, %v4069_v1  ;;  %v4110_v17 = vld [vmem:[%s4204_s28 + $0x418] ss:$20 sps:$4 sm:$0xff]  }
 0x118   : > { %v4111_v1 = vld [vmem:[%s4204_s28 + $0x358] ss:$20 sps:$4 sm:$0xff]  }
 0x11e   : > { %2044 = vmatmul.mubr.bf16.gmra.mrb[72].mxu0 %v4070_v18  ;;  %3633 = vmatmul.mubr.msk.bf16.gmra.mrb[104].mxu1 %vm1477_vm1, %v4071_v19  ;;  %v4112_v19 = vld [vmem:[%s4204_s28 + $0x444] ss:$20 sps:$4 sm:$0xff]  }
 0x11f   : > { %2051 = vmatprep.mubr.bf16.mxu0 %v4072_v20  ;;  %3636 = vmatprep.mubr.msk.bf16.mxu1 %vm1477_vm1, %v4074_v21  ;;  %v4114_v20 = vld [vmem:[%s4204_s28 + $0x380] ss:$20 sps:$4 sm:$0xff]  }
 0x121   : > { %v4462_v22 = vpop.f32.mrb[0].mxu1 }
 0x122   : > { %v1678_v23 = vpop.f32.mrb[1].mxu1 }
 0x123   : > { %v4466_v26 = vpop.f32.mrb[2].mxu1 }
 0x124   : > { %v1681_v29 = vpop.f32.mrb[3].mxu1 }
 0x125   : > { %v4116_v29 = vld [vmem:[%s4204_s28 + $0x3a8] ss:$20 sps:$4 sm:$0xff]  }
 0x126   : > { %2052 = vmatmul.mubr.bf16.gmra.mrb[76].mxu0 %v4075_v24  ;;  %3637 = vmatmul.mubr.msk.bf16.gmra.mrb[108].mxu1 %vm1477_vm1, %v4076_v25 }
 0x127   : > { %2059 = vmatprep.mubr.bf16.mxu0 %v4077_v27  ;;  %3640 = vmatprep.mubr.msk.bf16.mxu1 %vm1477_vm1, %v4079_v28  ;;  %v4115_v28 = vld [vmem:[%s4204_s28 + $0x440] ss:$20 sps:$4 sm:$0xff]  }
 0x129   : > { %v4472_v30 = vpop.f32.mrb[4].mxu1 }
 0x12a   : > { %v1686_v31 = vpop.f32.mrb[5].mxu1 }
 0x12b   : > { %v4476_v34 = vpop.f32.mrb[6].mxu1 }
 0x12c   : > { %v1689_v37 = vpop.f32.mrb[7].mxu1 }
 0x12e   : > { %2060 = vmatmul.mubr.bf16.gmra.mrb[80].mxu0 %v4080_v32  ;;  %3641 = vmatmul.mubr.msk.bf16.gmra.mrb[112].mxu1 %vm1477_vm1, %v4081_v33  ;;  %v4117_v33 = vld [vmem:[%s4204_s28 + $0x46c] ss:$20 sps:$4 sm:$0xff]  }
 0x12f   : > { %2067 = vmatprep.mubr.bf16.mxu0 %v4082_v35  ;;  %3644 = vmatprep.mubr.msk.bf16.mxu1 %vm1477_vm1, %v4084_v36  ;;  %v4119_v35 = vld [vmem:[%s4204_s28 + $0x3d0] ss:$20 sps:$4 sm:$0xff]  }
 0x131   : > { %v4482_v38 = vpop.f32.mrb[8].mxu1 }
 0x132   : > { %v1694_v39 = vpop.f32.mrb[9].mxu1 }
 0x133   : > { %v4486_v42 = vpop.f32.mrb[10].mxu1 }
 0x134   : > { %v1697_v45 = vpop.f32.mrb[11].mxu1 }
 0x135   : > { %v4121_v45 = vld [vmem:[%s4204_s28 + $0x3f8] ss:$20 sps:$4 sm:$0xff]  }
 0x136   : > { %2068 = vmatmul.mubr.bf16.gmra.mrb[84].mxu0 %v4085_v40  ;;  %3645 = vmatmul.mubr.msk.bf16.gmra.mrb[116].mxu1 %vm1477_vm1, %v4086_v41 }
 0x137   : > { %2075 = vmatprep.mubr.bf16.mxu0 %v4087_v43  ;;  %3648 = vmatprep.mubr.msk.bf16.mxu1 %vm1477_vm1, %v4089_v44  ;;  %v4120_v44 = vld [vmem:[%s4204_s28 + $0x468] ss:$20 sps:$4 sm:$0xff]  }
 0x139   : > { %v4492_v46 = vpop.f32.mrb[12].mxu1 }
 0x13a   : > { %v1702_v47 = vpop.f32.mrb[13].mxu1 }
 0x13b   : > { %v4496_v50 = vpop.f32.mrb[14].mxu1 }
 0x13c   : > { %v1705_v53 = vpop.f32.mrb[15].mxu1 }
 0x13e   : > { %2076 = vmatmul.mubr.bf16.gmra.mrb[88].mxu0 %v4090_v48  ;;  %3649 = vmatmul.mubr.msk.bf16.gmra.mrb[120].mxu1 %vm1477_vm1, %v4091_v49  ;;  %v4122_v49 = vld [vmem:[%s4204_s28 + $0x494] ss:$20 sps:$4 sm:$0xff]  }
 0x13f   : > { %2083 = vmatprep.mubr.bf16.mxu0 %v4092_v51  ;;  %3652 = vmatprep.mubr.msk.bf16.mxu1 %vm1477_vm1, %v4094_v52  ;;  %v4124_v51 = vld [vmem:[%s4204_s28 + $0x420] ss:$20 sps:$4 sm:$0xff]  }
 0x141   : > { %v4502_v54 = vpop.f32.mrb[16].mxu1 }
 0x142   : > { %v1710_v55 = vpop.f32.mrb[17].mxu1 }
 0x143   : > { %v4506_v58 = vpop.f32.mrb[18].mxu1 }
 0x144   : > { %v1713_v61 = vpop.f32.mrb[19].mxu1 }
 0x145   : > { %v4126_v61 = vld [vmem:[%s4204_s28 + $0x448] ss:$20 sps:$4 sm:$0xff]  }
 0x146   : > { %2084 = vmatmul.mubr.bf16.gmra.mrb[92].mxu0 %v4095_v56  ;;  %3653 = vmatmul.mubr.msk.bf16.gmra.mrb[124].mxu1 %vm1477_vm1, %v4096_v57 }
 0x147   : > { %2091 = vmatprep.mubr.bf16.mxu0 %v4097_v59  ;;  %3656 = vmatprep.mubr.msk.bf16.mxu1 %vm1477_vm1, %v4099_v60  ;;  %v4125_v60 = vld [vmem:[%s4204_s28 + $0x490] ss:$20 sps:$4 sm:$0xff]  }
 0x149   : > { %v4512_v62 = vpop.f32.mrb[20].mxu1 }
 0x14a   : > { %v1718_v63 = vpop.f32.mrb[21].mxu1 }
 0x14b   : > { %v4516_v3 = vpop.f32.mrb[22].mxu1 }
 0x14c   : > { %v1721_v6 = vpop.f32.mrb[23].mxu1 }
 0x14e   : > { %2092 = vmatmul.mubr.bf16.gmra.mrb[96].mxu0 %v4100_v0  ;;  %3657 = vmatmul.mubr.msk.bf16.gmra.mrb[128].mxu1 %vm1477_vm1, %v4101_v2  ;;  %v4127_v2 = vld [vmem:[%s4204_s28 + $0x4bc] ss:$20 sps:$4 sm:$0xff]  }
 0x14f   : > { %2099 = vmatprep.mubr.bf16.mxu0 %v4102_v4  ;;  %3660 = vmatprep.mubr.msk.bf16.mxu1 %vm1477_vm1, %v4104_v5  ;;  %v4129_v4 = vld [vmem:[%s4204_s28 + $0x470] ss:$20 sps:$4 sm:$0xff]  }
 0x151   : > { %v4522_v7 = vpop.f32.mrb[24].mxu1 }
 0x152   : > { %v1726_v8 = vpop.f32.mrb[25].mxu1 }
 0x153   : > { %v4526_v11 = vpop.f32.mrb[26].mxu1 }
 0x154   : > { %v1729_v14 = vpop.f32.mrb[27].mxu1 }
 0x155   : > { %v4131_v14 = vld [vmem:[%s4204_s28 + $0x498] ss:$20 sps:$4 sm:$0xff]  }
 0x156   : > { %2100 = vmatmul.mubr.bf16.gmra.mrb[100].mxu0 %v4105_v9  ;;  %3661 = vmatmul.mubr.msk.bf16.gmra.mrb[132].mxu1 %vm1477_vm1, %v4106_v10 }
 0x157   : > { %2107 = vmatprep.mubr.bf16.mxu0 %v4107_v12  ;;  %3664 = vmatprep.mubr.msk.bf16.mxu1 %vm1477_vm1, %v4109_v13  ;;  %v4130_v13 = vld [vmem:[%s4204_s28 + $0x4b8] ss:$20 sps:$4 sm:$0xff]  }
 0x159   : > { %v4532_v15 = vpop.f32.mrb[28].mxu1 }
 0x15a   : > { %v1734_v16 = vpop.f32.mrb[29].mxu1 }
 0x15b   : > { %v4536_v18 = vpop.f32.mrb[30].mxu1 }
 0x15c   : > { %v1737_v21 = vpop.f32.mrb[31].mxu1 }
 0x15e   : > { %2108 = vmatmul.mubr.bf16.gmra.mrb[104].mxu0 %v4110_v17  ;;  %3665 = vmatmul.mubr.msk.bf16.gmra.mrb[136].mxu1 %vm1477_vm1, %v4111_v1  ;;  %v4132_v1 = vld [vmem:[%s4204_s28 + $0x4e4] ss:$20 sps:$4 sm:$0xff]  }
 0x15f   : > { %2115 = vmatprep.mubr.bf16.mxu0 %v4112_v19  ;;  %3668 = vmatprep.mubr.msk.bf16.mxu1 %vm1477_vm1, %v4114_v20  ;;  %v4134_v19 = vld [vmem:[%s4204_s28 + $0x4c0] ss:$20 sps:$4 sm:$0xff]  }
 0x161   : > { %v4542_v23 = vpop.f32.mrb[32].mxu1  ;;  %v4544_v24 = vpop.f32.mrb[0].mxu0 }
 0x162   : > { %v1742_v25 = vpop.f32.mrb[33].mxu1  ;;  %v1903_v27 = vpop.f32.mrb[1].mxu0 }
 0x163   : > { %v4548_v31 = vpop.f32.mrb[34].mxu1  ;;  %v4550_v32 = vpop.f32.mrb[2].mxu0 }
 0x164   : > { %v1745_v36 = vpop.f32.mrb[35].mxu1  ;;  %v1906_v37 = vpop.f32.mrb[3].mxu0 }
 0x166   : > { %2116 = vmatmul.mubr.bf16.gmra.mrb[108].mxu0 %v4115_v28  ;;  %3669 = vmatmul.mubr.msk.bf16.gmra.mrb[140].mxu1 %vm1477_vm1, %v4116_v29 }
 0x167   : > { %2123 = vmatprep.mubr.bf16.mxu0 %v4117_v33  ;;  %3672 = vmatprep.mubr.msk.bf16.mxu1 %vm1477_vm1, %v4119_v35  ;;  %v4135_v33 = vld [vmem:[%s4204_s28 + $0x4e0] ss:$20 sps:$4 sm:$0xff]   ;;  %v4136_v35 = vld [vmem:[%s4204_s28 + $0x4e8] ss:$20 sps:$4 sm:$0xff]  }
 0x169   : > { %v4556_v39 = vpop.f32.mrb[36].mxu1  ;;  %v4558_v40 = vpop.f32.mrb[4].mxu0 }
 0x16a   : > { %v1750_v41 = vpop.f32.mrb[37].mxu1  ;;  %v1911_v43 = vpop.f32.mrb[5].mxu0 }
 0x16b   : > { %v4562_v47 = vpop.f32.mrb[38].mxu1  ;;  %v4564_v48 = vpop.f32.mrb[6].mxu0 }
 0x16c   : > { %v1753_v52 = vpop.f32.mrb[39].mxu1  ;;  %v1914_v53 = vpop.f32.mrb[7].mxu0 }
 0x16e   : > { %2124 = vmatmul.mubr.bf16.gmra.mrb[112].mxu0 %v4120_v44  ;;  %3673 = vmatmul.mubr.msk.bf16.gmra.mrb[144].mxu1 %vm1477_vm1, %v4121_v45 }
 0x16f   : > { %2131 = vmatprep.mubr.bf16.mxu0 %v4122_v49  ;;  %3676 = vmatprep.mubr.msk.bf16.mxu1 %vm1477_vm1, %v4124_v51 }
 0x171   : > { %v4570_v55 = vpop.f32.mrb[40].mxu1  ;;  %v4572_v56 = vpop.f32.mrb[8].mxu0 }
 0x172   : > { %v1758_v57 = vpop.f32.mrb[41].mxu1  ;;  %v1919_v59 = vpop.f32.mrb[9].mxu0 }
 0x173   : > { %v4576_v63 = vpop.f32.mrb[42].mxu1  ;;  %v4578_v0 = vpop.f32.mrb[10].mxu0 }
 0x174   : > { %v1761_v5 = vpop.f32.mrb[43].mxu1  ;;  %v1922_v6 = vpop.f32.mrb[11].mxu0 }
 0x176   : > { %2132 = vmatmul.mubr.bf16.gmra.mrb[116].mxu0 %v4125_v60  ;;  %3677 = vmatmul.mubr.msk.bf16.gmra.mrb[148].mxu1 %vm1477_vm1, %v4126_v61 }
 0x177   : > { %2139 = vmatprep.mubr.bf16.mxu0 %v4127_v2  ;;  %3680 = vmatprep.mubr.msk.bf16.mxu1 %vm1477_vm1, %v4129_v4 }
 0x179   : > { %v4584_v8 = vpop.f32.mrb[44].mxu1  ;;  %v4586_v9 = vpop.f32.mrb[12].mxu0 }
 0x17a   : > { %v1766_v10 = vpop.f32.mrb[45].mxu1  ;;  %v1927_v12 = vpop.f32.mrb[13].mxu0 }
 0x17b   : > { %v4590_v16 = vpop.f32.mrb[46].mxu1  ;;  %v4592_v17 = vpop.f32.mrb[14].mxu0 }
 0x17c   : > { %v1769_v20 = vpop.f32.mrb[47].mxu1  ;;  %v1930_v21 = vpop.f32.mrb[15].mxu0 }
 0x17e   : > { %2140 = vmatmul.mubr.bf16.gmra.mrb[120].mxu0 %v4130_v13  ;;  %3681 = vmatmul.mubr.msk.bf16.gmra.mrb[152].mxu1 %vm1477_vm1, %v4131_v14 }
 0x17f   : > { %2147 = vmatprep.mubr.bf16.mxu0 %v4132_v1  ;;  %3684 = vmatprep.mubr.msk.bf16.mxu1 %vm1477_vm1, %v4134_v19 }
 0x181   : > { %v4598_v25 = vpop.f32.mrb[48].mxu1  ;;  %v4600_v27 = vpop.f32.mrb[16].mxu0 }
 0x182   : > { %v1774_v28 = vpop.f32.mrb[49].mxu1  ;;  %v1935_v29 = vpop.f32.mrb[17].mxu0 }
 0x183   : > { %v4604_v36 = vpop.f32.mrb[50].mxu1  ;;  %v4606_v37 = vpop.f32.mrb[18].mxu0 }
 0x184   : > { %v1777_v41 = vpop.f32.mrb[51].mxu1  ;;  %v1938_v43 = vpop.f32.mrb[19].mxu0 }
 0x186   : > { %2148 = vmatmul.mubr.bf16.gmra.mrb[124].mxu0 %v4135_v33  ;;  %3685 = vmatmul.mubr.msk.bf16.gmra.mrb[156].mxu1 %vm1477_vm1, %v4136_v35  ;;  %v4636_v33 = vld [vmem:[%s4972_s2] ss:$0 sm:$0xff] }
 0x187   : > { %v1677_v35 = vadd.f32 %v4636_v33, %v4462_v22  ;;  %v1685_v22 = vadd.f32 %v4636_v33, %v4472_v30  ;;  %v1693_v30 = vadd.f32 %v4636_v33, %v4482_v38  ;;  %v1701_v38 = vadd.f32 %v4636_v33, %v4492_v46 }
 0x188   : > { %v1709_v46 = vadd.f32 %v4636_v33, %v4502_v54  ;;  %v1717_v54 = vadd.f32 %v4636_v33, %v4512_v62  ;;  %v1725_v62 = vadd.f32 %v4636_v33, %v4522_v7  ;;  %v1733_v7 = vadd.f32 %v4636_v33, %v4532_v15 }
 0x189   : > { %v4609_v44 = vpop.f32.mrb[52].mxu1  ;;  %v4611_v45 = vpop.f32.mrb[20].mxu0  ;;  %v1741_v15 = vadd.f32 %v4636_v33, %v4542_v23 }
 0x18a   : > { %v1782_v49 = vpop.f32.mrb[53].mxu1  ;;  %v1943_v51 = vpop.f32.mrb[21].mxu0 }
 0x18b   : > { %v4613_v52 = vpop.f32.mrb[54].mxu1  ;;  %v4615_v53 = vpop.f32.mrb[22].mxu0  ;;  %v1680_v49 = vadd.f32 %v4636_v33, %v4466_v26  ;;  %v1688_v26 = vadd.f32 %v4636_v33, %v4476_v34  ;;  %v1696_v34 = vadd.f32 %v4636_v33, %v4486_v42  ;;  %v1704_v42 = vadd.f32 %v4636_v33, %v4496_v50 }
 0x18c   : > { %v1785_v57 = vpop.f32.mrb[55].mxu1  ;;  %v1946_v59 = vpop.f32.mrb[23].mxu0  ;;  %v1712_v50 = vadd.f32 %v4636_v33, %v4506_v58  ;;  %v1720_v58 = vadd.f32 %v4636_v33, %v4516_v3  ;;  %v1728_v3 = vadd.f32 %v4636_v33, %v4526_v11  ;;  %v1736_v11 = vadd.f32 %v4636_v33, %v4536_v18 }
 0x18d   : > { %v3720_v18 = vadd.f32 %v4636_v33, %v4544_v24 }
 0x191   : > { %v4617_v60 = vpop.f32.mrb[56].mxu1  ;;  %v4619_v61 = vpop.f32.mrb[24].mxu0 }
 0x192   : > { %v1790_v2 = vpop.f32.mrb[57].mxu1  ;;  %v1951_v4 = vpop.f32.mrb[25].mxu0 }
 0x193   : > { %v4621_v5 = vpop.f32.mrb[58].mxu1  ;;  %v4623_v6 = vpop.f32.mrb[26].mxu0 }
 0x194   : > { %v1793_v10 = vpop.f32.mrb[59].mxu1  ;;  %v1954_v12 = vpop.f32.mrb[27].mxu0 }
 0x199   : > { %v4625_v13 = vpop.f32.mrb[60].mxu1  ;;  %v4627_v14 = vpop.f32.mrb[28].mxu0 }
 0x19a   : > { %v1798_v1 = vpop.f32.mrb[61].mxu1  ;;  %v1959_v19 = vpop.f32.mrb[29].mxu0 }
 0x19b   : > { %v4629_v20 = vpop.f32.mrb[62].mxu1  ;;  %v4631_v21 = vpop.f32.mrb[30].mxu0 }
 0x19c   : > { %v1801_v28 = vpop.f32.mrb[63].mxu1  ;;  %v1962_v29 = vpop.f32.mrb[31].mxu0 }
 0x1a1   : > { %v4640_v41 = vpop.f32.mrb[64].mxu1  ;;  %v1965_v43 = vpop.f32.mrb[32].mxu0 }
 0x1a2   : > { %4974 = vst [vmem:[#allocation2_spill] sm:$0xff] %v4640_v41  ;;  %v4644_v51 = vadd.f32 %v1965_v43, %v1677_v35  ;;  %v1806_v57 = vpop.f32.mrb[65].mxu1  ;;  %v1967_v59 = vpop.f32.mrb[33].mxu0 }
 0x1a3   : > { %v4646_v2 = vpop.f32.mrb[66].mxu1  ;;  %v1968_v4 = vpop.f32.mrb[34].mxu0 }
 0x1a4   : > { %4975 = vst [vmem:[#allocation3_spill] sm:$0xff] %v4646_v2  ;;  %v4648_v10 = vadd.f32 %v1968_v4, %v1680_v49  ;;  %v1809_v12 = vpop.f32.mrb[67].mxu1  ;;  %v1970_v1 = vpop.f32.mrb[35].mxu0 }
 0x1a9   : > { %v4652_v19 = vpop.f32.mrb[68].mxu1  ;;  %v1973_v28 = vpop.f32.mrb[36].mxu0 }
 0x1aa   : > { %4976 = vst [vmem:[#allocation4_spill] sm:$0xff] %v4652_v19  ;;  %v4656_v29 = vadd.f32 %v1973_v28, %v1685_v22  ;;  %v1814_v35 = vpop.f32.mrb[69].mxu1  ;;  %v1975_v43 = vpop.f32.mrb[37].mxu0 }
 0x1ab   : > { %v4658_v57 = vpop.f32.mrb[70].mxu1  ;;  %v1976_v59 = vpop.f32.mrb[38].mxu0 }
 0x1ac   : > { %4977 = vst [vmem:[#allocation5_spill] sm:$0xff] %v4658_v57  ;;  %v4660_v49 = vadd.f32 %v1976_v59, %v1688_v26  ;;  %v1817_v4 = vpop.f32.mrb[71].mxu1  ;;  %v1978_v12 = vpop.f32.mrb[39].mxu0 }
 0x1b1   : > { %v4664_v1 = vpop.f32.mrb[72].mxu1  ;;  %v1981_v19 = vpop.f32.mrb[40].mxu0 }
 0x1b2   : > { %4978 = vst [vmem:[#allocation6_spill] sm:$0xff] %v4664_v1  ;;  %v4668_v22 = vadd.f32 %v1981_v19, %v1693_v30  ;;  %v1822_v28 = vpop.f32.mrb[73].mxu1  ;;  %v1983_v35 = vpop.f32.mrb[41].mxu0 }
 0x1b3   : > { %v4670_v43 = vpop.f32.mrb[74].mxu1  ;;  %v1984_v57 = vpop.f32.mrb[42].mxu0 }
 0x1b4   : > { %4979 = vst [vmem:[#allocation7_spill] sm:$0xff] %v4670_v43  ;;  %v4672_v26 = vadd.f32 %v1984_v57, %v1696_v34  ;;  %v1825_v59 = vpop.f32.mrb[75].mxu1  ;;  %v1986_v4 = vpop.f32.mrb[43].mxu0 }
 0x1b9   : > { %v4676_v12 = vpop.f32.mrb[76].mxu1  ;;  %v1989_v1 = vpop.f32.mrb[44].mxu0 }
 0x1ba   : > { %4980 = vst [vmem:[#allocation8_spill] sm:$0xff] %v4676_v12  ;;  %v4680_v19 = vadd.f32 %v1989_v1, %v1701_v38  ;;  %v1830_v30 = vpop.f32.mrb[77].mxu1  ;;  %v1991_v28 = vpop.f32.mrb[45].mxu0 }
 0x1bb   : > { %v4682_v35 = vpop.f32.mrb[78].mxu1  ;;  %v1992_v43 = vpop.f32.mrb[46].mxu0 }
 0x1bc   : > { %4981 = vst [vmem:[#allocation9_spill] sm:$0xff] %v4682_v35  ;;  %v4684_v57 = vadd.f32 %v1992_v43, %v1704_v42  ;;  %v1833_v34 = vpop.f32.mrb[79].mxu1  ;;  %v1994_v59 = vpop.f32.mrb[47].mxu0 }
 0x1c1   : > { %v4688_v4 = vpop.f32.mrb[80].mxu1  ;;  %v1997_v12 = vpop.f32.mrb[48].mxu0 }
 0x1c2   : > { %4982 = vst [vmem:[#allocation10_spill] sm:$0xff] %v4688_v4  ;;  %v4692_v1 = vadd.f32 %v1997_v12, %v1709_v46  ;;  %v1838_v38 = vpop.f32.mrb[81].mxu1  ;;  %v1999_v30 = vpop.f32.mrb[49].mxu0 }
 0x1c3   : > { %v4694_v28 = vpop.f32.mrb[82].mxu1  ;;  %v2000_v35 = vpop.f32.mrb[50].mxu0 }
 0x1c4   : > { %4983 = vst [vmem:[#allocation11_spill] sm:$0xff] %v4694_v28  ;;  %v4696_v43 = vadd.f32 %v2000_v35, %v1712_v50  ;;  %v1841_v42 = vpop.f32.mrb[83].mxu1  ;;  %v2002_v34 = vpop.f32.mrb[51].mxu0 }
 0x1c9   : > { %v4700_v59 = vpop.f32.mrb[84].mxu1  ;;  %v2005_v4 = vpop.f32.mrb[52].mxu0 }
 0x1ca   : > { %4984 = vst [vmem:[#allocation12_spill] sm:$0xff] %v4700_v59  ;;  %v4704_v12 = vadd.f32 %v2005_v4, %v1717_v54  ;;  %v1846_v46 = vpop.f32.mrb[85].mxu1  ;;  %v2007_v38 = vpop.f32.mrb[53].mxu0 }
 0x1cb   : > { %v4706_v30 = vpop.f32.mrb[86].mxu1  ;;  %v2008_v28 = vpop.f32.mrb[54].mxu0 }
 0x1cc   : > { %4985 = vst [vmem:[#allocation13_spill] sm:$0xff] %v4706_v30  ;;  %v4708_v35 = vadd.f32 %v2008_v28, %v1720_v58  ;;  %v1849_v50 = vpop.f32.mrb[87].mxu1  ;;  %v2010_v42 = vpop.f32.mrb[55].mxu0 }
 0x1d1   : > { %v4712_v34 = vpop.f32.mrb[88].mxu1  ;;  %v2013_v59 = vpop.f32.mrb[56].mxu0 }
 0x1d2   : > { %4986 = vst [vmem:[#allocation14_spill] sm:$0xff] %v4712_v34  ;;  %v4716_v4 = vadd.f32 %v2013_v59, %v1725_v62  ;;  %v1854_v54 = vpop.f32.mrb[89].mxu1  ;;  %v2015_v46 = vpop.f32.mrb[57].mxu0 }
 0x1d3   : > { %v4718_v38 = vpop.f32.mrb[90].mxu1  ;;  %v2016_v30 = vpop.f32.mrb[58].mxu0 }
 0x1d4   : > { %4987 = vst [vmem:[#allocation15_spill] sm:$0xff] %v4718_v38  ;;  %v4720_v28 = vadd.f32 %v2016_v30, %v1728_v3  ;;  %v1857_v58 = vpop.f32.mrb[91].mxu1  ;;  %v2018_v50 = vpop.f32.mrb[59].mxu0 }
 0x1d5   : > { %v3722_v50 = vadd.f32 %v4636_v33, %v4558_v40  ;;  %v3721_v40 = vadd.f32 %v4636_v33, %v4550_v32 }
 0x1d6   : > { %4988 = vst [vmem:[#allocation16_spill] sm:$0xff] %v4720_v28 }
 0x1d9   : > { %v4724_v42 = vpop.f32.mrb[92].mxu1  ;;  %v2021_v34 = vpop.f32.mrb[60].mxu0 }
 0x1da   : > { %4989 = vst [vmem:[#allocation17_spill] sm:$0xff] %v4724_v42  ;;  %v4728_v59 = vadd.f32 %v2021_v34, %v1733_v7  ;;  %v1862_v62 = vpop.f32.mrb[93].mxu1  ;;  %v2023_v54 = vpop.f32.mrb[61].mxu0 }
 0x1db   : > { %v4730_v46 = vpop.f32.mrb[94].mxu1  ;;  %v2024_v38 = vpop.f32.mrb[62].mxu0  ;;  %v1744_v62 = vadd.f32 %v4636_v33, %v4548_v31 }
 0x1dc   : > { %4990 = vst [vmem:[#allocation18_spill] sm:$0xff] %v4730_v46  ;;  %v4732_v30 = vadd.f32 %v2024_v38, %v1736_v11  ;;  %v1865_v3 = vpop.f32.mrb[95].mxu1  ;;  %v2026_v58 = vpop.f32.mrb[63].mxu0  ;;  %v3723_v38 = vadd.f32 %v4636_v33, %v4564_v48 }
 0x1e1   : > { %v2029_v34 = vpop.f32.mrb[64].mxu0  ;;  %v3626_v7 = vpop.f32.mrb[96].mxu1 }
 0x1e2   : > { %v4744_v11 = vadd.f32 %v2029_v34, %v1741_v15  ;;  %v2199_v54 = vadd.f32 %v3722_v50, %v3626_v7  ;;  %v2031_v3 = vpop.f32.mrb[65].mxu0  ;;  %v2190_v23 = vpop.f32.mrb[97].mxu1  ;;  %v1749_v34 = vadd.f32 %v4636_v33, %v4556_v39 }
 0x1e3   : > { %v2191_v58 = vadd.f32 %v3720_v18, %v2190_v23  ;;  %v2032_v46 = vpop.f32.mrb[66].mxu0  ;;  %v3627_v24 = vpop.f32.mrb[98].mxu1  ;;  %v1752_v18 = vadd.f32 %v4636_v33, %v4562_v47 }
 0x1e4   : > { %v2511_v42 = vmul.f32 0.01, %v2199_v54  ;;  %v4748_v2 = vadd.f32 %v2032_v46, %v1744_v62  ;;  %v2202_v41 = vadd.f32 %v3723_v38, %v3627_v24  ;;  %v2034_v31 = vpop.f32.mrb[67].mxu0  ;;  %v2193_v28 = vpop.f32.mrb[99].mxu1  ;;  %vm2447_vm2 = vcmp.ge.f32.partialorder %v2199_v54, 0.0 }
 0x1e5   : > { %v2509_v48 = vmul.f32 0.01, %v2191_v58  ;;  %v2194_v15 = vadd.f32 %v3721_v40, %v2193_v28  ;;  %vm2445_vm3 = vcmp.ge.f32.partialorder %v2191_v58, 0.0  ;;  %v3726_v46 = vadd.f32 %v4636_v33, %v4586_v9 }
 0x1e6   : > { %vm2448_vm4 = vcmp.ge.f32.partialorder %v2202_v41, 0.0  ;;  %v2512_v50 = vmul.f32 0.01, %v2202_v41  ;;  %v2575_v7 = vsel %vm2447_vm2, %v2199_v54, %v2511_v42  ;;  %v3724_v62 = vadd.f32 %v4636_v33, %v4572_v56 }
 0x1e7   : > { %vm2446_vm5 = vcmp.ge.f32.partialorder %v2194_v15, 0.0  ;;  %v2510_v32 = vmul.f32 0.01, %v2194_v15  ;;  %v2573_v39 = vsel %vm2445_vm3, %v2191_v58, %v2509_v48  ;;  %v3727_v9 = vadd.f32 %v4636_v33, %v4592_v17 }
 0x1e8   : > { %v2576_v28 = vsel %vm2448_vm4, %v2202_v41, %v2512_v50  ;;  %v3725_v41 = vadd.f32 %v4636_v33, %v4578_v0  ;;  %v1757_v0 = vadd.f32 %v4636_v33, %v4570_v55 }
 0x1e9   : > { %v3391_v38 = vpack.c.bf16 %v2576_v28, %v2575_v7  ;;  %v2574_v3 = vsel %vm2446_vm5, %v2194_v15, %v2510_v32  ;;  %v2037_v23 = vpop.f32.mrb[68].mxu0  ;;  %v3630_v47 = vpop.f32.mrb[100].mxu1 }
 0x1ea   : > { %v3386_v42 = vpack.c.bf16 %v2574_v3, %v2573_v39  ;;  %v4766_v54 = vadd.f32 %v2037_v23, %v1749_v34  ;;  %v2215_v40 = vadd.f32 %v3726_v46, %v3630_v47  ;;  %v2039_v24 = vpop.f32.mrb[69].mxu0  ;;  %v2206_v31 = vpop.f32.mrb[101].mxu1  ;;  %v1760_v39 = vadd.f32 %v4636_v33, %v4576_v63 }
 0x1eb   : > { %3543 = vst [vmem:[%s4760_s16 + $0x8] sm:$0xff] %v3391_v38   ;;  %v2207_v56 = vadd.f32 %v3724_v62, %v2206_v31  ;;  %v2040_v58 = vpop.f32.mrb[70].mxu0  ;;  %v3631_v48 = vpop.f32.mrb[102].mxu1  ;;  %v3728_v23 = vadd.f32 %v4636_v33, %v4600_v27  ;;  %v3731_v31 = vadd.f32 %v4636_v33, %v4615_v53 }
 0x1ec   : > { %3387 = vst [vmem:[%s4760_s16] sm:$0xff] %v3386_v42   ;;  %v2515_v15 = vmul.f32 0.01, %v2215_v40  ;;  %v4772_v50 = vadd.f32 %v2040_v58, %v1752_v18  ;;  %v2218_v32 = vadd.f32 %v3727_v9, %v3631_v48  ;;  %v2042_v7 = vpop.f32.mrb[71].mxu0  ;;  %v2209_v17 = vpop.f32.mrb[103].mxu1  ;;  %vm2451_vm6 = vcmp.ge.f32.partialorder %v2215_v40, 0.0 }
 0x1ed   : > { %v2513_v34 = vmul.f32 0.01, %v2207_v56  ;;  %v2210_v28 = vadd.f32 %v3725_v41, %v2209_v17  ;;  %vm2449_vm7 = vcmp.ge.f32.partialorder %v2207_v56, 0.0  ;;  %v3730_v18 = vadd.f32 %v4636_v33, %v4611_v45 }
 0x1ee   : > { %vm2452_vm8 = vcmp.ge.f32.partialorder %v2218_v32, 0.0  ;;  %v2516_v46 = vmul.f32 0.01, %v2218_v32  ;;  %v2579_v38 = vsel %vm2451_vm6, %v2215_v40, %v2515_v15  ;;  %v3729_v40 = vadd.f32 %v4636_v33, %v4606_v37 }
 0x1ef   : > { %vm2450_vm9 = vcmp.ge.f32.partialorder %v2210_v28, 0.0  ;;  %v2514_v62 = vmul.f32 0.01, %v2210_v28  ;;  %v2577_v47 = vsel %vm2449_vm7, %v2207_v56, %v2513_v34  ;;  %v1765_v37 = vadd.f32 %v4636_v33, %v4584_v8 }
 0x1f0   : > { %v2580_v3 = vsel %vm2452_vm8, %v2218_v32, %v2516_v46 }
 0x1f1   : > { %v3401_v9 = vpack.c.bf16 %v2580_v3, %v2579_v38  ;;  %v2578_v42 = vsel %vm2450_vm9, %v2210_v28, %v2514_v62  ;;  %v2045_v24 = vpop.f32.mrb[72].mxu0  ;;  %v3634_v55 = vpop.f32.mrb[104].mxu1 }
 0x1f2   : > { %v3396_v41 = vpack.c.bf16 %v2578_v42, %v2577_v47  ;;  %v4784_v63 = vadd.f32 %v2045_v24, %v1757_v0  ;;  %v2231_v58 = vadd.f32 %v3730_v18, %v3634_v55  ;;  %v2047_v45 = vpop.f32.mrb[73].mxu0  ;;  %v2222_v48 = vpop.f32.mrb[105].mxu1  ;;  %v1768_v18 = vadd.f32 %v4636_v33, %v4590_v16 }
 0x1f3   : > { %3545 = vst [vmem:[%s4760_s16 + $0x18] sm:$0xff] %v3401_v9   ;;  %v2223_v27 = vadd.f32 %v3728_v23, %v2222_v48  ;;  %v2048_v56 = vpop.f32.mrb[74].mxu0  ;;  %v3635_v15 = vpop.f32.mrb[106].mxu1  ;;  %v3732_v23 = vadd.f32 %v4636_v33, %v4619_v61  ;;  %v3735_v55 = vadd.f32 %v4636_v33, %v4631_v21 }
 0x1f4   : > { %3544 = vst [vmem:[%s4760_s16 + $0x10] sm:$0xff] %v3396_v41   ;;  %v2519_v32 = vmul.f32 0.01, %v2231_v58  ;;  %v4790_v7 = vadd.f32 %v2048_v56, %v1760_v39  ;;  %v2234_v17 = vadd.f32 %v3731_v31, %v3635_v15  ;;  %v2050_v34 = vpop.f32.mrb[75].mxu0  ;;  %v2225_v53 = vpop.f32.mrb[107].mxu1  ;;  %vm2455_vm10 = vcmp.ge.f32.partialorder %v2231_v58, 0.0 }
 0x1f5   : > { %v2517_v28 = vmul.f32 0.01, %v2223_v27  ;;  %v2226_v46 = vadd.f32 %v3729_v40, %v2225_v53  ;;  %vm2453_vm11 = vcmp.ge.f32.partialorder %v2223_v27, 0.0  ;;  %v3734_v39 = vadd.f32 %v4636_v33, %v4627_v14 }
 0x1f6   : > { %vm2456_vm12 = vcmp.ge.f32.partialorder %v2234_v17, 0.0  ;;  %v2520_v0 = vmul.f32 0.01, %v2234_v17  ;;  %v2583_v38 = vsel %vm2455_vm10, %v2231_v58, %v2519_v32  ;;  %v3733_v58 = vadd.f32 %v4636_v33, %v4623_v6 }
 0x1f7   : > { %vm2454_vm13 = vcmp.ge.f32.partialorder %v2226_v46, 0.0  ;;  %v2518_v62 = vmul.f32 0.01, %v2226_v46  ;;  %v2581_v47 = vsel %vm2453_vm11, %v2223_v27, %v2517_v28  ;;  %v1773_v28 = vadd.f32 %v4636_v33, %v4598_v25 }
 0x1f8   : > { %v2584_v3 = vsel %vm2456_vm12, %v2234_v17, %v2520_v0 }
 0x1f9   : > { %v3411_v9 = vpack.c.bf16 %v2584_v3, %v2583_v38  ;;  %v2582_v42 = vsel %vm2454_vm13, %v2226_v46, %v2518_v62  ;;  %v2053_v24 = vpop.f32.mrb[76].mxu0  ;;  %v3638_v8 = vpop.f32.mrb[108].mxu1  ;;  %v1776_v3 = vadd.f32 %v4636_v33, %v4604_v36 }
 0x1fa   : > { %v3406_v31 = vpack.c.bf16 %v2582_v42, %v2581_v47  ;;  %v4802_v16 = vadd.f32 %v2053_v24, %v1765_v37  ;;  %v2247_v41 = vadd.f32 %v3734_v39, %v3638_v8  ;;  %v2055_v14 = vpop.f32.mrb[77].mxu0  ;;  %v2238_v45 = vpop.f32.mrb[109].mxu1 }
 0x1fb   : > { %3547 = vst [vmem:[%s4760_s16 + $0x28] sm:$0xff] %v3411_v9   ;;  %v2239_v61 = vadd.f32 %v3732_v23, %v2238_v45  ;;  %v2056_v48 = vpop.f32.mrb[78].mxu0  ;;  %v3639_v40 = vpop.f32.mrb[110].mxu1 }
 0x1fc   : > { %3546 = vst [vmem:[%s4760_s16 + $0x20] sm:$0xff] %v3406_v31   ;;  %v2523_v27 = vmul.f32 0.01, %v2247_v41  ;;  %v4808_v56 = vadd.f32 %v2056_v48, %v1768_v18  ;;  %v2250_v15 = vadd.f32 %v3735_v55, %v3639_v40  ;;  %v2058_v32 = vpop.f32.mrb[79].mxu0  ;;  %v2241_v21 = vpop.f32.mrb[111].mxu1  ;;  %vm2459_vm14 = vcmp.ge.f32.partialorder %v2247_v41, 0.0 }
 0x1fd   : > { %v2521_v17 = vmul.f32 0.01, %v2239_v61  ;;  %v2242_v34 = vadd.f32 %v3733_v58, %v2241_v21  ;;  %vm2457_vm15 = vcmp.ge.f32.partialorder %v2239_v61, 0.0  ;;  %v1781_v48 = vadd.f32 %v4636_v33, %v4609_v44 }
 0x1fe   : > { %vm2460_vm0 = vcmp.ge.f32.partialorder %v2250_v15, 0.0  ;;  %v2524_v53 = vmul.f32 0.01, %v2250_v15  ;;  %v2587_v46 = vsel %vm2459_vm14, %v2247_v41, %v2523_v27 }
 0x1ff   : > { %vm2458_vm1 = vcmp.ge.f32.partialorder %v2242_v34, 0.0  ;;  %v2522_v6 = vmul.f32 0.01, %v2242_v34  ;;  %v2585_v37 = vsel %vm2457_vm15, %v2239_v61, %v2521_v17 }
 0x200   : > { %v2588_v0 = vsel %vm2460_vm0, %v2250_v15, %v2524_v53 }
 0x201   : > { %v3421_v62 = vpack.c.bf16 %v2588_v0, %v2587_v46  ;;  %v2586_v18 = vsel %vm2458_vm1, %v2242_v34, %v2522_v6  ;;  %v2061_v39 = vpop.f32.mrb[80].mxu0  ;;  %v3642_v38 = vpop.f32.mrb[112].mxu1 }
 0x202   : > { %v3416_v23 = vpack.c.bf16 %v2586_v18, %v2585_v37  ;;  %v4814_v47 = vadd.f32 %v2061_v39, %v1773_v28  ;;  %v2263_v9 = vadd.f32 %v3642_v38, %v4656_v29  ;;  %v2063_v42 = vpop.f32.mrb[81].mxu0  ;;  %v2254_v24 = vpop.f32.mrb[113].mxu1 }
 0x203   : > { %3549 = vst [vmem:[%s4760_s16 + $0x38] sm:$0xff] %v3421_v62   ;;  %v2255_v25 = vadd.f32 %v2254_v24, %v4644_v51  ;;  %v2064_v8 = vpop.f32.mrb[82].mxu0  ;;  %v3643_v55 = vpop.f32.mrb[114].mxu1 }
 0x204   : > { %3548 = vst [vmem:[%s4760_s16 + $0x30] sm:$0xff] %v3416_v23   ;;  %v2527_v31 = vmul.f32 0.01, %v2263_v9  ;;  %v4820_v41 = vadd.f32 %v2064_v8, %v1776_v3  ;;  %v2266_v14 = vadd.f32 %v3643_v55, %v4660_v49  ;;  %v2066_v45 = vpop.f32.mrb[83].mxu0  ;;  %v2257_v36 = vpop.f32.mrb[115].mxu1  ;;  %vm2463_vm2 = vcmp.ge.f32.partialorder %v2263_v9, 0.0 }
 0x205   : > { %v2525_v58 = vmul.f32 0.01, %v2255_v25  ;;  %v2258_v61 = vadd.f32 %v2257_v36, %v4648_v10  ;;  %vm2461_vm3 = vcmp.ge.f32.partialorder %v2255_v25, 0.0  ;;  %v1784_v10 = vadd.f32 %v4636_v33, %v4613_v52 }
 0x206   : > { %vm2464_vm4 = vcmp.ge.f32.partialorder %v2266_v14, 0.0  ;;  %v2528_v29 = vmul.f32 0.01, %v2266_v14  ;;  %v2591_v40 = vsel %vm2463_vm2, %v2263_v9, %v2527_v31  ;;  %v1789_v9 = vadd.f32 %v4636_v33, %v4617_v60 }
 0x207   : > { %vm2462_vm5 = vcmp.ge.f32.partialorder %v2258_v61, 0.0  ;;  %v2526_v51 = vmul.f32 0.01, %v2258_v61  ;;  %v2589_v15 = vsel %vm2461_vm3, %v2255_v25, %v2525_v58 }
 0x208   : > { %v2592_v27 = vsel %vm2464_vm4, %v2266_v14, %v2528_v29 }
 0x209   : > { %v3431_v49 = vpack.c.bf16 %v2592_v27, %v2591_v40  ;;  %v2590_v32 = vsel %vm2462_vm5, %v2258_v61, %v2526_v51  ;;  %v2069_v21 = vpop.f32.mrb[84].mxu0  ;;  %v3646_v17 = vpop.f32.mrb[116].mxu1 }
 0x20a   : > { %v3426_v34 = vpack.c.bf16 %v2590_v32, %v2589_v15  ;;  %v4828_v53 = vadd.f32 %v2069_v21, %v1781_v48  ;;  %v2279_v6 = vadd.f32 %v3646_v17, %v4680_v19  ;;  %v2071_v28 = vpop.f32.mrb[85].mxu0  ;;  %v2270_v46 = vpop.f32.mrb[117].mxu1  ;;  %v1797_v21 = vadd.f32 %v4636_v33, %v4625_v13 }
 0x20b   : > { %3551 = vst [vmem:[%s4760_s16 + $0x48] sm:$0xff] %v3431_v49   ;;  %v2271_v44 = vadd.f32 %v2270_v46, %v4668_v22  ;;  %v2072_v0 = vpop.f32.mrb[86].mxu0  ;;  %v3647_v37 = vpop.f32.mrb[118].mxu1 }
 0x20c   : > { %3550 = vst [vmem:[%s4760_s16 + $0x40] sm:$0xff] %v3426_v34   ;;  %v2531_v62 = vmul.f32 0.01, %v2279_v6  ;;  %v4834_v18 = vadd.f32 %v2072_v0, %v1784_v10  ;;  %v2282_v39 = vadd.f32 %v3647_v37, %v4684_v57  ;;  %v2074_v38 = vpop.f32.mrb[87].mxu0  ;;  %v2273_v52 = vpop.f32.mrb[119].mxu1  ;;  %vm2467_vm6 = vcmp.ge.f32.partialorder %v2279_v6, 0.0 }
 0x20d   : > { %v2529_v3 = vmul.f32 0.01, %v2271_v44  ;;  %v2274_v23 = vadd.f32 %v2273_v52, %v4672_v26  ;;  %vm2465_vm7 = vcmp.ge.f32.partialorder %v2271_v44, 0.0  ;;  %v1792_v26 = vadd.f32 %v4636_v33, %v4621_v5 }
 0x20e   : > { %vm2468_vm8 = vcmp.ge.f32.partialorder %v2282_v39, 0.0  ;;  %v2532_v19 = vmul.f32 0.01, %v2282_v39  ;;  %v2595_v42 = vsel %vm2467_vm6, %v2279_v6, %v2531_v62 }
 0x20f   : > { %vm2466_vm9 = vcmp.ge.f32.partialorder %v2274_v23, 0.0  ;;  %v2530_v22 = vmul.f32 0.01, %v2274_v23  ;;  %v2593_v25 = vsel %vm2465_vm7, %v2271_v44, %v2529_v3 }
 0x210   : > { %v2596_v24 = vsel %vm2468_vm8, %v2282_v39, %v2532_v19 }
 0x211   : > { %v3441_v57 = vpack.c.bf16 %v2596_v24, %v2595_v42  ;;  %v2594_v8 = vsel %vm2466_vm9, %v2274_v23, %v2530_v22  ;;  %v2077_v55 = vpop.f32.mrb[88].mxu0  ;;  %v3650_v31 = vpop.f32.mrb[120].mxu1  ;;  %v4991_v42 = vld [vmem:[#allocation16_spill] sm:$0xff] }
 0x212   : > { %v3436_v14 = vpack.c.bf16 %v2594_v8, %v2593_v25  ;;  %v4842_v45 = vadd.f32 %v2077_v55, %v1789_v9  ;;  %v2295_v36 = vadd.f32 %v3650_v31, %v4704_v12  ;;  %v2079_v58 = vpop.f32.mrb[89].mxu0  ;;  %v2286_v61 = vpop.f32.mrb[121].mxu1  ;;  %v4992_v25 = vld [vmem:[#allocation2_spill] sm:$0xff] }
 0x213   : > { %3553 = vst [vmem:[%s4760_s16 + $0x58] sm:$0xff] %v3441_v57   ;;  %v2287_v60 = vadd.f32 %v2286_v61, %v4692_v1  ;;  %v2080_v29 = vpop.f32.mrb[90].mxu0  ;;  %v3651_v51 = vpop.f32.mrb[122].mxu1  ;;  %v1805_v57 = vadd.f32 %v4636_v33, %v4992_v25  ;;  %v4993_v58 = vld [vmem:[#allocation3_spill] sm:$0xff] }
 0x214   : > { %3552 = vst [vmem:[%s4760_s16 + $0x50] sm:$0xff] %v3436_v14   ;;  %v2535_v48 = vmul.f32 0.01, %v2295_v36  ;;  %v4848_v40 = vadd.f32 %v2080_v29, %v1792_v26  ;;  %v2298_v27 = vadd.f32 %v3651_v51, %v4708_v35  ;;  %v2082_v15 = vpop.f32.mrb[91].mxu0  ;;  %v2289_v5 = vpop.f32.mrb[123].mxu1  ;;  %vm2471_vm10 = vcmp.ge.f32.partialorder %v2295_v36, 0.0 }
 0x215   : > { %v2533_v49 = vmul.f32 0.01, %v2287_v60  ;;  %v2290_v32 = vadd.f32 %v2289_v5, %v4696_v43  ;;  %vm2469_vm11 = vcmp.ge.f32.partialorder %v2287_v60, 0.0  ;;  %v1800_v43 = vadd.f32 %v4636_v33, %v4629_v20 }
 0x216   : > { %vm2472_vm12 = vcmp.ge.f32.partialorder %v2298_v27, 0.0  ;;  %v2536_v12 = vmul.f32 0.01, %v2298_v27  ;;  %v2599_v17 = vsel %vm2471_vm10, %v2295_v36, %v2535_v48  ;;  %v1808_v61 = vadd.f32 %v4636_v33, %v4993_v58 }
 0x217   : > { %vm2470_vm13 = vcmp.ge.f32.partialorder %v2290_v32, 0.0  ;;  %v2534_v1 = vmul.f32 0.01, %v2290_v32  ;;  %v2597_v34 = vsel %vm2469_vm11, %v2287_v60, %v2533_v49 }
 0x218   : > { %v2600_v10 = vsel %vm2472_vm12, %v2298_v27, %v2536_v12 }
 0x219   : > { %v3451_v35 = vpack.c.bf16 %v2600_v10, %v2599_v17  ;;  %v2598_v6 = vsel %vm2470_vm13, %v2290_v32, %v2534_v1  ;;  %v2085_v28 = vpop.f32.mrb[92].mxu0  ;;  %v3654_v46 = vpop.f32.mrb[124].mxu1 }
 0x21a   : > { %v3446_v44 = vpack.c.bf16 %v2598_v6, %v2597_v34  ;;  %v4856_v0 = vadd.f32 %v2085_v28, %v1797_v21  ;;  %v2311_v37 = vadd.f32 %v3654_v46, %v4728_v59  ;;  %v2087_v62 = vpop.f32.mrb[93].mxu0  ;;  %v2302_v39 = vpop.f32.mrb[125].mxu1 }
 0x21b   : > { %3555 = vst [vmem:[%s4760_s16 + $0x68] sm:$0xff] %v3451_v35   ;;  %v2303_v13 = vadd.f32 %v2302_v39, %v4716_v4  ;;  %v2088_v38 = vpop.f32.mrb[94].mxu0  ;;  %v3655_v52 = vpop.f32.mrb[126].mxu1  ;;  %v4994_v35 = vld [vmem:[#allocation4_spill] sm:$0xff]  ;;  %v4995_v39 = vld [vmem:[#allocation5_spill] sm:$0xff] }
 0x21c   : > { %3554 = vst [vmem:[%s4760_s16 + $0x60] sm:$0xff] %v3446_v44   ;;  %v2539_v3 = vmul.f32 0.01, %v2311_v37  ;;  %v4862_v23 = vadd.f32 %v2088_v38, %v1800_v43  ;;  %v2314_v19 = vadd.f32 %v3655_v52, %v4732_v30  ;;  %v2090_v22 = vpop.f32.mrb[95].mxu0  ;;  %v2305_v20 = vpop.f32.mrb[127].mxu1  ;;  %vm2475_vm14 = vcmp.ge.f32.partialorder %v2311_v37, 0.0 }
 0x21d   : > { %v2537_v9 = vmul.f32 0.01, %v2303_v13  ;;  %v2306_v24 = vadd.f32 %v2305_v20, %v4991_v42  ;;  %vm2473_vm15 = vcmp.ge.f32.partialorder %v2303_v13, 0.0  ;;  %v1813_v6 = vadd.f32 %v4636_v33, %v4994_v35 }
 0x21e   : > { %vm2476_vm0 = vcmp.ge.f32.partialorder %v2314_v19, 0.0  ;;  %v2540_v59 = vmul.f32 0.01, %v2314_v19  ;;  %v2603_v8 = vsel %vm2475_vm14, %v2311_v37, %v2539_v3 }
 0x21f   : > { %vm2474_vm1 = vcmp.ge.f32.partialorder %v2306_v24, 0.0  ;;  %v2538_v4 = vmul.f32 0.01, %v2306_v24  ;;  %v2601_v31 = vsel %vm2473_vm15, %v2303_v13, %v2537_v9 }
 0x220   : > { %v2604_v55 = vsel %vm2476_vm0, %v2314_v19, %v2540_v59 }
 0x221   : > { %v3461_v30 = vpack.c.bf16 %v2604_v55, %v2603_v8  ;;  %v2602_v26 = vsel %vm2474_vm1, %v2306_v24, %v2538_v4  ;;  %v2093_v14 = vpop.f32.mrb[96].mxu0  ;;  %v3658_v36 = vpop.f32.mrb[128].mxu1  ;;  %v4996_v55 = vld [vmem:[#allocation6_spill] sm:$0xff] }
 0x222   : > { %v3456_v60 = vpack.c.bf16 %v2602_v26, %v2601_v31  ;;  %v4870_v29 = vadd.f32 %v2093_v14, %v1805_v57  ;;  %v2327_v51 = vadd.f32 %v3658_v36, %v4766_v54  ;;  %v2095_v48 = vpop.f32.mrb[97].mxu0  ;;  %v2318_v27 = vpop.f32.mrb[129].mxu1  ;;  %v1821_v31 = vadd.f32 %v4636_v33, %v4996_v55 }
 0x223   : > { %3557 = vst [vmem:[%s4760_s16 + $0x78] sm:$0xff] %v3461_v30   ;;  %v2319_v15 = vadd.f32 %v2318_v27, %v4744_v11  ;;  %v2096_v5 = vpop.f32.mrb[98].mxu0  ;;  %v3659_v49 = vpop.f32.mrb[130].mxu1 }
 0x224   : > { %3556 = vst [vmem:[%s4760_s16 + $0x70] sm:$0xff] %v3456_v60   ;;  %v2543_v32 = vmul.f32 0.01, %v2327_v51  ;;  %v4876_v12 = vadd.f32 %v2096_v5, %v1808_v61  ;;  %v2330_v1 = vadd.f32 %v3659_v49, %v4772_v50  ;;  %v2098_v21 = vpop.f32.mrb[99].mxu0  ;;  %v2321_v17 = vpop.f32.mrb[131].mxu1  ;;  %vm2479_vm2 = vcmp.ge.f32.partialorder %v2327_v51, 0.0 }
 0x225   : > { %v2541_v10 = vmul.f32 0.01, %v2319_v15  ;;  %v2322_v34 = vadd.f32 %v2321_v17, %v4748_v2  ;;  %vm2477_vm3 = vcmp.ge.f32.partialorder %v2319_v15, 0.0  ;;  %v1816_v2 = vadd.f32 %v4636_v33, %v4995_v39  ;;  %v4997_v60 = vld [vmem:[#allocation7_spill] sm:$0xff]  ;;  %v4999_v39 = vld [vmem:[#allocation9_spill] sm:$0xff] }
 0x226   : > { %vm2480_vm4 = vcmp.ge.f32.partialorder %v2330_v1, 0.0  ;;  %v2544_v54 = vmul.f32 0.01, %v2330_v1  ;;  %v2607_v28 = vsel %vm2479_vm2, %v2327_v51, %v2543_v32 }
 0x227   : > { %vm2478_vm5 = vcmp.ge.f32.partialorder %v2322_v34, 0.0  ;;  %v2542_v11 = vmul.f32 0.01, %v2322_v34  ;;  %v2605_v43 = vsel %vm2477_vm3, %v2319_v15, %v2541_v10 }
 0x228   : > { %v2608_v46 = vsel %vm2480_vm4, %v2330_v1, %v2544_v54 }
 0x229   : > { %v3471_v50 = vpack.c.bf16 %v2608_v46, %v2607_v28  ;;  %v2606_v44 = vsel %vm2478_vm5, %v2322_v34, %v2542_v11  ;;  %v2101_v37 = vpop.f32.mrb[100].mxu0  ;;  %v3662_v62 = vpop.f32.mrb[132].mxu1 }
 0x22a   : > { %v3466_v13 = vpack.c.bf16 %v2606_v44, %v2605_v43  ;;  %v4884_v38 = vadd.f32 %v2101_v37, %v1813_v6  ;;  %v2343_v52 = vadd.f32 %v3662_v62, %v4802_v16  ;;  %v2103_v3 = vpop.f32.mrb[101].mxu0  ;;  %v2334_v19 = vpop.f32.mrb[133].mxu1  ;;  %v4998_v6 = vld [vmem:[#allocation8_spill] sm:$0xff] }
 0x22b   : > { %3559 = vst [vmem:[%s4760_s16 + $0x88] sm:$0xff] %v3471_v50   ;;  %v2335_v22 = vadd.f32 %v2334_v19, %v4784_v63  ;;  %v2104_v20 = vpop.f32.mrb[102].mxu0  ;;  %v3663_v9 = vpop.f32.mrb[134].mxu1  ;;  %v1829_v28 = vadd.f32 %v4636_v33, %v4998_v6 }
 0x22c   : > { %3558 = vst [vmem:[%s4760_s16 + $0x80] sm:$0xff] %v3466_v13   ;;  %v2547_v42 = vmul.f32 0.01, %v2343_v52  ;;  %v4890_v24 = vadd.f32 %v2104_v20, %v1816_v2  ;;  %v2346_v59 = vadd.f32 %v3663_v9, %v4808_v56  ;;  %v2106_v4 = vpop.f32.mrb[103].mxu0  ;;  %v2337_v25 = vpop.f32.mrb[135].mxu1  ;;  %vm2483_vm6 = vcmp.ge.f32.partialorder %v2343_v52, 0.0 }
 0x22d   : > { %v2545_v57 = vmul.f32 0.01, %v2335_v22  ;;  %v2338_v8 = vadd.f32 %v2337_v25, %v4790_v7  ;;  %vm2481_vm7 = vcmp.ge.f32.partialorder %v2335_v22, 0.0  ;;  %v1824_v7 = vadd.f32 %v4636_v33, %v4997_v60 }
 0x22e   : > { %vm2484_vm8 = vcmp.ge.f32.partialorder %v2346_v59, 0.0  ;;  %v2548_v16 = vmul.f32 0.01, %v2346_v59  ;;  %v2611_v30 = vsel %vm2483_vm6, %v2343_v52, %v2547_v42 }
 0x22f   : > { %vm2482_vm9 = vcmp.ge.f32.partialorder %v2338_v8, 0.0  ;;  %v2546_v63 = vmul.f32 0.01, %v2338_v8  ;;  %v2609_v14 = vsel %vm2481_vm7, %v2335_v22, %v2545_v57 }
 0x230   : > { %v2612_v26 = vsel %vm2484_vm8, %v2346_v59, %v2548_v16 }
 0x231   : > { %v3481_v56 = vpack.c.bf16 %v2612_v26, %v2611_v30  ;;  %v2610_v36 = vsel %vm2482_vm9, %v2338_v8, %v2546_v63  ;;  %v2109_v58 = vpop.f32.mrb[104].mxu0  ;;  %v3666_v61 = vpop.f32.mrb[136].mxu1  ;;  %v5000_v63 = vld [vmem:[#allocation10_spill] sm:$0xff] }
 0x232   : > { %v3476_v51 = vpack.c.bf16 %v2610_v36, %v2609_v14  ;;  %v4898_v48 = vadd.f32 %v2109_v58, %v1821_v31  ;;  %v2359_v27 = vadd.f32 %v3666_v61, %v4828_v53  ;;  %v2111_v15 = vpop.f32.mrb[105].mxu0  ;;  %v2350_v5 = vpop.f32.mrb[137].mxu1  ;;  %v1837_v55 = vadd.f32 %v4636_v33, %v5000_v63  ;;  %v5001_v58 = vld [vmem:[#allocation11_spill] sm:$0xff] }
 0x233   : > { %3561 = vst [vmem:[%s4760_s16 + $0x98] sm:$0xff] %v3481_v56   ;;  %v2351_v49 = vadd.f32 %v2350_v5, %v4814_v47  ;;  %v2112_v32 = vpop.f32.mrb[106].mxu0  ;;  %v3667_v1 = vpop.f32.mrb[138].mxu1 }
 0x234   : > { %3560 = vst [vmem:[%s4760_s16 + $0x90] sm:$0xff] %v3476_v51   ;;  %v2551_v21 = vmul.f32 0.01, %v2359_v27  ;;  %v4904_v17 = vadd.f32 %v2112_v32, %v1824_v7  ;;  %v2362_v10 = vadd.f32 %v3667_v1, %v4834_v18  ;;  %v2114_v34 = vpop.f32.mrb[107].mxu0  ;;  %v2353_v54 = vpop.f32.mrb[139].mxu1  ;;  %vm2487_vm10 = vcmp.ge.f32.partialorder %v2359_v27, 0.0 }
 0x235   : > { %v2549_v11 = vmul.f32 0.01, %v2351_v49  ;;  %v2354_v35 = vadd.f32 %v2353_v54, %v4820_v41  ;;  %vm2485_vm11 = vcmp.ge.f32.partialorder %v2351_v49, 0.0  ;;  %v1832_v41 = vadd.f32 %v4636_v33, %v4999_v39 }
 0x236   : > { %vm2488_vm12 = vcmp.ge.f32.partialorder %v2362_v10, 0.0  ;;  %v2552_v53 = vmul.f32 0.01, %v2362_v10  ;;  %v2615_v46 = vsel %vm2487_vm10, %v2359_v27, %v2551_v21 }
 0x237   : > { %vm2486_vm13 = vcmp.ge.f32.partialorder %v2354_v35, 0.0  ;;  %v2550_v47 = vmul.f32 0.01, %v2354_v35  ;;  %v2613_v50 = vsel %vm2485_vm11, %v2351_v49, %v2549_v11 }
 0x238   : > { %v2616_v43 = vsel %vm2488_vm12, %v2362_v10, %v2552_v53 }
 0x239   : > { %v3491_v18 = vpack.c.bf16 %v2616_v43, %v2615_v46  ;;  %v2614_v44 = vsel %vm2486_vm13, %v2354_v35, %v2550_v47  ;;  %v2117_v37 = vpop.f32.mrb[108].mxu0  ;;  %v3670_v62 = vpop.f32.mrb[140].mxu1  ;;  %v5002_v35 = vld [vmem:[#allocation12_spill] sm:$0xff] }
 0x23a   : > { %v3486_v2 = vpack.c.bf16 %v2614_v44, %v2613_v50  ;;  %v4912_v13 = vadd.f32 %v2117_v37, %v1829_v28  ;;  %v2375_v52 = vadd.f32 %v3670_v62, %v4856_v0  ;;  %v2119_v3 = vpop.f32.mrb[109].mxu0  ;;  %v2366_v19 = vpop.f32.mrb[141].mxu1  ;;  %v5003_v50 = vld [vmem:[#allocation13_spill] sm:$0xff] }
 0x23b   : > { %3563 = vst [vmem:[%s4760_s16 + $0xa8] sm:$0xff] %v3491_v18   ;;  %v2367_v22 = vadd.f32 %v2366_v19, %v4842_v45  ;;  %v2120_v20 = vpop.f32.mrb[110].mxu0  ;;  %v3671_v9 = vpop.f32.mrb[142].mxu1 }
 0x23c   : > { %3562 = vst [vmem:[%s4760_s16 + $0xa0] sm:$0xff] %v3486_v2   ;;  %v2555_v42 = vmul.f32 0.01, %v2375_v52  ;;  %v4918_v59 = vadd.f32 %v2120_v20, %v1832_v41  ;;  %v2378_v4 = vadd.f32 %v3671_v9, %v4862_v23  ;;  %v2122_v25 = vpop.f32.mrb[111].mxu0  ;;  %v2369_v57 = vpop.f32.mrb[143].mxu1  ;;  %vm2491_vm14 = vcmp.ge.f32.partialorder %v2375_v52, 0.0 }
 0x23d   : > { %v2553_v8 = vmul.f32 0.01, %v2367_v22  ;;  %v2370_v16 = vadd.f32 %v2369_v57, %v4848_v40  ;;  %vm2489_vm15 = vcmp.ge.f32.partialorder %v2367_v22, 0.0  ;;  %v1840_v40 = vadd.f32 %v4636_v33, %v5001_v58 }
 0x23e   : > { %vm2492_vm0 = vcmp.ge.f32.partialorder %v2378_v4, 0.0  ;;  %v2556_v0 = vmul.f32 0.01, %v2378_v4  ;;  %v2619_v31 = vsel %vm2491_vm14, %v2375_v52, %v2555_v42 }
 0x23f   : > { %vm2490_vm1 = vcmp.ge.f32.partialorder %v2370_v16, 0.0  ;;  %v2554_v45 = vmul.f32 0.01, %v2370_v16  ;;  %v2617_v26 = vsel %vm2489_vm15, %v2367_v22, %v2553_v8 }
 0x240   : > { %v2620_v30 = vsel %vm2492_vm0, %v2378_v4, %v2556_v0 }
 0x241   : > { %v3501_v23 = vpack.c.bf16 %v2620_v30, %v2619_v31  ;;  %v2618_v14 = vsel %vm2490_vm1, %v2370_v16, %v2554_v45  ;;  %v2125_v56 = vpop.f32.mrb[112].mxu0  ;;  %v3674_v36 = vpop.f32.mrb[144].mxu1  ;;  %v5005_v30 = vld [vmem:[#allocation15_spill] sm:$0xff] }
 0x242   : > { %v3496_v61 = vpack.c.bf16 %v2618_v14, %v2617_v26  ;;  %v4926_v60 = vadd.f32 %v2125_v56, %v1837_v55  ;;  %v2391_v7 = vadd.f32 %v3674_v36, %v4884_v38  ;;  %v2127_v51 = vpop.f32.mrb[113].mxu0  ;;  %v2382_v27 = vpop.f32.mrb[145].mxu1 }
 0x243   : > { %3565 = vst [vmem:[%s4760_s16 + $0xb8] sm:$0xff] %v3501_v23   ;;  %v2383_v15 = vadd.f32 %v2382_v27, %v4870_v29  ;;  %v2128_v5 = vpop.f32.mrb[114].mxu0  ;;  %v3675_v49 = vpop.f32.mrb[146].mxu1  ;;  %v4939_v29 = vld [vmem:[%s4972_s2] ss:$0 sm:$0xff] }
 0x244   : > { %3564 = vst [vmem:[%s4760_s16 + $0xb0] sm:$0xff] %v3496_v61   ;;  %v2559_v32 = vmul.f32 0.01, %v2391_v7  ;;  %v4932_v1 = vadd.f32 %v2128_v5, %v1840_v40  ;;  %v2394_v21 = vadd.f32 %v3675_v49, %v4890_v24  ;;  %v2130_v10 = vpop.f32.mrb[115].mxu0  ;;  %v2385_v33 = vpop.f32.mrb[147].mxu1  ;;  %vm2495_vm2 = vcmp.ge.f32.partialorder %v2391_v7, 0.0 }
 0x245   : > { %v2557_v34 = vmul.f32 0.01, %v2383_v15  ;;  %v2386_v54 = vadd.f32 %v2385_v33, %v4876_v12  ;;  %vm2493_vm3 = vcmp.ge.f32.partialorder %v2383_v15, 0.0  ;;  %v1845_v24 = vadd.f32 %v4939_v29, %v5002_v35  ;;  %v5006_v33 = vld [vmem:[#allocation17_spill] sm:$0xff] }
 0x246   : > { %vm2496_vm4 = vcmp.ge.f32.partialorder %v2394_v21, 0.0  ;;  %v2560_v38 = vmul.f32 0.01, %v2394_v21  ;;  %v2623_v53 = vsel %vm2495_vm2, %v2391_v7, %v2559_v32  ;;  %v1848_v18 = vadd.f32 %v4939_v29, %v5003_v50 }
 0x247   : > { %vm2494_vm5 = vcmp.ge.f32.partialorder %v2386_v54, 0.0  ;;  %v2558_v11 = vmul.f32 0.01, %v2386_v54  ;;  %v2621_v6 = vsel %vm2493_vm3, %v2383_v15, %v2557_v34 }
 0x248   : > { %v2624_v47 = vsel %vm2496_vm4, %v2394_v21, %v2560_v38 }
 0x249   : > { %v3511_v28 = vpack.c.bf16 %v2624_v47, %v2623_v53  ;;  %v2622_v12 = vsel %vm2494_vm5, %v2386_v54, %v2558_v11  ;;  %v2133_v46 = vpop.f32.mrb[116].mxu0  ;;  %v3678_v43 = vpop.f32.mrb[148].mxu1  ;;  %v5007_v47 = vld [vmem:[#allocation18_spill] sm:$0xff] }
 0x24a   : > { %v3506_v44 = vpack.c.bf16 %v2622_v12, %v2621_v6  ;;  %v2134_v37 = vadd.f32 %v2133_v46, %v1845_v24  ;;  %v2407_v62 = vadd.f32 %v3678_v43, %v4912_v13  ;;  %v2135_v39 = vpop.f32.mrb[117].mxu0  ;;  %v2398_v41 = vpop.f32.mrb[149].mxu1 }
 0x24b   : > { %3567 = vst [vmem:[%s4760_s16 + $0xc8] sm:$0xff] %v3511_v28   ;;  %v2399_v2 = vadd.f32 %v2398_v41, %v4898_v48  ;;  %v2136_v52 = vpop.f32.mrb[118].mxu0  ;;  %v3679_v3 = vpop.f32.mrb[150].mxu1  ;;  %v5004_v48 = vld [vmem:[#allocation14_spill] sm:$0xff] }
 0x24c   : > { %3566 = vst [vmem:[%s4760_s16 + $0xc0] sm:$0xff] %v3506_v44   ;;  %v2563_v19 = vmul.f32 0.01, %v2407_v62  ;;  %v2137_v22 = vadd.f32 %v2136_v52, %v1848_v18  ;;  %v2410_v20 = vadd.f32 %v3679_v3, %v4918_v59  ;;  %v2138_v9 = vpop.f32.mrb[119].mxu0  ;;  %v2401_v42 = vpop.f32.mrb[151].mxu1  ;;  %vm2499_vm6 = vcmp.ge.f32.partialorder %v2407_v62, 0.0 }
 0x24d   : > { %v2561_v4 = vmul.f32 0.01, %v2399_v2  ;;  %v2402_v25 = vadd.f32 %v2401_v42, %v4904_v17  ;;  %vm2497_vm7 = vcmp.ge.f32.partialorder %v2399_v2, 0.0  ;;  %v1853_v8 = vadd.f32 %v4939_v29, %v5004_v48 }
 0x24e   : > { %vm2500_vm8 = vcmp.ge.f32.partialorder %v2410_v20, 0.0  ;;  %v2564_v13 = vmul.f32 0.01, %v2410_v20  ;;  %v2627_v16 = vsel %vm2499_vm6, %v2407_v62, %v2563_v19  ;;  %v1856_v17 = vadd.f32 %v4939_v29, %v5005_v30 }
 0x24f   : > { %vm2498_vm9 = vcmp.ge.f32.partialorder %v2402_v25, 0.0  ;;  %v2562_v57 = vmul.f32 0.01, %v2402_v25  ;;  %v2625_v45 = vsel %vm2497_vm7, %v2399_v2, %v2561_v4 }
 0x250   : > { %v2628_v0 = vsel %vm2500_vm8, %v2410_v20, %v2564_v13 }
 0x251   : > { %v3521_v59 = vpack.c.bf16 %v2628_v0, %v2627_v16  ;;  %v2626_v63 = vsel %vm2498_vm9, %v2402_v25, %v2562_v57  ;;  %v2141_v55 = vpop.f32.mrb[120].mxu0  ;;  %v3682_v31 = vpop.f32.mrb[152].mxu1 }
 0x252   : > { %v3516_v26 = vpack.c.bf16 %v2626_v63, %v2625_v45  ;;  %v2142_v23 = vadd.f32 %v2141_v55, %v1853_v8  ;;  %v2423_v14 = vadd.f32 %v3682_v31, %v2134_v37  ;;  %v2143_v56 = vpop.f32.mrb[121].mxu0  ;;  %v2414_v36 = vpop.f32.mrb[153].mxu1 }
 0x253   : > { %3569 = vst [vmem:[%s4760_s16 + $0xd8] sm:$0xff] %v3521_v59   ;;  %v2415_v58 = vadd.f32 %v2414_v36, %v4926_v60  ;;  %v2144_v40 = vpop.f32.mrb[122].mxu0  ;;  %v3683_v61 = vpop.f32.mrb[154].mxu1  ;;  %v1861_v60 = vadd.f32 %v4939_v29, %v5006_v33 }
 0x254   : > { %3568 = vst [vmem:[%s4760_s16 + $0xd0] sm:$0xff] %v3516_v26   ;;  %v2567_v7 = vmul.f32 0.01, %v2423_v14  ;;  %v2145_v51 = vadd.f32 %v2144_v40, %v1856_v17  ;;  %v2426_v27 = vadd.f32 %v3683_v61, %v2137_v22  ;;  %v2146_v15 = vpop.f32.mrb[123].mxu0  ;;  %v2417_v5 = vpop.f32.mrb[155].mxu1  ;;  %vm2503_vm10 = vcmp.ge.f32.partialorder %v2423_v14, 0.0 }
 0x255   : > { %v2565_v49 = vmul.f32 0.01, %v2415_v58  ;;  %v2418_v32 = vadd.f32 %v2417_v5, %v4932_v1  ;;  %vm2501_vm11 = vcmp.ge.f32.partialorder %v2415_v58, 0.0  ;;  %v1864_v1 = vadd.f32 %v4939_v29, %v5007_v47 }
 0x256   : > { %vm2504_vm12 = vcmp.ge.f32.partialorder %v2426_v27, 0.0  ;;  %v2568_v21 = vmul.f32 0.01, %v2426_v27  ;;  %v2631_v34 = vsel %vm2503_vm10, %v2423_v14, %v2567_v7 }
 0x257   : > { %vm2502_vm13 = vcmp.ge.f32.partialorder %v2418_v32, 0.0  ;;  %v2566_v10 = vmul.f32 0.01, %v2418_v32  ;;  %v2629_v38 = vsel %vm2501_vm11, %v2415_v58, %v2565_v49 }
 0x258   : > { %v2632_v54 = vsel %vm2504_vm12, %v2426_v27, %v2568_v21 }
 0x259   : > { %v3531_v11 = vpack.c.bf16 %v2632_v54, %v2631_v34  ;;  %v2630_v35 = vsel %vm2502_vm13, %v2418_v32, %v2566_v10  ;;  %v2149_v24 = vpop.f32.mrb[124].mxu0  ;;  %v3686_v53 = vpop.f32.mrb[156].mxu1 }
 0x25a   : > { %v3526_v6 = vpack.c.bf16 %v2630_v35, %v2629_v38  ;;  %v2150_v28 = vadd.f32 %v2149_v24, %v1861_v60  ;;  %v2151_v12 = vpop.f32.mrb[125].mxu0  ;;  %v2430_v46 = vpop.f32.mrb[157].mxu1 }
 0x25b   : > { %3571 = vst [vmem:[%s4760_s16 + $0xe8] sm:$0xff] %v3531_v11   ;;  %v2431_v43 = vadd.f32 %v2430_v46, %v2142_v23  ;;  %v2152_v50 = vpop.f32.mrb[126].mxu0  ;;  %v3687_v18 = vpop.f32.mrb[158].mxu1 }
 0x25c   : > { %3570 = vst [vmem:[%s4760_s16 + $0xe0] sm:$0xff] %v3526_v6   ;;  %v2439_v44 = vadd.f32 %v3686_v53, %v2150_v28  ;;  %v2153_v37 = vadd.f32 %v2152_v50, %v1864_v1  ;;  %v2154_v62 = vpop.f32.mrb[127].mxu0  ;;  %v2433_v39 = vpop.f32.mrb[159].mxu1 }
 0x25d   : > { %v2569_v41 = vmul.f32 0.01, %v2431_v43  ;;  %v2434_v2 = vadd.f32 %v2433_v39, %v2145_v51  ;;  %vm2505_vm14 = vcmp.ge.f32.partialorder %v2431_v43, 0.0 }
 0x25e   : > { %v2571_v52 = vmul.f32 0.01, %v2439_v44  ;;  %v2442_v29 = vadd.f32 %v3687_v18, %v2153_v37  ;;  %vm2507_vm15 = vcmp.ge.f32.partialorder %v2439_v44, 0.0 }
 0x25f   : > { %vm2506_vm0 = vcmp.ge.f32.partialorder %v2434_v2, 0.0  ;;  %v2570_v3 = vmul.f32 0.01, %v2434_v2  ;;  %v2633_v22 = vsel %vm2505_vm14, %v2431_v43, %v2569_v41 }
 0x260   : > { %vm2508_vm1 = vcmp.ge.f32.partialorder %v2442_v29, 0.0  ;;  %v2572_v19 = vmul.f32 0.01, %v2442_v29  ;;  %v2635_v9 = vsel %vm2507_vm15, %v2439_v44, %v2571_v52 }
 0x261   : > { %v2634_v20 = vsel %vm2506_vm0, %v2434_v2, %v2570_v3 }
 0x262   : > { %v2636_v42 = vsel %vm2508_vm1, %v2442_v29, %v2572_v19  ;;  %v3536_v4 = vpack.c.bf16 %v2634_v20, %v2633_v22 }
 0x263   : > { %v3541_v25 = vpack.c.bf16 %v2636_v42, %v2635_v9 }
 0x264   : > { %3572 = vst [vmem:[%s4760_s16 + $0xf0] sm:$0xff] %v3536_v4  }
 0x265   : > { %3573 = vst [vmem:[%s4760_s16 + $0xf8] sm:$0xff] %v3541_v25  }
 0x266 PF: > { %s13_s12 = sadd.s32 1, %s4144_s12  }
 0x267   : > { %p10_p4 = scmp.ge.s32.totalorder %s13_s12, 6  }
 0x269   :  { %12 = sbr.rel (!%p10_p4) target bundleno = 1 (0x1), region = 62 }

// kernel: pilotnet_forward.8
= control target key start
LH: loop header
LB: loop body
LE: loop exit
PB: predicated region body
PF: predicated region fallthrough
CT: control target
= control target key end

     0   :  { %v2689_v0 = vmov 0   ;;  %vm882_vm0 = vcmask 392192   ;;  %s3326_s1 = inlined_call_operand.vmem [shape: bf16[432,128], index: 1, kind: input, shape index: {}]   ;;  %s3327_s0 = inlined_call_operand.vmem [shape: bf16[448,432], index: 0, kind: input, shape index: {}]   ;;  %s3328_s2 = inlined_call_operand.vmem [shape: f32[1,128], index: 2, kind: input, shape index: {}]   ;;  %s3329_s3 = inlined_call_operand.vmem [shape: bf16[448,128], index: 3, kind: output, shape index: {}]  }
   0x1   :  { %967 = vmatprep.subr.bf16.mxu1 %v2689_v0  ;;  %v2493_v1 = vld [vmem:[%s3326_s1] sm:$0xff]   ;;  %1224 = vmatprep.subr.bf16.mxu0 %v2689_v0  ;;  %v2494_v2 = vld [vmem:[%s3326_s1 + $0x8] sm:$0xff]   ;;  %v2495_v4 = vld [vmem:[%s3326_s1 + $0x10] sm:$0xff]  }
   0x2   :  { %968 = vmatpush1.bf16.msra.mxu1 %v2493_v1  ;;  %v2498_v3 = vld [vmem:[%s3326_s1 + $0x80] sm:$0xff]   ;;  %v2500_v5 = vld [vmem:[%s3326_s1 + $0x88] sm:$0xff]   ;;  %v2496_v6 = vld [vmem:[%s3326_s1 + $0x18] sm:$0xff]  }
   0x3   :  { %969 = vmatprep.subr.bf16.mxu1 %v2689_v0  ;;  %1225 = vmatpush1.bf16.msra.mxu0 %v2498_v3  ;;  %v2502_v7 = vld [vmem:[%s3326_s1 + $0x90] sm:$0xff]   ;;  %v2497_v8 = vld [vmem:[%s3326_s1 + $0x20] sm:$0xff]   ;;  %v2504_v9 = vld [vmem:[%s3326_s1 + $0x98] sm:$0xff]  }
   0x4   :  { %1226 = vmatprep.subr.bf16.mxu0 %v2689_v0  ;;  %v2499_v10 = vld [vmem:[%s3326_s1 + $0x28] sm:$0xff]   ;;  %v2506_v11 = vld [vmem:[%s3326_s1 + $0xa0] sm:$0xff]   ;;  %v2501_v12 = vld [vmem:[%s3326_s1 + $0x30] sm:$0xff]  }
   0x5   :  { %v2508_v13 = vld [vmem:[%s3326_s1 + $0xa8] sm:$0xff]   ;;  %v2503_v14 = vld [vmem:[%s3326_s1 + $0x38] sm:$0xff]   ;;  %v2510_v15 = vld [vmem:[%s3326_s1 + $0xb0] sm:$0xff]  }
   0x6   :  { %970 = vmatpush1.bf16.msra.mxu1 %v2494_v2  ;;  %v2522_v16 = vld [vmem:[%s3327_s0 + $0xc] ss:$16 sps:$4 sm:$0xff]   ;;  %v2525_v17 = vld [vmem:[%s3327_s0 + $0x4] ss:$16 sps:$4 sm:$0xff]   ;;  %v2520_v27 = vld [vmem:[%s3327_s0 + $0x8] ss:$16 sps:$4 sm:$0xff]  }
   0x7   :  { %971 = vmatprep.subr.bf16.mxu1 %v2689_v0  ;;  %1227 = vmatpush1.bf16.msra.mxu0 %v2500_v5  ;;  %v2505_v18 = vld [vmem:[%s3326_s1 + $0x40] sm:$0xff]   ;;  %v2512_v19 = vld [vmem:[%s3326_s1 + $0xb8] sm:$0xff]   ;;  %v2507_v20 = vld [vmem:[%s3326_s1 + $0x48] sm:$0xff]  }
   0x8   :  { %1228 = vmatprep.subr.bf16.mxu0 %v2689_v0  ;;  %2073 = vmatprep.mubr.msk.bf16.mxu0 %vm882_vm0, %v2522_v16  ;;  %v2514_v21 = vld [vmem:[%s3326_s1 + $0xc0] sm:$0xff]   ;;  %v2509_v22 = vld [vmem:[%s3326_s1 + $0x50] sm:$0xff]   ;;  %v2516_v23 = vld [vmem:[%s3326_s1 + $0xc8] sm:$0xff]  }
   0x9   :  { %999 = vmatprep.mubr.bf16.mxu1 %v2525_v17  ;;  %v2511_v24 = vld [vmem:[%s3326_s1 + $0x58] sm:$0xff]   ;;  %v2518_v25 = vld [vmem:[%s3326_s1 + $0xd0] sm:$0xff]   ;;  %v2513_v26 = vld [vmem:[%s3326_s1 + $0x60] sm:$0xff]  }
   0xa   :  { %972 = vmatpush1.bf16.msra.mxu1 %v2495_v4  ;;  %v2526_v28 = vld [vmem:[%s3327_s0 + $0x2c] ss:$16 sps:$4 sm:$0xff]   ;;  %v2517_v30 = vld [vmem:[%s3326_s1 + $0x70] sm:$0xff]   ;;  %v2530_v31 = vld [vmem:[%s3327_s0 + $0x28] ss:$16 sps:$4 sm:$0xff]  }
   0xb   :  { %973 = vmatprep.subr.bf16.mxu1 %v2689_v0  ;;  %1229 = vmatpush1.bf16.msra.mxu0 %v2502_v7  ;;  %v2515_v29 = vld [vmem:[%s3326_s1 + $0x68] sm:$0xff]   ;;  %v2519_v33 = vld [vmem:[%s3326_s1 + $0x78] sm:$0xff]   ;;  %v2523_v34 = vld [vmem:[%s3327_s0] ss:$16 sps:$4 sm:$0xff]  }
   0xc   :  { %1230 = vmatprep.subr.bf16.mxu0 %v2689_v0  ;;  %v2532_v32 = vld [vmem:[%s3327_s0 + $0x4c] ss:$16 sps:$4 sm:$0xff]   ;;  %v2528_v35 = vld [vmem:[%s3327_s0 + $0x24] ss:$16 sps:$4 sm:$0xff]   ;;  %v2536_v36 = vld [vmem:[%s3327_s0 + $0x48] ss:$16 sps:$4 sm:$0xff]  }
   0xd   :  { %v2538_v37 = vld [vmem:[%s3327_s0 + $0x6c] ss:$16 sps:$4 sm:$0xff]   ;;  %v2531_v38 = vld [vmem:[%s3327_s0 + $0x20] ss:$16 sps:$4 sm:$0xff]   ;;  %v2534_v39 = vld [vmem:[%s3327_s0 + $0x44] ss:$16 sps:$4 sm:$0xff]  }
   0xe   :  { %974 = vmatpush1.bf16.msra.mxu1 %v2496_v6  ;;  %v2542_v40 = vld [vmem:[%s3327_s0 + $0x68] ss:$16 sps:$4 sm:$0xff]   ;;  %v2544_v41 = vld [vmem:[%s3327_s0 + $0x8c] ss:$16 sps:$4 sm:$0xff]   ;;  %v2537_v42 = vld [vmem:[%s3327_s0 + $0x40] ss:$16 sps:$4 sm:$0xff]  }
   0xf   :  { %975 = vmatprep.subr.bf16.mxu1 %v2689_v0  ;;  %1231 = vmatpush1.bf16.msra.mxu0 %v2504_v9  ;;  %v2540_v43 = vld [vmem:[%s3327_s0 + $0x64] ss:$16 sps:$4 sm:$0xff]   ;;  %v2548_v44 = vld [vmem:[%s3327_s0 + $0x88] ss:$16 sps:$4 sm:$0xff]   ;;  %v2550_v45 = vld [vmem:[%s3327_s0 + $0xac] ss:$16 sps:$4 sm:$0xff]  }
  0x10   :  { %1232 = vmatprep.subr.bf16.mxu0 %v2689_v0  ;;  %v2543_v46 = vld [vmem:[%s3327_s0 + $0x60] ss:$16 sps:$4 sm:$0xff]   ;;  %v2546_v47 = vld [vmem:[%s3327_s0 + $0x84] ss:$16 sps:$4 sm:$0xff]   ;;  %v2554_v48 = vld [vmem:[%s3327_s0 + $0xa8] ss:$16 sps:$4 sm:$0xff]  }
  0x11   :  { %v2556_v49 = vld [vmem:[%s3327_s0 + $0xcc] ss:$16 sps:$4 sm:$0xff]   ;;  %v2549_v50 = vld [vmem:[%s3327_s0 + $0x80] ss:$16 sps:$4 sm:$0xff]   ;;  %v2552_v51 = vld [vmem:[%s3327_s0 + $0xa4] ss:$16 sps:$4 sm:$0xff]  }
  0x12   :  { %976 = vmatpush1.bf16.msra.mxu1 %v2497_v8  ;;  %v2560_v52 = vld [vmem:[%s3327_s0 + $0xc8] ss:$16 sps:$4 sm:$0xff]   ;;  %v2562_v53 = vld [vmem:[%s3327_s0 + $0xec] ss:$16 sps:$4 sm:$0xff]   ;;  %v2555_v54 = vld [vmem:[%s3327_s0 + $0xa0] ss:$16 sps:$4 sm:$0xff]  }
  0x13   :  { %977 = vmatprep.subr.bf16.mxu1 %v2689_v0  ;;  %1233 = vmatpush1.bf16.msra.mxu0 %v2506_v11  ;;  %v2558_v55 = vld [vmem:[%s3327_s0 + $0xc4] ss:$16 sps:$4 sm:$0xff]   ;;  %v2566_v56 = vld [vmem:[%s3327_s0 + $0xe8] ss:$16 sps:$4 sm:$0xff]   ;;  %v2568_v57 = vld [vmem:[%s3327_s0 + $0x10c] ss:$16 sps:$4 sm:$0xff]  }
  0x14   :  { %1234 = vmatprep.subr.bf16.mxu0 %v2689_v0  ;;  %v2561_v58 = vld [vmem:[%s3327_s0 + $0xc0] ss:$16 sps:$4 sm:$0xff]   ;;  %v2564_v59 = vld [vmem:[%s3327_s0 + $0xe4] ss:$16 sps:$4 sm:$0xff]   ;;  %v2572_v60 = vld [vmem:[%s3327_s0 + $0x108] ss:$16 sps:$4 sm:$0xff]  }
  0x15   :  { %v2574_v61 = vld [vmem:[%s3327_s0 + $0x12c] ss:$16 sps:$4 sm:$0xff]   ;;  %v2567_v62 = vld [vmem:[%s3327_s0 + $0xe0] ss:$16 sps:$4 sm:$0xff]   ;;  %v2570_v63 = vld [vmem:[%s3327_s0 + $0x104] ss:$16 sps:$4 sm:$0xff]  }
  0x16   :  { %978 = vmatpush1.bf16.msra.mxu1 %v2499_v10  ;;  %v2580_v1 = vld [vmem:[%s3327_s0 + $0x14c] ss:$16 sps:$4 sm:$0xff]   ;;  %v2573_v2 = vld [vmem:[%s3327_s0 + $0x100] ss:$16 sps:$4 sm:$0xff]   ;;  %v2576_v3 = vld [vmem:[%s3327_s0 + $0x124] ss:$16 sps:$4 sm:$0xff]  }
  0x17   :  { %979 = vmatprep.subr.bf16.mxu1 %v2689_v0  ;;  %1235 = vmatpush1.bf16.msra.mxu0 %v2508_v13  ;;  %v2584_v4 = vld [vmem:[%s3327_s0 + $0x148] ss:$16 sps:$4 sm:$0xff]   ;;  %v2586_v5 = vld [vmem:[%s3327_s0 + $0x16c] ss:$16 sps:$4 sm:$0xff]   ;;  %v2579_v6 = vld [vmem:[%s3327_s0 + $0x120] ss:$16 sps:$4 sm:$0xff]  }
  0x18   :  { %1236 = vmatprep.subr.bf16.mxu0 %v2689_v0  ;;  %v2582_v7 = vld [vmem:[%s3327_s0 + $0x144] ss:$16 sps:$4 sm:$0xff]   ;;  %v2590_v8 = vld [vmem:[%s3327_s0 + $0x168] ss:$16 sps:$4 sm:$0xff]   ;;  %v2592_v9 = vld [vmem:[%s3327_s0 + $0x18c] ss:$16 sps:$4 sm:$0xff]  }
  0x19   :  { %v2585_v10 = vld [vmem:[%s3327_s0 + $0x140] ss:$16 sps:$4 sm:$0xff]   ;;  %v2588_v11 = vld [vmem:[%s3327_s0 + $0x164] ss:$16 sps:$4 sm:$0xff]   ;;  %v2598_v13 = vld [vmem:[%s3327_s0 + $0x1ac] ss:$16 sps:$4 sm:$0xff]  }
  0x1a   :  { %980 = vmatpush1.bf16.msra.mxu1 %v2501_v12  ;;  %v2596_v12 = vld [vmem:[%s3327_s0 + $0x188] ss:$16 sps:$4 sm:$0xff]   ;;  %v2604_v17 = vld [vmem:[%s3327_s0 + $0x1cc] ss:$16 sps:$4 sm:$0xff]  }
  0x1b   :  { %981 = vmatprep.subr.bf16.mxu1 %v2689_v0  ;;  %1237 = vmatpush1.bf16.msra.mxu0 %v2510_v15  ;;  %v2594_v15 = vld [vmem:[%s3327_s0 + $0x184] ss:$16 sps:$4 sm:$0xff]   ;;  %v2602_v16 = vld [vmem:[%s3327_s0 + $0x1a8] ss:$16 sps:$4 sm:$0xff]  }
  0x1c   :  { %1238 = vmatprep.subr.bf16.mxu0 %v2689_v0 }
  0x1e   :  { %982 = vmatpush1.bf16.msra.mxu1 %v2503_v14  ;;  %v2591_v14 = vld [vmem:[%s3327_s0 + $0x160] ss:$16 sps:$4 sm:$0xff]  }
  0x1f   :  { %983 = vmatprep.subr.bf16.mxu1 %v2689_v0  ;;  %1239 = vmatpush1.bf16.msra.mxu0 %v2512_v19  ;;  %v2600_v19 = vld [vmem:[%s3327_s0 + $0x1a4] ss:$16 sps:$4 sm:$0xff]  }
  0x20   :  { %1240 = vmatprep.subr.bf16.mxu0 %v2689_v0 }
  0x22   :  { %984 = vmatpush1.bf16.msra.mxu1 %v2505_v18  ;;  %v2597_v18 = vld [vmem:[%s3327_s0 + $0x180] ss:$16 sps:$4 sm:$0xff]  }
  0x23   :  { %985 = vmatprep.subr.bf16.mxu1 %v2689_v0  ;;  %1241 = vmatpush1.bf16.msra.mxu0 %v2514_v21  ;;  %v2610_v21 = vld [vmem:[%s3327_s0 + $0x1ec] ss:$16 sps:$4 sm:$0xff]  }
  0x24   :  { %1242 = vmatprep.subr.bf16.mxu0 %v2689_v0 }
  0x26   :  { %986 = vmatpush1.bf16.msra.mxu1 %v2507_v20  ;;  %v2608_v20 = vld [vmem:[%s3327_s0 + $0x1c8] ss:$16 sps:$4 sm:$0xff]  }
  0x27   :  { %987 = vmatprep.subr.bf16.mxu1 %v2689_v0  ;;  %1243 = vmatpush1.bf16.msra.mxu0 %v2516_v23  ;;  %v2606_v23 = vld [vmem:[%s3327_s0 + $0x1c4] ss:$16 sps:$4 sm:$0xff]  }
  0x28   :  { %1244 = vmatprep.subr.bf16.mxu0 %v2689_v0 }
  0x2a   :  { %988 = vmatpush1.bf16.msra.mxu1 %v2509_v22  ;;  %v2603_v22 = vld [vmem:[%s3327_s0 + $0x1a0] ss:$16 sps:$4 sm:$0xff]  }
  0x2b   :  { %989 = vmatprep.subr.bf16.mxu1 %v2689_v0  ;;  %1245 = vmatpush1.bf16.msra.mxu0 %v2518_v25  ;;  %v2616_v25 = vld [vmem:[%s3327_s0 + $0x20c] ss:$16 sps:$4 sm:$0xff]  }
  0x2e   :  { %990 = vmatpush1.bf16.msra.mxu1 %v2511_v24  ;;  %1257 = vmatmul.mubr.bf16.vlgmr.msra.gmra.mrb[0].mxu0 %v2520_v27  ;;  %v2614_v24 = vld [vmem:[%s3327_s0 + $0x1e8] ss:$16 sps:$4 sm:$0xff]   ;;  %v2612_v27 = vld [vmem:[%s3327_s0 + $0x1e4] ss:$16 sps:$4 sm:$0xff]  }
  0x2f   :  { %991 = vmatprep.subr.bf16.mxu1 %v2689_v0  ;;  %2074 = vmatprep.mubr.msk.bf16.mxu0 %vm882_vm0, %v2526_v28  ;;  %v2620_v28 = vld [vmem:[%s3327_s0 + $0x208] ss:$16 sps:$4 sm:$0xff]  }
  0x32   :  { %992 = vmatpush1.bf16.msra.mxu1 %v2513_v26  ;;  %v2609_v26 = vld [vmem:[%s3327_s0 + $0x1c0] ss:$16 sps:$4 sm:$0xff]  }
  0x33   :  { %993 = vmatprep.subr.bf16.mxu1 %v2689_v0 }
  0x36   :  { %994 = vmatpush1.bf16.msra.mxu1 %v2515_v29  ;;  %1265 = vmatmul.mubr.bf16.gmra.mrb[4].mxu0 %v2530_v31  ;;  %v2622_v29 = vld [vmem:[%s3327_s0 + $0x22c] ss:$16 sps:$4 sm:$0xff]   ;;  %v2618_v31 = vld [vmem:[%s3327_s0 + $0x204] ss:$16 sps:$4 sm:$0xff]  }
  0x37   :  { %995 = vmatprep.subr.bf16.mxu1 %v2689_v0  ;;  %2075 = vmatprep.mubr.msk.bf16.mxu0 %vm882_vm0, %v2532_v32  ;;  %v2626_v32 = vld [vmem:[%s3327_s0 + $0x228] ss:$16 sps:$4 sm:$0xff]  }
  0x3a   :  { %996 = vmatpush1.bf16.msra.mxu1 %v2517_v30  ;;  %v2615_v30 = vld [vmem:[%s3327_s0 + $0x1e0] ss:$16 sps:$4 sm:$0xff]  }
  0x3b   :  { %997 = vmatprep.subr.bf16.mxu1 %v2689_v0  ;;  %v2578_v0 = vld [vmem:[%s3327_s0 + $0x128] ss:$16 sps:$4 sm:$0xff]  }
  0x3e   :  { %998 = vmatpush1.bf16.msra.mxu1 %v2519_v33  ;;  %1273 = vmatmul.mubr.bf16.gmra.mrb[8].mxu0 %v2536_v36  ;;  %v2628_v33 = vld [vmem:[%s3327_s0 + $0x24c] ss:$16 sps:$4 sm:$0xff]   ;;  %v2632_v36 = vld [vmem:[%s3327_s0 + $0x248] ss:$16 sps:$4 sm:$0xff]  }
  0x3f   :  { %2076 = vmatprep.mubr.msk.bf16.mxu0 %vm882_vm0, %v2538_v37  ;;  %v2634_v37 = vld [vmem:[%s3327_s0 + $0x26c] ss:$16 sps:$4 sm:$0xff]  }
  0x41   :  { %1000 = vmatmul.mubr.bf16.vlgmr.msra.gmra.mrb[0].mxu1 %v2523_v34  ;;  %v2621_v34 = vld [vmem:[%s3327_s0 + $0x200] ss:$16 sps:$4 sm:$0xff]  }
  0x42   :  { %1007 = vmatprep.mubr.bf16.mxu1 %v2528_v35  ;;  %v2624_v35 = vld [vmem:[%s3327_s0 + $0x224] ss:$16 sps:$4 sm:$0xff]  }
  0x46   :  { %1281 = vmatmul.mubr.bf16.gmra.mrb[12].mxu0 %v2542_v40  ;;  %v2638_v40 = vld [vmem:[%s3327_s0 + $0x268] ss:$16 sps:$4 sm:$0xff]  }
  0x47   :  { %2077 = vmatprep.mubr.msk.bf16.mxu0 %vm882_vm0, %v2544_v41  ;;  %v2640_v41 = vld [vmem:[%s3327_s0 + $0x28c] ss:$16 sps:$4 sm:$0xff]  }
  0x49   :  { %1008 = vmatmul.mubr.bf16.gmra.mrb[4].mxu1 %v2531_v38  ;;  %v2627_v38 = vld [vmem:[%s3327_s0 + $0x220] ss:$16 sps:$4 sm:$0xff]  }
  0x4a   :  { %1015 = vmatprep.mubr.bf16.mxu1 %v2534_v39  ;;  %v2630_v39 = vld [vmem:[%s3327_s0 + $0x244] ss:$16 sps:$4 sm:$0xff]  }
  0x4e   :  { %1289 = vmatmul.mubr.bf16.gmra.mrb[16].mxu0 %v2548_v44  ;;  %v2644_v44 = vld [vmem:[%s3327_s0 + $0x288] ss:$16 sps:$4 sm:$0xff]  }
  0x4f   :  { %2078 = vmatprep.mubr.msk.bf16.mxu0 %vm882_vm0, %v2550_v45  ;;  %v2646_v45 = vld [vmem:[%s3327_s0 + $0x2ac] ss:$16 sps:$4 sm:$0xff]  }
  0x51   :  { %1016 = vmatmul.mubr.bf16.gmra.mrb[8].mxu1 %v2537_v42  ;;  %v2633_v42 = vld [vmem:[%s3327_s0 + $0x240] ss:$16 sps:$4 sm:$0xff]  }
  0x52   :  { %1023 = vmatprep.mubr.bf16.mxu1 %v2540_v43  ;;  %v2636_v43 = vld [vmem:[%s3327_s0 + $0x264] ss:$16 sps:$4 sm:$0xff]  }
  0x56   :  { %1297 = vmatmul.mubr.bf16.gmra.mrb[20].mxu0 %v2554_v48  ;;  %v2650_v48 = vld [vmem:[%s3327_s0 + $0x2a8] ss:$16 sps:$4 sm:$0xff]  }
  0x57   :  { %2079 = vmatprep.mubr.msk.bf16.mxu0 %vm882_vm0, %v2556_v49  ;;  %v2652_v49 = vld [vmem:[%s3327_s0 + $0x2cc] ss:$16 sps:$4 sm:$0xff]  }
  0x59   :  { %1024 = vmatmul.mubr.bf16.gmra.mrb[12].mxu1 %v2543_v46  ;;  %v2639_v46 = vld [vmem:[%s3327_s0 + $0x260] ss:$16 sps:$4 sm:$0xff]  }
  0x5a   :  { %1031 = vmatprep.mubr.bf16.mxu1 %v2546_v47  ;;  %v2642_v47 = vld [vmem:[%s3327_s0 + $0x284] ss:$16 sps:$4 sm:$0xff]  }
  0x5e   :  { %1305 = vmatmul.mubr.bf16.gmra.mrb[24].mxu0 %v2560_v52  ;;  %v2656_v52 = vld [vmem:[%s3327_s0 + $0x2c8] ss:$16 sps:$4 sm:$0xff]  }
  0x5f   :  { %2080 = vmatprep.mubr.msk.bf16.mxu0 %vm882_vm0, %v2562_v53  ;;  %v2658_v53 = vld [vmem:[%s3327_s0 + $0x2ec] ss:$16 sps:$4 sm:$0xff]  }
  0x61   :  { %1032 = vmatmul.mubr.bf16.gmra.mrb[16].mxu1 %v2549_v50  ;;  %v2645_v50 = vld [vmem:[%s3327_s0 + $0x280] ss:$16 sps:$4 sm:$0xff]  }
  0x62   :  { %1039 = vmatprep.mubr.bf16.mxu1 %v2552_v51  ;;  %v2648_v51 = vld [vmem:[%s3327_s0 + $0x2a4] ss:$16 sps:$4 sm:$0xff]  }
  0x66   :  { %1313 = vmatmul.mubr.bf16.gmra.mrb[28].mxu0 %v2566_v56  ;;  %v2662_v56 = vld [vmem:[%s3327_s0 + $0x2e8] ss:$16 sps:$4 sm:$0xff]  }
  0x67   :  { %2081 = vmatprep.mubr.msk.bf16.mxu0 %vm882_vm0, %v2568_v57  ;;  %v2664_v57 = vld [vmem:[%s3327_s0 + $0x30c] ss:$16 sps:$4 sm:$0xff]  }
  0x69   :  { %1040 = vmatmul.mubr.bf16.gmra.mrb[20].mxu1 %v2555_v54  ;;  %v2651_v54 = vld [vmem:[%s3327_s0 + $0x2a0] ss:$16 sps:$4 sm:$0xff]  }
  0x6a   :  { %1047 = vmatprep.mubr.bf16.mxu1 %v2558_v55  ;;  %v2654_v55 = vld [vmem:[%s3327_s0 + $0x2c4] ss:$16 sps:$4 sm:$0xff]  }
  0x6e   :  { %1321 = vmatmul.mubr.bf16.gmra.mrb[32].mxu0 %v2572_v60  ;;  %v2668_v60 = vld [vmem:[%s3327_s0 + $0x308] ss:$16 sps:$4 sm:$0xff]  }
  0x6f   :  { %2082 = vmatprep.mubr.msk.bf16.mxu0 %vm882_vm0, %v2574_v61  ;;  %v2670_v61 = vld [vmem:[%s3327_s0 + $0x32c] ss:$16 sps:$4 sm:$0xff]  }
  0x71   :  { %1048 = vmatmul.mubr.bf16.gmra.mrb[24].mxu1 %v2561_v58  ;;  %v2657_v58 = vld [vmem:[%s3327_s0 + $0x2c0] ss:$16 sps:$4 sm:$0xff]  }
  0x72   :  { %1055 = vmatprep.mubr.bf16.mxu1 %v2564_v59  ;;  %v2660_v59 = vld [vmem:[%s3327_s0 + $0x2e4] ss:$16 sps:$4 sm:$0xff]  }
  0x76   :  { %1329 = vmatmul.mubr.bf16.gmra.mrb[36].mxu0 %v2578_v0  ;;  %v2674_v0 = vld [vmem:[%s3327_s0 + $0x328] ss:$16 sps:$4 sm:$0xff]  }
  0x77   :  { %2083 = vmatprep.mubr.msk.bf16.mxu0 %vm882_vm0, %v2580_v1  ;;  %v2676_v1 = vld [vmem:[%s3327_s0 + $0x34c] ss:$16 sps:$4 sm:$0xff]  }
  0x79   :  { %1056 = vmatmul.mubr.bf16.gmra.mrb[28].mxu1 %v2567_v62  ;;  %v2663_v62 = vld [vmem:[%s3327_s0 + $0x2e0] ss:$16 sps:$4 sm:$0xff]  }
  0x7a   :  { %1063 = vmatprep.mubr.bf16.mxu1 %v2570_v63  ;;  %v2666_v63 = vld [vmem:[%s3327_s0 + $0x304] ss:$16 sps:$4 sm:$0xff]  }
  0x7e   :  { %1337 = vmatmul.mubr.bf16.gmra.mrb[40].mxu0 %v2584_v4  ;;  %v2680_v4 = vld [vmem:[%s3327_s0 + $0x348] ss:$16 sps:$4 sm:$0xff]  }
  0x7f   :  { %2084 = vmatprep.mubr.msk.bf16.mxu0 %vm882_vm0, %v2586_v5  ;;  %v2682_v5 = vld [vmem:[%s3327_s0 + $0x36c] ss:$16 sps:$4 sm:$0xff]  }
  0x81   :  { %1064 = vmatmul.mubr.bf16.gmra.mrb[32].mxu1 %v2573_v2  ;;  %v2669_v2 = vld [vmem:[%s3327_s0 + $0x300] ss:$16 sps:$4 sm:$0xff]  }
  0x82   :  { %1071 = vmatprep.mubr.bf16.mxu1 %v2576_v3  ;;  %v2672_v3 = vld [vmem:[%s3327_s0 + $0x324] ss:$16 sps:$4 sm:$0xff]  }
  0x86   :  { %1345 = vmatmul.mubr.bf16.gmra.mrb[44].mxu0 %v2590_v8  ;;  %v2678_v8 = vld [vmem:[%s3327_s0 + $0x344] ss:$16 sps:$4 sm:$0xff]  }
  0x87   :  { %2085 = vmatprep.mubr.msk.bf16.mxu0 %vm882_vm0, %v2592_v9 }
  0x89   :  { %1072 = vmatmul.mubr.bf16.gmra.mrb[36].mxu1 %v2579_v6  ;;  %v2675_v6 = vld [vmem:[%s3327_s0 + $0x320] ss:$16 sps:$4 sm:$0xff]  }
  0x8a   :  { %1079 = vmatprep.mubr.bf16.mxu1 %v2582_v7 }
  0x8e   :  { %1353 = vmatmul.mubr.bf16.gmra.mrb[48].mxu0 %v2596_v12 }
  0x8f   :  { %2086 = vmatprep.mubr.msk.bf16.mxu0 %vm882_vm0, %v2598_v13  ;;  %v2681_v13 = vld [vmem:[%s3327_s0 + $0x340] ss:$16 sps:$4 sm:$0xff]  }
  0x91   :  { %1080 = vmatmul.mubr.bf16.gmra.mrb[40].mxu1 %v2585_v10  ;;  %v2686_v10 = vld [vmem:[%s3327_s0 + $0x368] ss:$16 sps:$4 sm:$0xff]  }
  0x92   :  { %1087 = vmatprep.mubr.bf16.mxu1 %v2588_v11 }
  0x96   :  { %1361 = vmatmul.mubr.bf16.gmra.mrb[52].mxu0 %v2602_v16 }
  0x97   :  { %2087 = vmatprep.mubr.msk.bf16.mxu0 %vm882_vm0, %v2604_v17 }
  0x99   :  { %1088 = vmatmul.mubr.bf16.gmra.mrb[44].mxu1 %v2591_v14 }
  0x9a   :  { %1095 = vmatprep.mubr.bf16.mxu1 %v2594_v15  ;;  %v2684_v15 = vld [vmem:[%s3327_s0 + $0x364] ss:$16 sps:$4 sm:$0xff]  }
  0x9e   :  { %1369 = vmatmul.mubr.bf16.gmra.mrb[56].mxu0 %v2608_v20 }
  0x9f   :  { %2088 = vmatprep.mubr.msk.bf16.mxu0 %vm882_vm0, %v2610_v21 }
  0xa1   :  { %1096 = vmatmul.mubr.bf16.gmra.mrb[48].mxu1 %v2597_v18 }
  0xa2   :  { %1103 = vmatprep.mubr.bf16.mxu1 %v2600_v19  ;;  %v3182_v19 = vld [vmem:[%s3328_s2] ss:$0 sm:$0xff] }
  0xa6   :  { %1377 = vmatmul.mubr.bf16.gmra.mrb[60].mxu0 %v2614_v24 }
  0xa7   :  { %2089 = vmatprep.mubr.msk.bf16.mxu0 %vm882_vm0, %v2616_v25 }
  0xa9   :  { %1104 = vmatmul.mubr.bf16.gmra.mrb[52].mxu1 %v2603_v22 }
  0xaa   :  { %1111 = vmatprep.mubr.bf16.mxu1 %v2606_v23  ;;  %v2687_v23 = vld [vmem:[%s3327_s0 + $0x360] ss:$16 sps:$4 sm:$0xff]  }
  0xae   :  { %1385 = vmatmul.mubr.bf16.gmra.mrb[64].mxu0 %v2620_v28 }
  0xaf   :  { %2090 = vmatprep.mubr.msk.bf16.mxu0 %vm882_vm0, %v2622_v29 }
  0xb1   :  { %1112 = vmatmul.mubr.bf16.gmra.mrb[56].mxu1 %v2609_v26 }
  0xb2   :  { %1119 = vmatprep.mubr.bf16.mxu1 %v2612_v27 }
  0xb6   :  { %1393 = vmatmul.mubr.bf16.gmra.mrb[68].mxu0 %v2626_v32 }
  0xb7   :  { %2091 = vmatprep.mubr.msk.bf16.mxu0 %vm882_vm0, %v2628_v33 }
  0xb9   :  { %1120 = vmatmul.mubr.bf16.gmra.mrb[60].mxu1 %v2615_v30 }
  0xba   :  { %1127 = vmatprep.mubr.bf16.mxu1 %v2618_v31 }
  0xbe   :  { %1401 = vmatmul.mubr.bf16.gmra.mrb[72].mxu0 %v2632_v36 }
  0xbf   :  { %2092 = vmatprep.mubr.msk.bf16.mxu0 %vm882_vm0, %v2634_v37 }
  0xc1   :  { %1128 = vmatmul.mubr.bf16.gmra.mrb[64].mxu1 %v2621_v34 }
  0xc2   :  { %1135 = vmatprep.mubr.bf16.mxu1 %v2624_v35 }
  0xc6   :  { %1409 = vmatmul.mubr.bf16.gmra.mrb[76].mxu0 %v2638_v40 }
  0xc7   :  { %2093 = vmatprep.mubr.msk.bf16.mxu0 %vm882_vm0, %v2640_v41 }
  0xc9   :  { %1136 = vmatmul.mubr.bf16.gmra.mrb[68].mxu1 %v2627_v38 }
  0xca   :  { %1143 = vmatprep.mubr.bf16.mxu1 %v2630_v39 }
  0xce   :  { %1417 = vmatmul.mubr.bf16.gmra.mrb[80].mxu0 %v2644_v44 }
  0xcf   :  { %2094 = vmatprep.mubr.msk.bf16.mxu0 %vm882_vm0, %v2646_v45 }
  0xd1   :  { %1144 = vmatmul.mubr.bf16.gmra.mrb[72].mxu1 %v2633_v42 }
  0xd2   :  { %1151 = vmatprep.mubr.bf16.mxu1 %v2636_v43 }
  0xd6   :  { %1425 = vmatmul.mubr.bf16.gmra.mrb[84].mxu0 %v2650_v48 }
  0xd7   :  { %2095 = vmatprep.mubr.msk.bf16.mxu0 %vm882_vm0, %v2652_v49 }
  0xd9   :  { %1152 = vmatmul.mubr.bf16.gmra.mrb[76].mxu1 %v2639_v46 }
  0xda   :  { %1159 = vmatprep.mubr.bf16.mxu1 %v2642_v47 }
  0xde   :  { %1433 = vmatmul.mubr.bf16.gmra.mrb[88].mxu0 %v2656_v52 }
  0xdf   :  { %2096 = vmatprep.mubr.msk.bf16.mxu0 %vm882_vm0, %v2658_v53 }
  0xe1   :  { %1160 = vmatmul.mubr.bf16.gmra.mrb[80].mxu1 %v2645_v50 }
  0xe2   :  { %1167 = vmatprep.mubr.bf16.mxu1 %v2648_v51 }
  0xe6   :  { %1441 = vmatmul.mubr.bf16.gmra.mrb[92].mxu0 %v2662_v56 }
  0xe7   :  { %2097 = vmatprep.mubr.msk.bf16.mxu0 %vm882_vm0, %v2664_v57 }
  0xe9   :  { %1168 = vmatmul.mubr.bf16.gmra.mrb[84].mxu1 %v2651_v54 }
  0xea   :  { %1175 = vmatprep.mubr.bf16.mxu1 %v2654_v55 }
  0xee   :  { %1449 = vmatmul.mubr.bf16.gmra.mrb[96].mxu0 %v2668_v60 }
  0xef   :  { %2098 = vmatprep.mubr.msk.bf16.mxu0 %vm882_vm0, %v2670_v61 }
  0xf1   :  { %1176 = vmatmul.mubr.bf16.gmra.mrb[88].mxu1 %v2657_v58 }
  0xf2   :  { %1183 = vmatprep.mubr.bf16.mxu1 %v2660_v59 }
  0xf6   :  { %1457 = vmatmul.mubr.bf16.gmra.mrb[100].mxu0 %v2674_v0 }
  0xf7   :  { %2099 = vmatprep.mubr.msk.bf16.mxu0 %vm882_vm0, %v2676_v1 }
  0xf9   :  { %1184 = vmatmul.mubr.bf16.gmra.mrb[92].mxu1 %v2663_v62 }
  0xfa   :  { %1191 = vmatprep.mubr.bf16.mxu1 %v2666_v63 }
  0xfe   :  { %1465 = vmatmul.mubr.bf16.gmra.mrb[104].mxu0 %v2680_v4 }
  0xff   :  { %2100 = vmatprep.mubr.msk.bf16.mxu0 %vm882_vm0, %v2682_v5 }
 0x101   :  { %1192 = vmatmul.mubr.bf16.gmra.mrb[96].mxu1 %v2669_v2  ;;  %v1258_v7 = vpop.f32.mrb[0].mxu0 }
 0x102   :  { %1199 = vmatprep.mubr.bf16.mxu1 %v2672_v3  ;;  %v1260_v9 = vpop.f32.mrb[1].mxu0 }
 0x103   :  { %v1261_v11 = vpop.f32.mrb[2].mxu0 }
 0x104   :  { %v1263_v12 = vpop.f32.mrb[3].mxu0 }
 0x106   :  { %1473 = vmatmul.mubr.bf16.gmra.mrb[108].mxu0 %v2686_v10 }
 0x109   :  { %1200 = vmatmul.mubr.bf16.gmra.mrb[100].mxu1 %v2675_v6  ;;  %v1266_v14 = vpop.f32.mrb[4].mxu0 }
 0x10a   :  { %1207 = vmatprep.mubr.bf16.mxu1 %v2678_v8  ;;  %v1268_v16 = vpop.f32.mrb[5].mxu0 }
 0x10b   :  { %v1269_v17 = vpop.f32.mrb[6].mxu0 }
 0x10c   :  { %v1271_v18 = vpop.f32.mrb[7].mxu0 }
 0x111   :  { %1208 = vmatmul.mubr.bf16.gmra.mrb[104].mxu1 %v2681_v13  ;;  %v1274_v24 = vpop.f32.mrb[8].mxu0 }
 0x112   :  { %1215 = vmatprep.mubr.bf16.mxu1 %v2684_v15  ;;  %v1276_v26 = vpop.f32.mrb[9].mxu0 }
 0x113   :  { %v1277_v30 = vpop.f32.mrb[10].mxu0 }
 0x114   :  { %v1001_v20 = vpop.f32.mrb[0].mxu1  ;;  %v1279_v31 = vpop.f32.mrb[11].mxu0 }
 0x115   :  { %v1002_v21 = vadd.f32 %v3182_v19, %v1001_v20  ;;  %v1003_v22 = vpop.f32.mrb[1].mxu1 }
 0x116   :  { %v1004_v25 = vpop.f32.mrb[2].mxu1 }
 0x117   :  { %v1259_v27 = vadd.f32 %v1258_v7, %v1002_v21  ;;  %v1005_v28 = vadd.f32 %v3182_v19, %v1004_v25  ;;  %v1006_v29 = vpop.f32.mrb[3].mxu1 }
 0x119   :  { %v1537_v32 = vmul.f32 0.01, %v1259_v27  ;;  %v1262_v33 = vadd.f32 %v1261_v11, %v1005_v28  ;;  %1216 = vmatmul.mubr.bf16.gmra.mrb[108].mxu1 %v2687_v23  ;;  %vm1481_vm1 = vcmp.ge.f32.partialorder %v1259_v27, 0.0  ;;  %v1282_v40 = vpop.f32.mrb[12].mxu0 }
 0x11a   :  { %v1284_v43 = vpop.f32.mrb[13].mxu0 }
 0x11b   :  { %vm1482_vm2 = vcmp.ge.f32.partialorder %v1262_v33, 0.0  ;;  %v1538_v34 = vmul.f32 0.01, %v1262_v33  ;;  %v1593_v36 = vsel %vm1481_vm1, %v1259_v27, %v1537_v32  ;;  %v1285_v47 = vpop.f32.mrb[14].mxu0 }
 0x11c   :  { %v1009_v35 = vpop.f32.mrb[4].mxu1  ;;  %v1287_v48 = vpop.f32.mrb[15].mxu0 }
 0x11d   :  { %v1594_v37 = vsel %vm1482_vm2, %v1262_v33, %v1538_v34  ;;  %v1010_v38 = vadd.f32 %v3182_v19, %v1009_v35  ;;  %v1011_v39 = vpop.f32.mrb[5].mxu1 }
 0x11e   :  { %v2216_v41 = vpack.c.bf16 %v1594_v37, %v1593_v36  ;;  %v1012_v42 = vpop.f32.mrb[6].mxu1 }
 0x11f   :  { %v1267_v44 = vadd.f32 %v1266_v14, %v1010_v38  ;;  %v1013_v45 = vadd.f32 %v3182_v19, %v1012_v42  ;;  %v1014_v46 = vpop.f32.mrb[7].mxu1 }
 0x120   :  { %2217 = vst [vmem:[%s3329_s3] sm:$0xff] %v2216_v41  }
 0x121   :  { %v1539_v49 = vmul.f32 0.01, %v1267_v44  ;;  %v1270_v50 = vadd.f32 %v1269_v17, %v1013_v45  ;;  %vm1483_vm3 = vcmp.ge.f32.partialorder %v1267_v44, 0.0  ;;  %v1290_v57 = vpop.f32.mrb[16].mxu0 }
 0x122   :  { %v1292_v60 = vpop.f32.mrb[17].mxu0 }
 0x123   :  { %vm1484_vm4 = vcmp.ge.f32.partialorder %v1270_v50, 0.0  ;;  %v1540_v51 = vmul.f32 0.01, %v1270_v50  ;;  %v1595_v53 = vsel %vm1483_vm3, %v1267_v44, %v1539_v49  ;;  %v1293_v0 = vpop.f32.mrb[18].mxu0 }
 0x124   :  { %v1017_v52 = vpop.f32.mrb[8].mxu1  ;;  %v1295_v1 = vpop.f32.mrb[19].mxu0 }
 0x125   :  { %v1596_v54 = vsel %vm1484_vm4, %v1270_v50, %v1540_v51  ;;  %v1018_v55 = vadd.f32 %v3182_v19, %v1017_v52  ;;  %v1019_v56 = vpop.f32.mrb[9].mxu1 }
 0x126   :  { %v2221_v58 = vpack.c.bf16 %v1596_v54, %v1595_v53  ;;  %v1020_v59 = vpop.f32.mrb[10].mxu1 }
 0x127   :  { %v1275_v61 = vadd.f32 %v1274_v24, %v1018_v55  ;;  %v1021_v62 = vadd.f32 %v3182_v19, %v1020_v59  ;;  %v1022_v63 = vpop.f32.mrb[11].mxu1 }
 0x128   :  { %2353 = vst [vmem:[%s3329_s3 + $0x8] sm:$0xff] %v2221_v58  }
 0x129   :  { %v1541_v2 = vmul.f32 0.01, %v1275_v61  ;;  %v1278_v3 = vadd.f32 %v1277_v30, %v1021_v62  ;;  %vm1485_vm5 = vcmp.ge.f32.partialorder %v1275_v61, 0.0  ;;  %v1298_v10 = vpop.f32.mrb[20].mxu0 }
 0x12a   :  { %v1300_v13 = vpop.f32.mrb[21].mxu0 }
 0x12b   :  { %vm1486_vm6 = vcmp.ge.f32.partialorder %v1278_v3, 0.0  ;;  %v1542_v4 = vmul.f32 0.01, %v1278_v3  ;;  %v1597_v6 = vsel %vm1485_vm5, %v1275_v61, %v1541_v2  ;;  %v1301_v17 = vpop.f32.mrb[22].mxu0 }
 0x12c   :  { %v1025_v5 = vpop.f32.mrb[12].mxu1  ;;  %v1303_v18 = vpop.f32.mrb[23].mxu0 }
 0x12d   :  { %v1598_v7 = vsel %vm1486_vm6, %v1278_v3, %v1542_v4  ;;  %v1026_v8 = vadd.f32 %v3182_v19, %v1025_v5  ;;  %v1027_v9 = vpop.f32.mrb[13].mxu1 }
 0x12e   :  { %v2226_v11 = vpack.c.bf16 %v1598_v7, %v1597_v6  ;;  %v1028_v12 = vpop.f32.mrb[14].mxu1 }
 0x12f   :  { %v1283_v14 = vadd.f32 %v1282_v40, %v1026_v8  ;;  %v1029_v15 = vadd.f32 %v3182_v19, %v1028_v12  ;;  %v1030_v16 = vpop.f32.mrb[15].mxu1 }
 0x130   :  { %2354 = vst [vmem:[%s3329_s3 + $0x10] sm:$0xff] %v2226_v11  }
 0x131   :  { %v1543_v20 = vmul.f32 0.01, %v1283_v14  ;;  %v1286_v21 = vadd.f32 %v1285_v47, %v1029_v15  ;;  %vm1487_vm7 = vcmp.ge.f32.partialorder %v1283_v14, 0.0  ;;  %v1306_v28 = vpop.f32.mrb[24].mxu0 }
 0x132   :  { %v1308_v31 = vpop.f32.mrb[25].mxu0 }
 0x133   :  { %vm1488_vm8 = vcmp.ge.f32.partialorder %v1286_v21, 0.0  ;;  %v1544_v22 = vmul.f32 0.01, %v1286_v21  ;;  %v1599_v24 = vsel %vm1487_vm7, %v1283_v14, %v1543_v20  ;;  %v1309_v35 = vpop.f32.mrb[26].mxu0 }
 0x134   :  { %v1033_v23 = vpop.f32.mrb[16].mxu1  ;;  %v1311_v36 = vpop.f32.mrb[27].mxu0 }
 0x135   :  { %v1600_v25 = vsel %vm1488_vm8, %v1286_v21, %v1544_v22  ;;  %v1034_v26 = vadd.f32 %v3182_v19, %v1033_v23  ;;  %v1035_v27 = vpop.f32.mrb[17].mxu1 }
 0x136   :  { %v2231_v29 = vpack.c.bf16 %v1600_v25, %v1599_v24  ;;  %v1036_v30 = vpop.f32.mrb[18].mxu1 }
 0x137   :  { %v1291_v32 = vadd.f32 %v1290_v57, %v1034_v26  ;;  %v1037_v33 = vadd.f32 %v3182_v19, %v1036_v30  ;;  %v1038_v34 = vpop.f32.mrb[19].mxu1 }
 0x138   :  { %2355 = vst [vmem:[%s3329_s3 + $0x18] sm:$0xff] %v2231_v29  }
 0x139   :  { %v1545_v37 = vmul.f32 0.01, %v1291_v32  ;;  %v1294_v38 = vadd.f32 %v1293_v0, %v1037_v33  ;;  %vm1489_vm9 = vcmp.ge.f32.partialorder %v1291_v32, 0.0  ;;  %v1314_v45 = vpop.f32.mrb[28].mxu0 }
 0x13a   :  { %v1316_v48 = vpop.f32.mrb[29].mxu0 }
 0x13b   :  { %vm1490_vm10 = vcmp.ge.f32.partialorder %v1294_v38, 0.0  ;;  %v1546_v39 = vmul.f32 0.01, %v1294_v38  ;;  %v1601_v41 = vsel %vm1489_vm9, %v1291_v32, %v1545_v37  ;;  %v1317_v52 = vpop.f32.mrb[30].mxu0 }
 0x13c   :  { %v1041_v40 = vpop.f32.mrb[20].mxu1  ;;  %v1319_v53 = vpop.f32.mrb[31].mxu0 }
 0x13d   :  { %v1602_v42 = vsel %vm1490_vm10, %v1294_v38, %v1546_v39  ;;  %v1042_v43 = vadd.f32 %v3182_v19, %v1041_v40  ;;  %v1043_v44 = vpop.f32.mrb[21].mxu1 }
 0x13e   :  { %v2236_v46 = vpack.c.bf16 %v1602_v42, %v1601_v41  ;;  %v1044_v47 = vpop.f32.mrb[22].mxu1 }
 0x13f   :  { %v1299_v49 = vadd.f32 %v1298_v10, %v1042_v43  ;;  %v1045_v50 = vadd.f32 %v3182_v19, %v1044_v47  ;;  %v1046_v51 = vpop.f32.mrb[23].mxu1 }
 0x140   :  { %2356 = vst [vmem:[%s3329_s3 + $0x20] sm:$0xff] %v2236_v46  }
 0x141   :  { %v1547_v54 = vmul.f32 0.01, %v1299_v49  ;;  %v1302_v55 = vadd.f32 %v1301_v17, %v1045_v50  ;;  %vm1491_vm11 = vcmp.ge.f32.partialorder %v1299_v49, 0.0  ;;  %v1322_v62 = vpop.f32.mrb[32].mxu0 }
 0x142   :  { %v1324_v1 = vpop.f32.mrb[33].mxu0 }
 0x143   :  { %vm1492_vm12 = vcmp.ge.f32.partialorder %v1302_v55, 0.0  ;;  %v1548_v56 = vmul.f32 0.01, %v1302_v55  ;;  %v1603_v58 = vsel %vm1491_vm11, %v1299_v49, %v1547_v54  ;;  %v1325_v5 = vpop.f32.mrb[34].mxu0 }
 0x144   :  { %v1049_v57 = vpop.f32.mrb[24].mxu1  ;;  %v1327_v6 = vpop.f32.mrb[35].mxu0 }
 0x145   :  { %v1604_v59 = vsel %vm1492_vm12, %v1302_v55, %v1548_v56  ;;  %v1050_v60 = vadd.f32 %v3182_v19, %v1049_v57  ;;  %v1051_v61 = vpop.f32.mrb[25].mxu1 }
 0x146   :  { %v2241_v63 = vpack.c.bf16 %v1604_v59, %v1603_v58  ;;  %v1052_v0 = vpop.f32.mrb[26].mxu1 }
 0x147   :  { %v1307_v2 = vadd.f32 %v1306_v28, %v1050_v60  ;;  %v1053_v3 = vadd.f32 %v3182_v19, %v1052_v0  ;;  %v1054_v4 = vpop.f32.mrb[27].mxu1 }
 0x148   :  { %2357 = vst [vmem:[%s3329_s3 + $0x28] sm:$0xff] %v2241_v63  }
 0x149   :  { %v1549_v7 = vmul.f32 0.01, %v1307_v2  ;;  %v1310_v8 = vadd.f32 %v1309_v35, %v1053_v3  ;;  %vm1493_vm13 = vcmp.ge.f32.partialorder %v1307_v2, 0.0  ;;  %v1330_v15 = vpop.f32.mrb[36].mxu0 }
 0x14a   :  { %v1332_v18 = vpop.f32.mrb[37].mxu0 }
 0x14b   :  { %vm1494_vm14 = vcmp.ge.f32.partialorder %v1310_v8, 0.0  ;;  %v1550_v9 = vmul.f32 0.01, %v1310_v8  ;;  %v1605_v11 = vsel %vm1493_vm13, %v1307_v2, %v1549_v7  ;;  %v1333_v23 = vpop.f32.mrb[38].mxu0 }
 0x14c   :  { %v1057_v10 = vpop.f32.mrb[28].mxu1  ;;  %v1335_v24 = vpop.f32.mrb[39].mxu0 }
 0x14d   :  { %v1606_v12 = vsel %vm1494_vm14, %v1310_v8, %v1550_v9  ;;  %v1058_v13 = vadd.f32 %v3182_v19, %v1057_v10  ;;  %v1059_v14 = vpop.f32.mrb[29].mxu1 }
 0x14e   :  { %v2246_v16 = vpack.c.bf16 %v1606_v12, %v1605_v11  ;;  %v1060_v17 = vpop.f32.mrb[30].mxu1 }
 0x14f   :  { %v1315_v20 = vadd.f32 %v1314_v45, %v1058_v13  ;;  %v1061_v21 = vadd.f32 %v3182_v19, %v1060_v17  ;;  %v1062_v22 = vpop.f32.mrb[31].mxu1 }
 0x150   :  { %2358 = vst [vmem:[%s3329_s3 + $0x30] sm:$0xff] %v2246_v16  }
 0x151   :  { %v1551_v25 = vmul.f32 0.01, %v1315_v20  ;;  %v1318_v26 = vadd.f32 %v1317_v52, %v1061_v21  ;;  %vm1495_vm15 = vcmp.ge.f32.partialorder %v1315_v20, 0.0  ;;  %v1338_v33 = vpop.f32.mrb[40].mxu0 }
 0x152   :  { %v1340_v36 = vpop.f32.mrb[41].mxu0 }
 0x153   :  { %vm1496_vm0 = vcmp.ge.f32.partialorder %v1318_v26, 0.0  ;;  %v1552_v27 = vmul.f32 0.01, %v1318_v26  ;;  %v1607_v29 = vsel %vm1495_vm15, %v1315_v20, %v1551_v25  ;;  %v1341_v40 = vpop.f32.mrb[42].mxu0 }
 0x154   :  { %v1065_v28 = vpop.f32.mrb[32].mxu1  ;;  %v1343_v41 = vpop.f32.mrb[43].mxu0 }
 0x155   :  { %v1608_v30 = vsel %vm1496_vm0, %v1318_v26, %v1552_v27  ;;  %v1066_v31 = vadd.f32 %v3182_v19, %v1065_v28  ;;  %v1067_v32 = vpop.f32.mrb[33].mxu1 }
 0x156   :  { %v2251_v34 = vpack.c.bf16 %v1608_v30, %v1607_v29  ;;  %v1068_v35 = vpop.f32.mrb[34].mxu1 }
 0x157   :  { %v1323_v37 = vadd.f32 %v1322_v62, %v1066_v31  ;;  %v1069_v38 = vadd.f32 %v3182_v19, %v1068_v35  ;;  %v1070_v39 = vpop.f32.mrb[35].mxu1 }
 0x158   :  { %2359 = vst [vmem:[%s3329_s3 + $0x38] sm:$0xff] %v2251_v34  }
 0x159   :  { %v1553_v42 = vmul.f32 0.01, %v1323_v37  ;;  %v1326_v43 = vadd.f32 %v1325_v5, %v1069_v38  ;;  %vm1497_vm1 = vcmp.ge.f32.partialorder %v1323_v37, 0.0  ;;  %v1346_v50 = vpop.f32.mrb[44].mxu0 }
 0x15a   :  { %v1348_v53 = vpop.f32.mrb[45].mxu0 }
 0x15b   :  { %vm1498_vm2 = vcmp.ge.f32.partialorder %v1326_v43, 0.0  ;;  %v1554_v44 = vmul.f32 0.01, %v1326_v43  ;;  %v1609_v46 = vsel %vm1497_vm1, %v1323_v37, %v1553_v42  ;;  %v1349_v57 = vpop.f32.mrb[46].mxu0 }
 0x15c   :  { %v1073_v45 = vpop.f32.mrb[36].mxu1  ;;  %v1351_v58 = vpop.f32.mrb[47].mxu0 }
 0x15d   :  { %v1610_v47 = vsel %vm1498_vm2, %v1326_v43, %v1554_v44  ;;  %v1074_v48 = vadd.f32 %v3182_v19, %v1073_v45  ;;  %v1075_v49 = vpop.f32.mrb[37].mxu1 }
 0x15e   :  { %v2256_v51 = vpack.c.bf16 %v1610_v47, %v1609_v46  ;;  %v1076_v52 = vpop.f32.mrb[38].mxu1 }
 0x15f   :  { %v1331_v54 = vadd.f32 %v1330_v15, %v1074_v48  ;;  %v1077_v55 = vadd.f32 %v3182_v19, %v1076_v52  ;;  %v1078_v56 = vpop.f32.mrb[39].mxu1 }
 0x160   :  { %2360 = vst [vmem:[%s3329_s3 + $0x40] sm:$0xff] %v2256_v51  }
 0x161   :  { %v1555_v59 = vmul.f32 0.01, %v1331_v54  ;;  %v1334_v60 = vadd.f32 %v1333_v23, %v1077_v55  ;;  %vm1499_vm3 = vcmp.ge.f32.partialorder %v1331_v54, 0.0  ;;  %v1354_v3 = vpop.f32.mrb[48].mxu0 }
 0x162   :  { %v1356_v6 = vpop.f32.mrb[49].mxu0 }
 0x163   :  { %vm1500_vm4 = vcmp.ge.f32.partialorder %v1334_v60, 0.0  ;;  %v1556_v61 = vmul.f32 0.01, %v1334_v60  ;;  %v1611_v63 = vsel %vm1499_vm3, %v1331_v54, %v1555_v59  ;;  %v1357_v10 = vpop.f32.mrb[50].mxu0 }
 0x164   :  { %v1081_v62 = vpop.f32.mrb[40].mxu1  ;;  %v1359_v11 = vpop.f32.mrb[51].mxu0 }
 0x165   :  { %v1612_v0 = vsel %vm1500_vm4, %v1334_v60, %v1556_v61  ;;  %v1082_v1 = vadd.f32 %v3182_v19, %v1081_v62  ;;  %v1083_v2 = vpop.f32.mrb[41].mxu1 }
 0x166   :  { %v2261_v4 = vpack.c.bf16 %v1612_v0, %v1611_v63  ;;  %v1084_v5 = vpop.f32.mrb[42].mxu1 }
 0x167   :  { %v1339_v7 = vadd.f32 %v1338_v33, %v1082_v1  ;;  %v1085_v8 = vadd.f32 %v3182_v19, %v1084_v5  ;;  %v1086_v9 = vpop.f32.mrb[43].mxu1 }
 0x168   :  { %2361 = vst [vmem:[%s3329_s3 + $0x48] sm:$0xff] %v2261_v4  }
 0x169   :  { %v1557_v12 = vmul.f32 0.01, %v1339_v7  ;;  %v1342_v13 = vadd.f32 %v1341_v40, %v1085_v8  ;;  %vm1501_vm5 = vcmp.ge.f32.partialorder %v1339_v7, 0.0  ;;  %v1362_v21 = vpop.f32.mrb[52].mxu0 }
 0x16a   :  { %v1364_v24 = vpop.f32.mrb[53].mxu0 }
 0x16b   :  { %vm1502_vm6 = vcmp.ge.f32.partialorder %v1342_v13, 0.0  ;;  %v1558_v14 = vmul.f32 0.01, %v1342_v13  ;;  %v1613_v16 = vsel %vm1501_vm5, %v1339_v7, %v1557_v12  ;;  %v1365_v28 = vpop.f32.mrb[54].mxu0 }
 0x16c   :  { %v1089_v15 = vpop.f32.mrb[44].mxu1  ;;  %v1367_v29 = vpop.f32.mrb[55].mxu0 }
 0x16d   :  { %v1614_v17 = vsel %vm1502_vm6, %v1342_v13, %v1558_v14  ;;  %v1090_v18 = vadd.f32 %v3182_v19, %v1089_v15  ;;  %v1091_v20 = vpop.f32.mrb[45].mxu1 }
 0x16e   :  { %v2266_v22 = vpack.c.bf16 %v1614_v17, %v1613_v16  ;;  %v1092_v23 = vpop.f32.mrb[46].mxu1 }
 0x16f   :  { %v1347_v25 = vadd.f32 %v1346_v50, %v1090_v18  ;;  %v1093_v26 = vadd.f32 %v3182_v19, %v1092_v23  ;;  %v1094_v27 = vpop.f32.mrb[47].mxu1 }
 0x170   :  { %2362 = vst [vmem:[%s3329_s3 + $0x50] sm:$0xff] %v2266_v22  }
 0x171   :  { %v1559_v30 = vmul.f32 0.01, %v1347_v25  ;;  %v1350_v31 = vadd.f32 %v1349_v57, %v1093_v26  ;;  %vm1503_vm7 = vcmp.ge.f32.partialorder %v1347_v25, 0.0  ;;  %v1370_v38 = vpop.f32.mrb[56].mxu0 }
 0x172   :  { %v1372_v41 = vpop.f32.mrb[57].mxu0 }
 0x173   :  { %vm1504_vm8 = vcmp.ge.f32.partialorder %v1350_v31, 0.0  ;;  %v1560_v32 = vmul.f32 0.01, %v1350_v31  ;;  %v1615_v34 = vsel %vm1503_vm7, %v1347_v25, %v1559_v30  ;;  %v1373_v45 = vpop.f32.mrb[58].mxu0 }
 0x174   :  { %v1097_v33 = vpop.f32.mrb[48].mxu1  ;;  %v1375_v46 = vpop.f32.mrb[59].mxu0 }
 0x175   :  { %v1616_v35 = vsel %vm1504_vm8, %v1350_v31, %v1560_v32  ;;  %v1098_v36 = vadd.f32 %v3182_v19, %v1097_v33  ;;  %v1099_v37 = vpop.f32.mrb[49].mxu1 }
 0x176   :  { %v2271_v39 = vpack.c.bf16 %v1616_v35, %v1615_v34  ;;  %v1100_v40 = vpop.f32.mrb[50].mxu1 }
 0x177   :  { %v1355_v42 = vadd.f32 %v1354_v3, %v1098_v36  ;;  %v1101_v43 = vadd.f32 %v3182_v19, %v1100_v40  ;;  %v1102_v44 = vpop.f32.mrb[51].mxu1 }
 0x178   :  { %2363 = vst [vmem:[%s3329_s3 + $0x58] sm:$0xff] %v2271_v39  }
 0x179   :  { %v1561_v47 = vmul.f32 0.01, %v1355_v42  ;;  %v1358_v48 = vadd.f32 %v1357_v10, %v1101_v43  ;;  %vm1505_vm9 = vcmp.ge.f32.partialorder %v1355_v42, 0.0  ;;  %v1378_v55 = vpop.f32.mrb[60].mxu0 }
 0x17a   :  { %v1380_v58 = vpop.f32.mrb[61].mxu0 }
 0x17b   :  { %vm1506_vm10 = vcmp.ge.f32.partialorder %v1358_v48, 0.0  ;;  %v1562_v49 = vmul.f32 0.01, %v1358_v48  ;;  %v1617_v51 = vsel %vm1505_vm9, %v1355_v42, %v1561_v47  ;;  %v1381_v62 = vpop.f32.mrb[62].mxu0 }
 0x17c   :  { %v1105_v50 = vpop.f32.mrb[52].mxu1  ;;  %v1383_v63 = vpop.f32.mrb[63].mxu0 }
 0x17d   :  { %v1618_v52 = vsel %vm1506_vm10, %v1358_v48, %v1562_v49  ;;  %v1106_v53 = vadd.f32 %v3182_v19, %v1105_v50  ;;  %v1107_v54 = vpop.f32.mrb[53].mxu1 }
 0x17e   :  { %v2276_v56 = vpack.c.bf16 %v1618_v52, %v1617_v51  ;;  %v1108_v57 = vpop.f32.mrb[54].mxu1 }
 0x17f   :  { %v1363_v59 = vadd.f32 %v1362_v21, %v1106_v53  ;;  %v1109_v60 = vadd.f32 %v3182_v19, %v1108_v57  ;;  %v1110_v61 = vpop.f32.mrb[55].mxu1 }
 0x180   :  { %2364 = vst [vmem:[%s3329_s3 + $0x60] sm:$0xff] %v2276_v56  }
 0x181   :  { %v1563_v0 = vmul.f32 0.01, %v1363_v59  ;;  %v1366_v1 = vadd.f32 %v1365_v28, %v1109_v60  ;;  %vm1507_vm11 = vcmp.ge.f32.partialorder %v1363_v59, 0.0  ;;  %v1386_v8 = vpop.f32.mrb[64].mxu0 }
 0x182   :  { %v1388_v11 = vpop.f32.mrb[65].mxu0 }
 0x183   :  { %vm1508_vm12 = vcmp.ge.f32.partialorder %v1366_v1, 0.0  ;;  %v1564_v2 = vmul.f32 0.01, %v1366_v1  ;;  %v1619_v4 = vsel %vm1507_vm11, %v1363_v59, %v1563_v0  ;;  %v1389_v15 = vpop.f32.mrb[66].mxu0 }
 0x184   :  { %v1113_v3 = vpop.f32.mrb[56].mxu1  ;;  %v1391_v16 = vpop.f32.mrb[67].mxu0 }
 0x185   :  { %v1620_v5 = vsel %vm1508_vm12, %v1366_v1, %v1564_v2  ;;  %v1114_v6 = vadd.f32 %v3182_v19, %v1113_v3  ;;  %v1115_v7 = vpop.f32.mrb[57].mxu1 }
 0x186   :  { %v2281_v9 = vpack.c.bf16 %v1620_v5, %v1619_v4  ;;  %v1116_v10 = vpop.f32.mrb[58].mxu1 }
 0x187   :  { %v1371_v12 = vadd.f32 %v1370_v38, %v1114_v6  ;;  %v1117_v13 = vadd.f32 %v3182_v19, %v1116_v10  ;;  %v1118_v14 = vpop.f32.mrb[59].mxu1 }
 0x188   :  { %2365 = vst [vmem:[%s3329_s3 + $0x68] sm:$0xff] %v2281_v9  }
 0x189   :  { %v1565_v17 = vmul.f32 0.01, %v1371_v12  ;;  %v1374_v18 = vadd.f32 %v1373_v45, %v1117_v13  ;;  %vm1509_vm13 = vcmp.ge.f32.partialorder %v1371_v12, 0.0  ;;  %v1394_v26 = vpop.f32.mrb[68].mxu0 }
 0x18a   :  { %v1396_v29 = vpop.f32.mrb[69].mxu0 }
 0x18b   :  { %vm1510_vm14 = vcmp.ge.f32.partialorder %v1374_v18, 0.0  ;;  %v1566_v20 = vmul.f32 0.01, %v1374_v18  ;;  %v1621_v22 = vsel %vm1509_vm13, %v1371_v12, %v1565_v17  ;;  %v1397_v33 = vpop.f32.mrb[70].mxu0 }
 0x18c   :  { %v1121_v21 = vpop.f32.mrb[60].mxu1  ;;  %v1399_v34 = vpop.f32.mrb[71].mxu0 }
 0x18d   :  { %v1622_v23 = vsel %vm1510_vm14, %v1374_v18, %v1566_v20  ;;  %v1122_v24 = vadd.f32 %v3182_v19, %v1121_v21  ;;  %v1123_v25 = vpop.f32.mrb[61].mxu1 }
 0x18e   :  { %v2286_v27 = vpack.c.bf16 %v1622_v23, %v1621_v22  ;;  %v1124_v28 = vpop.f32.mrb[62].mxu1 }
 0x18f   :  { %v1379_v30 = vadd.f32 %v1378_v55, %v1122_v24  ;;  %v1125_v31 = vadd.f32 %v3182_v19, %v1124_v28  ;;  %v1126_v32 = vpop.f32.mrb[63].mxu1 }
 0x190   :  { %2366 = vst [vmem:[%s3329_s3 + $0x70] sm:$0xff] %v2286_v27  }
 0x191   :  { %v1567_v35 = vmul.f32 0.01, %v1379_v30  ;;  %v1382_v36 = vadd.f32 %v1381_v62, %v1125_v31  ;;  %vm1511_vm15 = vcmp.ge.f32.partialorder %v1379_v30, 0.0  ;;  %v1402_v43 = vpop.f32.mrb[72].mxu0 }
 0x192   :  { %v1404_v46 = vpop.f32.mrb[73].mxu0 }
 0x193   :  { %vm1512_vm0 = vcmp.ge.f32.partialorder %v1382_v36, 0.0  ;;  %v1568_v37 = vmul.f32 0.01, %v1382_v36  ;;  %v1623_v39 = vsel %vm1511_vm15, %v1379_v30, %v1567_v35  ;;  %v1405_v50 = vpop.f32.mrb[74].mxu0 }
 0x194   :  { %v1129_v38 = vpop.f32.mrb[64].mxu1  ;;  %v1407_v51 = vpop.f32.mrb[75].mxu0 }
 0x195   :  { %v1624_v40 = vsel %vm1512_vm0, %v1382_v36, %v1568_v37  ;;  %v1130_v41 = vadd.f32 %v3182_v19, %v1129_v38  ;;  %v1131_v42 = vpop.f32.mrb[65].mxu1 }
 0x196   :  { %v2291_v44 = vpack.c.bf16 %v1624_v40, %v1623_v39  ;;  %v1132_v45 = vpop.f32.mrb[66].mxu1 }
 0x197   :  { %v1387_v47 = vadd.f32 %v1386_v8, %v1130_v41  ;;  %v1133_v48 = vadd.f32 %v3182_v19, %v1132_v45  ;;  %v1134_v49 = vpop.f32.mrb[67].mxu1 }
 0x198   :  { %2367 = vst [vmem:[%s3329_s3 + $0x78] sm:$0xff] %v2291_v44  }
 0x199   :  { %v1569_v52 = vmul.f32 0.01, %v1387_v47  ;;  %v1390_v53 = vadd.f32 %v1389_v15, %v1133_v48  ;;  %vm1513_vm1 = vcmp.ge.f32.partialorder %v1387_v47, 0.0  ;;  %v1410_v60 = vpop.f32.mrb[76].mxu0 }
 0x19a   :  { %v1412_v63 = vpop.f32.mrb[77].mxu0 }
 0x19b   :  { %vm1514_vm2 = vcmp.ge.f32.partialorder %v1390_v53, 0.0  ;;  %v1570_v54 = vmul.f32 0.01, %v1390_v53  ;;  %v1625_v56 = vsel %vm1513_vm1, %v1387_v47, %v1569_v52  ;;  %v1413_v3 = vpop.f32.mrb[78].mxu0 }
 0x19c   :  { %v1137_v55 = vpop.f32.mrb[68].mxu1  ;;  %v1415_v4 = vpop.f32.mrb[79].mxu0 }
 0x19d   :  { %v1626_v57 = vsel %vm1514_vm2, %v1390_v53, %v1570_v54  ;;  %v1138_v58 = vadd.f32 %v3182_v19, %v1137_v55  ;;  %v1139_v59 = vpop.f32.mrb[69].mxu1 }
 0x19e   :  { %v2296_v61 = vpack.c.bf16 %v1626_v57, %v1625_v56  ;;  %v1140_v62 = vpop.f32.mrb[70].mxu1 }
 0x19f   :  { %v1395_v0 = vadd.f32 %v1394_v26, %v1138_v58  ;;  %v1141_v1 = vadd.f32 %v3182_v19, %v1140_v62  ;;  %v1142_v2 = vpop.f32.mrb[71].mxu1 }
 0x1a0   :  { %2368 = vst [vmem:[%s3329_s3 + $0x80] sm:$0xff] %v2296_v61  }
 0x1a1   :  { %v1571_v5 = vmul.f32 0.01, %v1395_v0  ;;  %v1398_v6 = vadd.f32 %v1397_v33, %v1141_v1  ;;  %vm1515_vm3 = vcmp.ge.f32.partialorder %v1395_v0, 0.0  ;;  %v1418_v13 = vpop.f32.mrb[80].mxu0 }
 0x1a2   :  { %v1420_v16 = vpop.f32.mrb[81].mxu0 }
 0x1a3   :  { %vm1516_vm4 = vcmp.ge.f32.partialorder %v1398_v6, 0.0  ;;  %v1572_v7 = vmul.f32 0.01, %v1398_v6  ;;  %v1627_v9 = vsel %vm1515_vm3, %v1395_v0, %v1571_v5  ;;  %v1421_v21 = vpop.f32.mrb[82].mxu0 }
 0x1a4   :  { %v1145_v8 = vpop.f32.mrb[72].mxu1  ;;  %v1423_v22 = vpop.f32.mrb[83].mxu0 }
 0x1a5   :  { %v1628_v10 = vsel %vm1516_vm4, %v1398_v6, %v1572_v7  ;;  %v1146_v11 = vadd.f32 %v3182_v19, %v1145_v8  ;;  %v1147_v12 = vpop.f32.mrb[73].mxu1 }
 0x1a6   :  { %v2301_v14 = vpack.c.bf16 %v1628_v10, %v1627_v9  ;;  %v1148_v15 = vpop.f32.mrb[74].mxu1 }
 0x1a7   :  { %v1403_v17 = vadd.f32 %v1402_v43, %v1146_v11  ;;  %v1149_v18 = vadd.f32 %v3182_v19, %v1148_v15  ;;  %v1150_v20 = vpop.f32.mrb[75].mxu1 }
 0x1a8   :  { %2369 = vst [vmem:[%s3329_s3 + $0x88] sm:$0xff] %v2301_v14  }
 0x1a9   :  { %v1573_v23 = vmul.f32 0.01, %v1403_v17  ;;  %v1406_v24 = vadd.f32 %v1405_v50, %v1149_v18  ;;  %vm1517_vm5 = vcmp.ge.f32.partialorder %v1403_v17, 0.0  ;;  %v1426_v31 = vpop.f32.mrb[84].mxu0 }
 0x1aa   :  { %v1428_v34 = vpop.f32.mrb[85].mxu0 }
 0x1ab   :  { %vm1518_vm6 = vcmp.ge.f32.partialorder %v1406_v24, 0.0  ;;  %v1574_v25 = vmul.f32 0.01, %v1406_v24  ;;  %v1629_v27 = vsel %vm1517_vm5, %v1403_v17, %v1573_v23  ;;  %v1429_v38 = vpop.f32.mrb[86].mxu0 }
 0x1ac   :  { %v1153_v26 = vpop.f32.mrb[76].mxu1  ;;  %v1431_v39 = vpop.f32.mrb[87].mxu0 }
 0x1ad   :  { %v1630_v28 = vsel %vm1518_vm6, %v1406_v24, %v1574_v25  ;;  %v1154_v29 = vadd.f32 %v3182_v19, %v1153_v26  ;;  %v1155_v30 = vpop.f32.mrb[77].mxu1 }
 0x1ae   :  { %v2306_v32 = vpack.c.bf16 %v1630_v28, %v1629_v27  ;;  %v1156_v33 = vpop.f32.mrb[78].mxu1 }
 0x1af   :  { %v1411_v35 = vadd.f32 %v1410_v60, %v1154_v29  ;;  %v1157_v36 = vadd.f32 %v3182_v19, %v1156_v33  ;;  %v1158_v37 = vpop.f32.mrb[79].mxu1 }
 0x1b0   :  { %2370 = vst [vmem:[%s3329_s3 + $0x90] sm:$0xff] %v2306_v32  }
 0x1b1   :  { %v1575_v40 = vmul.f32 0.01, %v1411_v35  ;;  %v1414_v41 = vadd.f32 %v1413_v3, %v1157_v36  ;;  %vm1519_vm7 = vcmp.ge.f32.partialorder %v1411_v35, 0.0  ;;  %v1434_v48 = vpop.f32.mrb[88].mxu0 }
 0x1b2   :  { %v1436_v51 = vpop.f32.mrb[89].mxu0 }
 0x1b3   :  { %vm1520_vm8 = vcmp.ge.f32.partialorder %v1414_v41, 0.0  ;;  %v1576_v42 = vmul.f32 0.01, %v1414_v41  ;;  %v1631_v44 = vsel %vm1519_vm7, %v1411_v35, %v1575_v40  ;;  %v1437_v55 = vpop.f32.mrb[90].mxu0 }
 0x1b4   :  { %v1161_v43 = vpop.f32.mrb[80].mxu1  ;;  %v1439_v56 = vpop.f32.mrb[91].mxu0 }
 0x1b5   :  { %v1632_v45 = vsel %vm1520_vm8, %v1414_v41, %v1576_v42  ;;  %v1162_v46 = vadd.f32 %v3182_v19, %v1161_v43  ;;  %v1163_v47 = vpop.f32.mrb[81].mxu1 }
 0x1b6   :  { %v2311_v49 = vpack.c.bf16 %v1632_v45, %v1631_v44  ;;  %v1164_v50 = vpop.f32.mrb[82].mxu1 }
 0x1b7   :  { %v1419_v52 = vadd.f32 %v1418_v13, %v1162_v46  ;;  %v1165_v53 = vadd.f32 %v3182_v19, %v1164_v50  ;;  %v1166_v54 = vpop.f32.mrb[83].mxu1 }
 0x1b8   :  { %2371 = vst [vmem:[%s3329_s3 + $0x98] sm:$0xff] %v2311_v49  }
 0x1b9   :  { %v1577_v57 = vmul.f32 0.01, %v1419_v52  ;;  %v1422_v58 = vadd.f32 %v1421_v21, %v1165_v53  ;;  %vm1521_vm9 = vcmp.ge.f32.partialorder %v1419_v52, 0.0  ;;  %v1442_v1 = vpop.f32.mrb[92].mxu0 }
 0x1ba   :  { %v1444_v4 = vpop.f32.mrb[93].mxu0 }
 0x1bb   :  { %vm1522_vm10 = vcmp.ge.f32.partialorder %v1422_v58, 0.0  ;;  %v1578_v59 = vmul.f32 0.01, %v1422_v58  ;;  %v1633_v61 = vsel %vm1521_vm9, %v1419_v52, %v1577_v57  ;;  %v1445_v8 = vpop.f32.mrb[94].mxu0 }
 0x1bc   :  { %v1169_v60 = vpop.f32.mrb[84].mxu1  ;;  %v1447_v9 = vpop.f32.mrb[95].mxu0 }
 0x1bd   :  { %v1634_v62 = vsel %vm1522_vm10, %v1422_v58, %v1578_v59  ;;  %v1170_v63 = vadd.f32 %v3182_v19, %v1169_v60  ;;  %v1171_v0 = vpop.f32.mrb[85].mxu1 }
 0x1be   :  { %v2316_v2 = vpack.c.bf16 %v1634_v62, %v1633_v61  ;;  %v1172_v3 = vpop.f32.mrb[86].mxu1 }
 0x1bf   :  { %v1427_v5 = vadd.f32 %v1426_v31, %v1170_v63  ;;  %v1173_v6 = vadd.f32 %v3182_v19, %v1172_v3  ;;  %v1174_v7 = vpop.f32.mrb[87].mxu1 }
 0x1c0   :  { %2372 = vst [vmem:[%s3329_s3 + $0xa0] sm:$0xff] %v2316_v2  }
 0x1c1   :  { %v1579_v10 = vmul.f32 0.01, %v1427_v5  ;;  %v1430_v11 = vadd.f32 %v1429_v38, %v1173_v6  ;;  %vm1523_vm11 = vcmp.ge.f32.partialorder %v1427_v5, 0.0  ;;  %v1450_v18 = vpop.f32.mrb[96].mxu0 }
 0x1c2   :  { %v1452_v22 = vpop.f32.mrb[97].mxu0 }
 0x1c3   :  { %vm1524_vm12 = vcmp.ge.f32.partialorder %v1430_v11, 0.0  ;;  %v1580_v12 = vmul.f32 0.01, %v1430_v11  ;;  %v1635_v14 = vsel %vm1523_vm11, %v1427_v5, %v1579_v10  ;;  %v1453_v26 = vpop.f32.mrb[98].mxu0  ;;  %v2688_v22 = vld [vmem:[%s3328_s2] ss:$0 sm:$0xff] }
 0x1c4   :  { %v1177_v13 = vpop.f32.mrb[88].mxu1  ;;  %v1455_v27 = vpop.f32.mrb[99].mxu0 }
 0x1c5   :  { %v1636_v15 = vsel %vm1524_vm12, %v1430_v11, %v1580_v12  ;;  %v1178_v16 = vadd.f32 %v3182_v19, %v1177_v13  ;;  %v1179_v17 = vpop.f32.mrb[89].mxu1 }
 0x1c6   :  { %v2321_v20 = vpack.c.bf16 %v1636_v15, %v1635_v14  ;;  %v1180_v21 = vpop.f32.mrb[90].mxu1 }
 0x1c7   :  { %v1435_v23 = vadd.f32 %v1434_v48, %v1178_v16  ;;  %v1181_v24 = vadd.f32 %v3182_v19, %v1180_v21  ;;  %v1182_v25 = vpop.f32.mrb[91].mxu1 }
 0x1c8   :  { %2373 = vst [vmem:[%s3329_s3 + $0xa8] sm:$0xff] %v2321_v20  }
 0x1c9   :  { %v1581_v28 = vmul.f32 0.01, %v1435_v23  ;;  %v1438_v29 = vadd.f32 %v1437_v55, %v1181_v24  ;;  %vm1525_vm13 = vcmp.ge.f32.partialorder %v1435_v23, 0.0  ;;  %v1458_v36 = vpop.f32.mrb[100].mxu0 }
 0x1ca   :  { %v1460_v39 = vpop.f32.mrb[101].mxu0 }
 0x1cb   :  { %vm1526_vm14 = vcmp.ge.f32.partialorder %v1438_v29, 0.0  ;;  %v1582_v30 = vmul.f32 0.01, %v1438_v29  ;;  %v1637_v32 = vsel %vm1525_vm13, %v1435_v23, %v1581_v28  ;;  %v1461_v43 = vpop.f32.mrb[102].mxu0 }
 0x1cc   :  { %v1185_v31 = vpop.f32.mrb[92].mxu1  ;;  %v1463_v44 = vpop.f32.mrb[103].mxu0 }
 0x1cd   :  { %v1638_v33 = vsel %vm1526_vm14, %v1438_v29, %v1582_v30  ;;  %v1186_v34 = vadd.f32 %v3182_v19, %v1185_v31  ;;  %v1187_v35 = vpop.f32.mrb[93].mxu1 }
 0x1ce   :  { %v2326_v37 = vpack.c.bf16 %v1638_v33, %v1637_v32  ;;  %v1188_v38 = vpop.f32.mrb[94].mxu1 }
 0x1cf   :  { %v1443_v40 = vadd.f32 %v1442_v1, %v1186_v34  ;;  %v1189_v41 = vadd.f32 %v3182_v19, %v1188_v38  ;;  %v1190_v42 = vpop.f32.mrb[95].mxu1 }
 0x1d0   :  { %2374 = vst [vmem:[%s3329_s3 + $0xb0] sm:$0xff] %v2326_v37  }
 0x1d1   :  { %v1583_v45 = vmul.f32 0.01, %v1443_v40  ;;  %v1446_v46 = vadd.f32 %v1445_v8, %v1189_v41  ;;  %vm1527_vm15 = vcmp.ge.f32.partialorder %v1443_v40, 0.0  ;;  %v1466_v53 = vpop.f32.mrb[104].mxu0 }
 0x1d2   :  { %v1468_v56 = vpop.f32.mrb[105].mxu0 }
 0x1d3   :  { %vm1528_vm0 = vcmp.ge.f32.partialorder %v1446_v46, 0.0  ;;  %v1584_v47 = vmul.f32 0.01, %v1446_v46  ;;  %v1639_v49 = vsel %vm1527_vm15, %v1443_v40, %v1583_v45  ;;  %v1469_v60 = vpop.f32.mrb[106].mxu0 }
 0x1d4   :  { %v1193_v48 = vpop.f32.mrb[96].mxu1  ;;  %v1471_v61 = vpop.f32.mrb[107].mxu0 }
 0x1d5   :  { %v1640_v50 = vsel %vm1528_vm0, %v1446_v46, %v1584_v47  ;;  %v1194_v51 = vadd.f32 %v3182_v19, %v1193_v48  ;;  %v1195_v52 = vpop.f32.mrb[97].mxu1 }
 0x1d6   :  { %v2331_v54 = vpack.c.bf16 %v1640_v50, %v1639_v49  ;;  %v1196_v55 = vpop.f32.mrb[98].mxu1 }
 0x1d7   :  { %v1451_v57 = vadd.f32 %v1450_v18, %v1194_v51  ;;  %v1197_v58 = vadd.f32 %v3182_v19, %v1196_v55  ;;  %v1198_v59 = vpop.f32.mrb[99].mxu1 }
 0x1d8   :  { %2375 = vst [vmem:[%s3329_s3 + $0xb8] sm:$0xff] %v2331_v54  }
 0x1d9   :  { %v1585_v62 = vmul.f32 0.01, %v1451_v57  ;;  %v1454_v63 = vadd.f32 %v1453_v26, %v1197_v58  ;;  %vm1529_vm1 = vcmp.ge.f32.partialorder %v1451_v57, 0.0  ;;  %v1474_v6 = vpop.f32.mrb[108].mxu0 }
 0x1da   :  { %v1476_v9 = vpop.f32.mrb[109].mxu0 }
 0x1db   :  { %vm1530_vm2 = vcmp.ge.f32.partialorder %v1454_v63, 0.0  ;;  %v1586_v0 = vmul.f32 0.01, %v1454_v63  ;;  %v1641_v2 = vsel %vm1529_vm1, %v1451_v57, %v1585_v62  ;;  %v1477_v13 = vpop.f32.mrb[110].mxu0 }
 0x1dc   :  { %v1201_v1 = vpop.f32.mrb[100].mxu1  ;;  %v1479_v14 = vpop.f32.mrb[111].mxu0 }
 0x1dd   :  { %v1642_v3 = vsel %vm1530_vm2, %v1454_v63, %v1586_v0  ;;  %v1202_v4 = vadd.f32 %v3182_v19, %v1201_v1  ;;  %v1203_v5 = vpop.f32.mrb[101].mxu1 }
 0x1de   :  { %v2336_v7 = vpack.c.bf16 %v1642_v3, %v1641_v2  ;;  %v1204_v8 = vpop.f32.mrb[102].mxu1 }
 0x1df   :  { %v1459_v10 = vadd.f32 %v1458_v36, %v1202_v4  ;;  %v1205_v11 = vadd.f32 %v3182_v19, %v1204_v8  ;;  %v1206_v12 = vpop.f32.mrb[103].mxu1 }
 0x1e0   :  { %2376 = vst [vmem:[%s3329_s3 + $0xc0] sm:$0xff] %v2336_v7  }
 0x1e1   :  { %v1587_v15 = vmul.f32 0.01, %v1459_v10  ;;  %v1462_v16 = vadd.f32 %v1461_v43, %v1205_v11  ;;  %vm1531_vm3 = vcmp.ge.f32.partialorder %v1459_v10, 0.0 }
 0x1e3   :  { %vm1532_vm4 = vcmp.ge.f32.partialorder %v1462_v16, 0.0  ;;  %v1588_v17 = vmul.f32 0.01, %v1462_v16  ;;  %v1643_v20 = vsel %vm1531_vm3, %v1459_v10, %v1587_v15 }
 0x1e4   :  { %v1209_v18 = vpop.f32.mrb[104].mxu1 }
 0x1e5   :  { %v1644_v21 = vsel %vm1532_vm4, %v1462_v16, %v1588_v17  ;;  %v1210_v19 = vadd.f32 %v2688_v22, %v1209_v18  ;;  %v1211_v23 = vpop.f32.mrb[105].mxu1 }
 0x1e6   :  { %v2341_v24 = vpack.c.bf16 %v1644_v21, %v1643_v20  ;;  %v1212_v25 = vpop.f32.mrb[106].mxu1 }
 0x1e7   :  { %v1467_v26 = vadd.f32 %v1466_v53, %v1210_v19  ;;  %v1213_v27 = vadd.f32 %v2688_v22, %v1212_v25  ;;  %v1214_v28 = vpop.f32.mrb[107].mxu1 }
 0x1e8   :  { %2377 = vst [vmem:[%s3329_s3 + $0xc8] sm:$0xff] %v2341_v24  }
 0x1e9   :  { %v1589_v29 = vmul.f32 0.01, %v1467_v26  ;;  %v1470_v30 = vadd.f32 %v1469_v60, %v1213_v27  ;;  %vm1533_vm5 = vcmp.ge.f32.partialorder %v1467_v26, 0.0 }
 0x1eb   :  { %vm1534_vm6 = vcmp.ge.f32.partialorder %v1470_v30, 0.0  ;;  %v1590_v31 = vmul.f32 0.01, %v1470_v30  ;;  %v1645_v33 = vsel %vm1533_vm5, %v1467_v26, %v1589_v29 }
 0x1ec   :  { %v1217_v32 = vpop.f32.mrb[108].mxu1 }
 0x1ed   :  { %v1646_v34 = vsel %vm1534_vm6, %v1470_v30, %v1590_v31  ;;  %v1218_v35 = vadd.f32 %v2688_v22, %v1217_v32  ;;  %v1219_v36 = vpop.f32.mrb[109].mxu1 }
 0x1ee   :  { %v2346_v37 = vpack.c.bf16 %v1646_v34, %v1645_v33  ;;  %v1220_v38 = vpop.f32.mrb[110].mxu1 }
 0x1ef   :  { %v1475_v39 = vadd.f32 %v1474_v6, %v1218_v35  ;;  %v1221_v40 = vadd.f32 %v2688_v22, %v1220_v38  ;;  %v1222_v41 = vpop.f32.mrb[111].mxu1 }
 0x1f0   :  { %2378 = vst [vmem:[%s3329_s3 + $0xd0] sm:$0xff] %v2346_v37  }
 0x1f1   :  { %v1591_v42 = vmul.f32 0.01, %v1475_v39  ;;  %v1478_v43 = vadd.f32 %v1477_v13, %v1221_v40  ;;  %vm1535_vm7 = vcmp.ge.f32.partialorder %v1475_v39, 0.0 }
 0x1f3   :  { %vm1536_vm8 = vcmp.ge.f32.partialorder %v1478_v43, 0.0  ;;  %v1592_v44 = vmul.f32 0.01, %v1478_v43  ;;  %v1647_v45 = vsel %vm1535_vm7, %v1475_v39, %v1591_v42 }
 0x1f5   :  { %v1648_v46 = vsel %vm1536_vm8, %v1478_v43, %v1592_v44 }
 0x1f6   :  { %v2351_v47 = vpack.c.bf16 %v1648_v46, %v1647_v45 }
 0x1f8   :  { %2379 = vst [vmem:[%s3329_s3 + $0xd8] sm:$0xff] %v2351_v47  }

// kernel: pilotnet_forward.9
= control target key start
LH: loop header
LB: loop body
LE: loop exit
PB: predicated region body
PF: predicated region fallthrough
CT: control target
= control target key end

     0   :  { %v890_v0 = vmov 0   ;;  %vm376_vm0 = vcmask 392192   ;;  %s1116_s1 = inlined_call_operand.vmem [shape: bf16[432,128], index: 1, kind: input, shape index: {}]   ;;  %s1117_s0 = inlined_call_operand.vmem [shape: bf16[96,432], index: 0, kind: input, shape index: {}]   ;;  %s1118_s2 = inlined_call_operand.vmem [shape: f32[1,128], index: 2, kind: input, shape index: {}]   ;;  %s1119_s3 = inlined_call_operand.vmem [shape: bf16[96,128], index: 3, kind: output, shape index: {}]  }
   0x1   :  { %476 = vmatprep.subr.bf16.mxu1 %v890_v0  ;;  %v827_v1 = vld [vmem:[%s1116_s1 + $0x80] sm:$0xff]   ;;  %v830_v4 = vld [vmem:[%s1116_s1 + $0x88] sm:$0xff]   ;;  %v833_v7 = vld [vmem:[%s1116_s1 + $0x90] sm:$0xff]  }
   0x2   :  { %v828_v2 = vld [vmem:[%s1116_s1 + $0x40] sm:$0xff]   ;;  %477 = vmatpush1.bf16.msra.mxu1 %v827_v1  ;;  %v831_v5 = vld [vmem:[%s1116_s1 + $0x48] sm:$0xff]   ;;  %v834_v8 = vld [vmem:[%s1116_s1 + $0x50] sm:$0xff]  }
   0x3   :  { %v829_v3 = vld [vmem:[%s1116_s1] sm:$0xff]   ;;  %774 = vmatprep.subr.bf16.mxu0 %v828_v2  ;;  %478 = vmatprep.subr.bf16.mxu1 %v890_v0  ;;  %v832_v6 = vld [vmem:[%s1116_s1 + $0x8] sm:$0xff]   ;;  %v835_v9 = vld [vmem:[%s1116_s1 + $0x10] sm:$0xff]  }
   0x4   :  { %775 = vmatpush3.bf16.msra.mxu0 %v829_v3  ;;  %v836_v10 = vld [vmem:[%s1116_s1 + $0x98] sm:$0xff]   ;;  %v840_v13 = vld [vmem:[%s1116_s1 + $0x60] sm:$0xff]   ;;  %v843_v16 = vld [vmem:[%s1116_s1 + $0x68] sm:$0xff]  }
   0x5   :  { %776 = vmatprep.subr.bf16.mxu0 %v831_v5  ;;  %v837_v11 = vld [vmem:[%s1116_s1 + $0x58] sm:$0xff]   ;;  %v839_v14 = vld [vmem:[%s1116_s1 + $0xa0] sm:$0xff]   ;;  %v842_v17 = vld [vmem:[%s1116_s1 + $0xa8] sm:$0xff]  }
   0x6   :  { %479 = vmatpush1.bf16.msra.mxu1 %v830_v4  ;;  %v838_v12 = vld [vmem:[%s1116_s1 + $0x18] sm:$0xff]   ;;  %v841_v15 = vld [vmem:[%s1116_s1 + $0x20] sm:$0xff]   ;;  %v844_v18 = vld [vmem:[%s1116_s1 + $0x28] sm:$0xff]  }
   0x7   :  { %480 = vmatprep.subr.bf16.mxu1 %v890_v0  ;;  %v846_v19 = vld [vmem:[%s1116_s1 + $0x70] sm:$0xff]   ;;  %v848_v22 = vld [vmem:[%s1116_s1 + $0xb8] sm:$0xff]   ;;  %v851_v26 = vld [vmem:[%s1116_s1 + $0xc0] sm:$0xff]  }
   0x8   :  { %777 = vmatpush3.bf16.msra.mxu0 %v832_v6  ;;  %v845_v20 = vld [vmem:[%s1116_s1 + $0xb0] sm:$0xff]   ;;  %v849_v23 = vld [vmem:[%s1116_s1 + $0x78] sm:$0xff]   ;;  %v855_v30 = vld [vmem:[%s1116_s1 + $0xc8] sm:$0xff]  }
   0x9   :  { %778 = vmatprep.subr.bf16.mxu0 %v834_v8  ;;  %v847_v21 = vld [vmem:[%s1116_s1 + $0x30] sm:$0xff]   ;;  %v850_v25 = vld [vmem:[%s1116_s1 + $0x38] sm:$0xff]   ;;  %v1084_v58 = vld [vmem:[%s1118_s2] ss:$0 sm:$0xff] }
   0xa   :  { %481 = vmatpush1.bf16.msra.mxu1 %v833_v7  ;;  %v854_v24 = vld [vmem:[%s1117_s0 + $0x4] ss:$16 sps:$4 sm:$0xff]   ;;  %v861_v27 = vld [vmem:[%s1117_s0 + $0xc] ss:$16 sps:$4 sm:$0xff]   ;;  %v852_v28 = vld [vmem:[%s1117_s0] ss:$16 sps:$4 sm:$0xff]  }
   0xb   :  { %482 = vmatprep.subr.bf16.mxu1 %v890_v0  ;;  %427 = vmatprep.mubr.bf16.mxu0 %v854_v24  ;;  %v857_v29 = vld [vmem:[%s1117_s0 + $0x24] ss:$16 sps:$4 sm:$0xff]   ;;  %v862_v32 = vld [vmem:[%s1117_s0 + $0x20] ss:$16 sps:$4 sm:$0xff]   ;;  %v859_v34 = vld [vmem:[%s1117_s0 + $0x8] ss:$16 sps:$4 sm:$0xff]  }
   0xc   :  { %779 = vmatpush3.bf16.msra.mxu0 %v835_v9  ;;  %709 = vmatprep.mubr.msk.bf16.mxu1 %vm376_vm0, %v861_v27  ;;  %v856_v31 = vld [vmem:[%s1116_s1 + $0xd0] sm:$0xff]   ;;  %v865_v35 = vld [vmem:[%s1117_s0 + $0x2c] ss:$16 sps:$4 sm:$0xff]   ;;  %v868_v38 = vld [vmem:[%s1117_s0 + $0x28] ss:$16 sps:$4 sm:$0xff]  }
   0xd   :  { %780 = vmatprep.subr.bf16.mxu0 %v837_v11  ;;  %v863_v33 = vld [vmem:[%s1117_s0 + $0x44] ss:$16 sps:$4 sm:$0xff]   ;;  %v867_v36 = vld [vmem:[%s1117_s0 + $0x40] ss:$16 sps:$4 sm:$0xff]   ;;  %v871_v39 = vld [vmem:[%s1117_s0 + $0x4c] ss:$16 sps:$4 sm:$0xff]  }
   0xe   :  { %483 = vmatpush1.bf16.msra.mxu1 %v836_v10  ;;  %v869_v37 = vld [vmem:[%s1117_s0 + $0x64] ss:$16 sps:$4 sm:$0xff]   ;;  %v873_v40 = vld [vmem:[%s1117_s0 + $0x60] ss:$16 sps:$4 sm:$0xff]   ;;  %v874_v42 = vld [vmem:[%s1117_s0 + $0x48] ss:$16 sps:$4 sm:$0xff]  }
   0xf   :  { %484 = vmatprep.subr.bf16.mxu1 %v890_v0  ;;  %v875_v41 = vld [vmem:[%s1117_s0 + $0x84] ss:$16 sps:$4 sm:$0xff]   ;;  %v877_v43 = vld [vmem:[%s1117_s0 + $0x6c] ss:$16 sps:$4 sm:$0xff]   ;;  %v879_v44 = vld [vmem:[%s1117_s0 + $0x80] ss:$16 sps:$4 sm:$0xff]  }
  0x10   :  { %781 = vmatpush3.bf16.msra.mxu0 %v838_v12  ;;  %v881_v45 = vld [vmem:[%s1117_s0 + $0xa4] ss:$16 sps:$4 sm:$0xff]   ;;  %v880_v46 = vld [vmem:[%s1117_s0 + $0x68] ss:$16 sps:$4 sm:$0xff]   ;;  %v883_v47 = vld [vmem:[%s1117_s0 + $0x8c] ss:$16 sps:$4 sm:$0xff]  }
  0x11   :  { %782 = vmatprep.subr.bf16.mxu0 %v840_v13  ;;  %v885_v48 = vld [vmem:[%s1117_s0 + $0xa0] ss:$16 sps:$4 sm:$0xff]   ;;  %v886_v49 = vld [vmem:[%s1117_s0 + $0x88] ss:$16 sps:$4 sm:$0xff]   ;;  %v887_v50 = vld [vmem:[%s1117_s0 + $0xac] ss:$16 sps:$4 sm:$0xff]  }
  0x12   :  { %485 = vmatpush1.bf16.msra.mxu1 %v839_v14  ;;  %v889_v51 = vld [vmem:[%s1117_s0 + $0xa8] ss:$16 sps:$4 sm:$0xff]  }
  0x13   :  { %486 = vmatprep.subr.bf16.mxu1 %v890_v0 }
  0x14   :  { %783 = vmatpush3.bf16.msra.mxu0 %v841_v15 }
  0x15   :  { %784 = vmatprep.subr.bf16.mxu0 %v843_v16 }
  0x16   :  { %487 = vmatpush1.bf16.msra.mxu1 %v842_v17 }
  0x17   :  { %488 = vmatprep.subr.bf16.mxu1 %v890_v0 }
  0x18   :  { %785 = vmatpush3.bf16.msra.mxu0 %v844_v18 }
  0x19   :  { %786 = vmatprep.subr.bf16.mxu0 %v846_v19 }
  0x1a   :  { %489 = vmatpush1.bf16.msra.mxu1 %v845_v20 }
  0x1b   :  { %490 = vmatprep.subr.bf16.mxu1 %v890_v0 }
  0x1c   :  { %787 = vmatpush3.bf16.msra.mxu0 %v847_v21 }
  0x1d   :  { %788 = vmatprep.subr.bf16.mxu0 %v849_v23 }
  0x1e   :  { %491 = vmatpush1.bf16.msra.mxu1 %v848_v22 }
  0x1f   :  { %492 = vmatprep.subr.bf16.mxu1 %v890_v0 }
  0x20   :  { %789 = vmatpush3.bf16.msra.mxu0 %v850_v25 }
  0x22   :  { %493 = vmatpush1.bf16.msra.mxu1 %v851_v26 }
  0x23   :  { %428 = vmatmul.mubr.bf16.vlgmr.msra.gmra.mrb[0].mxu0 %v852_v28  ;;  %494 = vmatprep.subr.bf16.mxu1 %v890_v0 }
  0x24   :  { %435 = vmatprep.mubr.bf16.mxu0 %v857_v29 }
  0x26   :  { %495 = vmatpush1.bf16.msra.mxu1 %v855_v30 }
  0x27   :  { %496 = vmatprep.subr.bf16.mxu1 %v890_v0 }
  0x2a   :  { %497 = vmatpush1.bf16.msra.mxu1 %v856_v31 }
  0x2b   :  { %436 = vmatmul.mubr.bf16.gmra.mrb[4].mxu0 %v862_v32 }
  0x2c   :  { %443 = vmatprep.mubr.bf16.mxu0 %v863_v33 }
  0x2d   :  { %509 = vmatmul.mubr.bf16.vlgmr.msra.gmra.mrb[0].mxu1 %v859_v34 }
  0x2e   :  { %710 = vmatprep.mubr.msk.bf16.mxu1 %vm376_vm0, %v865_v35 }
  0x33   :  { %444 = vmatmul.mubr.bf16.gmra.mrb[8].mxu0 %v867_v36 }
  0x34   :  { %451 = vmatprep.mubr.bf16.mxu0 %v869_v37 }
  0x35   :  { %517 = vmatmul.mubr.bf16.gmra.mrb[4].mxu1 %v868_v38 }
  0x36   :  { %711 = vmatprep.mubr.msk.bf16.mxu1 %vm376_vm0, %v871_v39 }
  0x3b   :  { %452 = vmatmul.mubr.bf16.gmra.mrb[12].mxu0 %v873_v40 }
  0x3c   :  { %459 = vmatprep.mubr.bf16.mxu0 %v875_v41 }
  0x3d   :  { %525 = vmatmul.mubr.bf16.gmra.mrb[8].mxu1 %v874_v42 }
  0x3e   :  { %712 = vmatprep.mubr.msk.bf16.mxu1 %vm376_vm0, %v877_v43 }
  0x43   :  { %460 = vmatmul.mubr.bf16.gmra.mrb[16].mxu0 %v879_v44 }
  0x44   :  { %467 = vmatprep.mubr.bf16.mxu0 %v881_v45 }
  0x45   :  { %533 = vmatmul.mubr.bf16.gmra.mrb[12].mxu1 %v880_v46 }
  0x46   :  { %713 = vmatprep.mubr.msk.bf16.mxu1 %vm376_vm0, %v883_v47 }
  0x4b   :  { %468 = vmatmul.mubr.bf16.gmra.mrb[20].mxu0 %v885_v48 }
  0x4d   :  { %541 = vmatmul.mubr.bf16.gmra.mrb[16].mxu1 %v886_v49 }
  0x4e   :  { %714 = vmatprep.mubr.msk.bf16.mxu1 %vm376_vm0, %v887_v50 }
  0x55   :  { %549 = vmatmul.mubr.bf16.gmra.mrb[20].mxu1 %v889_v51 }
  0xf6   :  { %v790_v52 = vpop.f32.mrb[0].mxu0 }
  0xf7   :  { %v791_v53 = vpop.f32.mrb[1].mxu0 }
  0xf8   :  { %v792_v54 = vadd.f32 %v791_v53, %v790_v52  ;;  %v793_v55 = vpop.f32.mrb[2].mxu0 }
  0xf9   :  { %v794_v56 = vpop.f32.mrb[3].mxu0 }
  0xfa   :  { %v795_v57 = vadd.f32 %v794_v56, %v793_v55  ;;  %v430_v59 = vadd.f32 %v792_v54, %v1084_v58 }
  0xfc   :  { %v433_v3 = vadd.f32 %v795_v57, %v1084_v58 }
  0xfe   :  { %v796_v60 = vpop.f32.mrb[4].mxu0 }
  0xff   :  { %v797_v61 = vpop.f32.mrb[5].mxu0 }
 0x100   :  { %v510_v62 = vpop.f32.mrb[0].mxu1  ;;  %v798_v63 = vadd.f32 %v797_v61, %v796_v60  ;;  %v799_v0 = vpop.f32.mrb[6].mxu0 }
 0x101   :  { %v511_v1 = vadd.f32 %v510_v62, %v430_v59  ;;  %v512_v2 = vpop.f32.mrb[1].mxu1  ;;  %v800_v4 = vpop.f32.mrb[7].mxu0 }
 0x102   :  { %v513_v5 = vpop.f32.mrb[2].mxu1  ;;  %v801_v6 = vadd.f32 %v800_v4, %v799_v0  ;;  %v438_v11 = vadd.f32 %v798_v63, %v1084_v58 }
 0x103   :  { %v569_v7 = vmul.f32 0.01, %v511_v1  ;;  %v514_v8 = vadd.f32 %v513_v5, %v433_v3  ;;  %v515_v9 = vpop.f32.mrb[3].mxu1  ;;  %vm557_vm1 = vcmp.ge.f32.partialorder %v511_v1, 0.0 }
 0x104   :  { %v441_v22 = vadd.f32 %v801_v6, %v1084_v58 }
 0x105   :  { %vm558_vm2 = vcmp.ge.f32.partialorder %v514_v8, 0.0  ;;  %v570_v10 = vmul.f32 0.01, %v514_v8  ;;  %v581_v13 = vsel %vm557_vm1, %v511_v1, %v569_v7 }
 0x106   :  { %v802_v12 = vpop.f32.mrb[8].mxu0 }
 0x107   :  { %v582_v14 = vsel %vm558_vm2, %v514_v8, %v570_v10  ;;  %v803_v15 = vpop.f32.mrb[9].mxu0 }
 0x108   :  { %v742_v16 = vpack.c.bf16 %v582_v14, %v581_v13  ;;  %v518_v17 = vpop.f32.mrb[4].mxu1  ;;  %v804_v18 = vadd.f32 %v803_v15, %v802_v12  ;;  %v805_v19 = vpop.f32.mrb[10].mxu0 }
 0x109   :  { %v519_v20 = vadd.f32 %v518_v17, %v438_v11  ;;  %v520_v21 = vpop.f32.mrb[5].mxu1  ;;  %v806_v23 = vpop.f32.mrb[11].mxu0 }
 0x10a   :  { %743 = vst [vmem:[%s1119_s3] sm:$0xff] %v742_v16   ;;  %v521_v24 = vpop.f32.mrb[6].mxu1  ;;  %v807_v25 = vadd.f32 %v806_v23, %v805_v19  ;;  %v446_v30 = vadd.f32 %v804_v18, %v1084_v58 }
 0x10b   :  { %v571_v26 = vmul.f32 0.01, %v519_v20  ;;  %v522_v27 = vadd.f32 %v521_v24, %v441_v22  ;;  %v523_v28 = vpop.f32.mrb[7].mxu1  ;;  %vm559_vm3 = vcmp.ge.f32.partialorder %v519_v20, 0.0 }
 0x10c   :  { %v449_v41 = vadd.f32 %v807_v25, %v1084_v58 }
 0x10d   :  { %vm560_vm4 = vcmp.ge.f32.partialorder %v522_v27, 0.0  ;;  %v572_v29 = vmul.f32 0.01, %v522_v27  ;;  %v583_v32 = vsel %vm559_vm3, %v519_v20, %v571_v26 }
 0x10e   :  { %v808_v31 = vpop.f32.mrb[12].mxu0 }
 0x10f   :  { %v584_v33 = vsel %vm560_vm4, %v522_v27, %v572_v29  ;;  %v809_v34 = vpop.f32.mrb[13].mxu0 }
 0x110   :  { %v747_v35 = vpack.c.bf16 %v584_v33, %v583_v32  ;;  %v526_v36 = vpop.f32.mrb[8].mxu1  ;;  %v810_v37 = vadd.f32 %v809_v34, %v808_v31  ;;  %v811_v38 = vpop.f32.mrb[14].mxu0 }
 0x111   :  { %v527_v39 = vadd.f32 %v526_v36, %v446_v30  ;;  %v528_v40 = vpop.f32.mrb[9].mxu1  ;;  %v812_v42 = vpop.f32.mrb[15].mxu0 }
 0x112   :  { %769 = vst [vmem:[%s1119_s3 + $0x8] sm:$0xff] %v747_v35   ;;  %v529_v43 = vpop.f32.mrb[10].mxu1  ;;  %v813_v44 = vadd.f32 %v812_v42, %v811_v38  ;;  %v454_v49 = vadd.f32 %v810_v37, %v1084_v58 }
 0x113   :  { %v573_v45 = vmul.f32 0.01, %v527_v39  ;;  %v530_v46 = vadd.f32 %v529_v43, %v449_v41  ;;  %v531_v47 = vpop.f32.mrb[11].mxu1  ;;  %vm561_vm5 = vcmp.ge.f32.partialorder %v527_v39, 0.0 }
 0x114   :  { %v457_v61 = vadd.f32 %v813_v44, %v1084_v58 }
 0x115   :  { %vm562_vm6 = vcmp.ge.f32.partialorder %v530_v46, 0.0  ;;  %v574_v48 = vmul.f32 0.01, %v530_v46  ;;  %v585_v51 = vsel %vm561_vm5, %v527_v39, %v573_v45 }
 0x116   :  { %v814_v50 = vpop.f32.mrb[16].mxu0 }
 0x117   :  { %v586_v52 = vsel %vm562_vm6, %v530_v46, %v574_v48  ;;  %v815_v53 = vpop.f32.mrb[17].mxu0 }
 0x118   :  { %v752_v54 = vpack.c.bf16 %v586_v52, %v585_v51  ;;  %v534_v55 = vpop.f32.mrb[12].mxu1  ;;  %v816_v56 = vadd.f32 %v815_v53, %v814_v50  ;;  %v817_v57 = vpop.f32.mrb[18].mxu0 }
 0x119   :  { %v535_v59 = vadd.f32 %v534_v55, %v454_v49  ;;  %v536_v60 = vpop.f32.mrb[13].mxu1  ;;  %v818_v62 = vpop.f32.mrb[19].mxu0 }
 0x11a   :  { %770 = vst [vmem:[%s1119_s3 + $0x10] sm:$0xff] %v752_v54   ;;  %v537_v63 = vpop.f32.mrb[14].mxu1  ;;  %v819_v0 = vadd.f32 %v818_v62, %v817_v57  ;;  %v462_v5 = vadd.f32 %v816_v56, %v1084_v58 }
 0x11b   :  { %v575_v1 = vmul.f32 0.01, %v535_v59  ;;  %v538_v2 = vadd.f32 %v537_v63, %v457_v61  ;;  %v539_v3 = vpop.f32.mrb[15].mxu1  ;;  %vm563_vm7 = vcmp.ge.f32.partialorder %v535_v59, 0.0 }
 0x11c   :  { %v465_v16 = vadd.f32 %v819_v0, %v1084_v58 }
 0x11d   :  { %vm564_vm8 = vcmp.ge.f32.partialorder %v538_v2, 0.0  ;;  %v576_v4 = vmul.f32 0.01, %v538_v2  ;;  %v587_v7 = vsel %vm563_vm7, %v535_v59, %v575_v1 }
 0x11e   :  { %v820_v6 = vpop.f32.mrb[20].mxu0 }
 0x11f   :  { %v588_v8 = vsel %vm564_vm8, %v538_v2, %v576_v4  ;;  %v821_v9 = vpop.f32.mrb[21].mxu0 }
 0x120   :  { %v757_v10 = vpack.c.bf16 %v588_v8, %v587_v7  ;;  %v542_v11 = vpop.f32.mrb[16].mxu1  ;;  %v822_v12 = vadd.f32 %v821_v9, %v820_v6  ;;  %v823_v13 = vpop.f32.mrb[22].mxu0 }
 0x121   :  { %v543_v14 = vadd.f32 %v542_v11, %v462_v5  ;;  %v544_v15 = vpop.f32.mrb[17].mxu1  ;;  %v824_v17 = vpop.f32.mrb[23].mxu0 }
 0x122   :  { %771 = vst [vmem:[%s1119_s3 + $0x18] sm:$0xff] %v757_v10   ;;  %v545_v18 = vpop.f32.mrb[18].mxu1  ;;  %v825_v19 = vadd.f32 %v824_v17, %v823_v13  ;;  %v470_v24 = vadd.f32 %v822_v12, %v1084_v58 }
 0x123   :  { %v577_v20 = vmul.f32 0.01, %v543_v14  ;;  %v546_v21 = vadd.f32 %v545_v18, %v465_v16  ;;  %v547_v22 = vpop.f32.mrb[19].mxu1  ;;  %vm565_vm9 = vcmp.ge.f32.partialorder %v543_v14, 0.0 }
 0x124   :  { %v473_v31 = vadd.f32 %v825_v19, %v1084_v58 }
 0x125   :  { %vm566_vm10 = vcmp.ge.f32.partialorder %v546_v21, 0.0  ;;  %v578_v23 = vmul.f32 0.01, %v546_v21  ;;  %v589_v25 = vsel %vm565_vm9, %v543_v14, %v577_v20 }
 0x127   :  { %v590_v26 = vsel %vm566_vm10, %v546_v21, %v578_v23 }
 0x128   :  { %v762_v27 = vpack.c.bf16 %v590_v26, %v589_v25  ;;  %v550_v28 = vpop.f32.mrb[20].mxu1 }
 0x129   :  { %v551_v29 = vadd.f32 %v550_v28, %v470_v24  ;;  %v552_v30 = vpop.f32.mrb[21].mxu1 }
 0x12a   :  { %772 = vst [vmem:[%s1119_s3 + $0x20] sm:$0xff] %v762_v27   ;;  %v553_v32 = vpop.f32.mrb[22].mxu1 }
 0x12b   :  { %v579_v33 = vmul.f32 0.01, %v551_v29  ;;  %v554_v34 = vadd.f32 %v553_v32, %v473_v31  ;;  %v555_v35 = vpop.f32.mrb[23].mxu1  ;;  %vm567_vm11 = vcmp.ge.f32.partialorder %v551_v29, 0.0 }
 0x12d   :  { %vm568_vm12 = vcmp.ge.f32.partialorder %v554_v34, 0.0  ;;  %v580_v36 = vmul.f32 0.01, %v554_v34  ;;  %v591_v37 = vsel %vm567_vm11, %v551_v29, %v579_v33 }
 0x12f   :  { %v592_v38 = vsel %vm568_vm12, %v554_v34, %v580_v36 }
 0x130   :  { %v767_v39 = vpack.c.bf16 %v592_v38, %v591_v37 }
 0x132   :  { %773 = vst [vmem:[%s1119_s3 + $0x28] sm:$0xff] %v767_v39  }

// kernel: pilotnet_forward.10
= control target key start
LH: loop header
LB: loop body
LE: loop exit
PB: predicated region body
PF: predicated region fallthrough
CT: control target
= control target key end

     0   :  { %v646_v33 = vmov 0.0   ;;  %vm647_vm0 = vmmov 0   ;;  %vm341_vm1 = vcmask 523264   ;;  %s797_s1 = inlined_call_operand.vmem [shape: bf16[576,128], index: 1, kind: input, shape index: {}]   ;;  %s798_s0 = inlined_call_operand.vmem [shape: bf16[16,576], index: 0, kind: input, shape index: {}]   ;;  %s799_s2 = inlined_call_operand.vmem [shape: f32[1,128], index: 2, kind: input, shape index: {}]   ;;  %s800_s3 = inlined_call_operand.vmem [shape: bf16[16,128], index: 3, kind: output, shape index: {}]  }
   0x1   :  { %v603_v0 = vld [vmem:[%s797_s1 + $0x40] sm:$0xff]   ;;  %v607_v4 = vld [vmem:[%s797_s1 + $0x48] sm:$0xff]   ;;  %v611_v8 = vld [vmem:[%s797_s1 + $0x50] sm:$0xff]  }
   0x2   :  { %v604_v1 = vld [vmem:[%s797_s1] sm:$0xff]   ;;  %540 = vmatprep.subr.bf16.mxu0 %v603_v0  ;;  %v608_v5 = vld [vmem:[%s797_s1 + $0x8] sm:$0xff]   ;;  %v612_v9 = vld [vmem:[%s797_s1 + $0x10] sm:$0xff]  }
   0x3   :  { %v605_v2 = vld [vmem:[%s797_s1 + $0xc0] sm:$0xff]   ;;  %541 = vmatpush3.bf16.msra.mxu0 %v604_v1  ;;  %v609_v6 = vld [vmem:[%s797_s1 + $0xc8] sm:$0xff]   ;;  %v613_v10 = vld [vmem:[%s797_s1 + $0xd0] sm:$0xff]  }
   0x4   :  { %v606_v3 = vld [vmem:[%s797_s1 + $0x80] sm:$0xff]   ;;  %562 = vmatprep.subr.bf16.mxu1 %v605_v2  ;;  %542 = vmatprep.subr.bf16.mxu0 %v607_v4  ;;  %v610_v7 = vld [vmem:[%s797_s1 + $0x88] sm:$0xff]   ;;  %v614_v11 = vld [vmem:[%s797_s1 + $0x90] sm:$0xff]  }
   0x5   :  { %563 = vmatpush3.bf16.msra.mxu1 %v606_v3  ;;  %v615_v12 = vld [vmem:[%s797_s1 + $0x58] sm:$0xff]   ;;  %v619_v16 = vld [vmem:[%s797_s1 + $0x60] sm:$0xff]   ;;  %v623_v20 = vld [vmem:[%s797_s1 + $0x68] sm:$0xff]  }
   0x6   :  { %564 = vmatprep.subr.bf16.mxu1 %v609_v6  ;;  %v616_v13 = vld [vmem:[%s797_s1 + $0x18] sm:$0xff]   ;;  %v620_v17 = vld [vmem:[%s797_s1 + $0x20] sm:$0xff]   ;;  %v624_v21 = vld [vmem:[%s797_s1 + $0x28] sm:$0xff]  }
   0x7   :  { %543 = vmatpush3.bf16.msra.mxu0 %v608_v5  ;;  %v617_v14 = vld [vmem:[%s797_s1 + $0xd8] sm:$0xff]   ;;  %v621_v18 = vld [vmem:[%s797_s1 + $0xe0] sm:$0xff]   ;;  %v625_v22 = vld [vmem:[%s797_s1 + $0xe8] sm:$0xff]  }
   0x8   :  { %544 = vmatprep.subr.bf16.mxu0 %v611_v8  ;;  %v618_v15 = vld [vmem:[%s797_s1 + $0x98] sm:$0xff]   ;;  %v622_v19 = vld [vmem:[%s797_s1 + $0xa0] sm:$0xff]   ;;  %v626_v23 = vld [vmem:[%s797_s1 + $0xa8] sm:$0xff]  }
   0x9   :  { %565 = vmatpush3.bf16.msra.mxu1 %v610_v7  ;;  %v627_v24 = vld [vmem:[%s797_s1 + $0x70] sm:$0xff]   ;;  %v631_v28 = vld [vmem:[%s797_s1 + $0x78] sm:$0xff]   ;;  %v640_v36 = vld [vmem:[%s798_s0 + $0xc] ss:$20 sps:$4 sm:$0xff]  }
   0xa   :  { %566 = vmatprep.subr.bf16.mxu1 %v613_v10  ;;  %v628_v25 = vld [vmem:[%s797_s1 + $0x30] sm:$0xff]   ;;  %v632_v29 = vld [vmem:[%s797_s1 + $0x38] sm:$0xff]   ;;  %v641_v37 = vld [vmem:[%s797_s1 + $0x100] sm:$0xff]   ;;  %418 = vmatprep.mubr.bf16.mxu1 %v640_v36 }
   0xb   :  { %545 = vmatpush3.bf16.msra.mxu0 %v612_v9  ;;  %v629_v26 = vld [vmem:[%s797_s1 + $0xf0] sm:$0xff]   ;;  %v633_v30 = vld [vmem:[%s797_s1 + $0xf8] sm:$0xff]   ;;  %v642_v38 = vld [vmem:[%s797_s1 + $0x108] sm:$0xff]  }
   0xc   :  { %546 = vmatprep.subr.bf16.mxu0 %v615_v12  ;;  %v630_v27 = vld [vmem:[%s797_s1 + $0xb0] sm:$0xff]   ;;  %v636_v32 = vld [vmem:[%s798_s0 + $0x4] ss:$20 sps:$4 sm:$0xff]   ;;  %v638_v35 = vld [vmem:[%s798_s0 + $0x8] ss:$20 sps:$4 sm:$0xff]  }
   0xd   :  { %567 = vmatpush3.bf16.msra.mxu1 %v614_v11  ;;  %v634_v31 = vld [vmem:[%s798_s0] ss:$20 sps:$4 sm:$0xff]   ;;  %v637_v34 = vld [vmem:[%s797_s1 + $0xb8] sm:$0xff]   ;;  %377 = vmatprep.mubr.bf16.mxu0 %v636_v32  ;;  %v645_v41 = vld [vmem:[%s798_s0 + $0x10] ss:$20 sps:$4 sm:$0xff]  }
   0xe   :  { %568 = vmatprep.subr.bf16.mxu1 %v617_v14  ;;  %v643_v39 = vld [vmem:[%s797_s1 + $0x110] sm:$0xff]   ;;  %v644_v40 = vld [vmem:[%s797_s1 + $0x118] sm:$0xff]   ;;  %v488_v43 = vld [vmem:[%s799_s2] ss:$0 sm:$0xff] }
   0xf   :  { %547 = vmatpush3.bf16.msra.mxu0 %v616_v13 }
  0x10   :  { %548 = vmatprep.subr.bf16.mxu0 %v619_v16 }
  0x11   :  { %569 = vmatpush3.bf16.msra.mxu1 %v618_v15 }
  0x12   :  { %570 = vmatprep.subr.bf16.mxu1 %v621_v18 }
  0x13   :  { %549 = vmatpush3.bf16.msra.mxu0 %v620_v17 }
  0x14   :  { %550 = vmatprep.subr.bf16.mxu0 %v623_v20 }
  0x15   :  { %571 = vmatpush3.bf16.msra.mxu1 %v622_v19 }
  0x16   :  { %572 = vmatprep.subr.bf16.mxu1 %v625_v22 }
  0x17   :  { %551 = vmatpush3.bf16.msra.mxu0 %v624_v21 }
  0x18   :  { %552 = vmatprep.subr.bf16.mxu0 %v627_v24 }
  0x19   :  { %573 = vmatpush3.bf16.msra.mxu1 %v626_v23 }
  0x1a   :  { %574 = vmatprep.subr.bf16.mxu1 %v629_v26 }
  0x1b   :  { %553 = vmatpush3.bf16.msra.mxu0 %v628_v25 }
  0x1c   :  { %554 = vmatprep.subr.bf16.mxu0 %v631_v28 }
  0x1d   :  { %575 = vmatpush3.bf16.msra.mxu1 %v630_v27 }
  0x1e   :  { %576 = vmatprep.subr.bf16.mxu1 %v633_v30 }
  0x1f   :  { %555 = vmatpush3.bf16.msra.mxu0 %v632_v29 }
  0x20   :  { %589 = vmatprep.subr.bf16.mxu0 %v646_v33 }
  0x21   :  { %577 = vmatpush3.bf16.msra.mxu1 %v637_v34 }
  0x22   :  { %378 = vmatmul.mubr.bf16.vlgmr.msra.gmra.mrb[0].mxu0 %v634_v31 }
  0x23   :  { %597 = vmatprep.mubr.msk.bf16.mxu0 %vm647_vm0, %v646_v33  ;;  %590 = vmatpush3.bf16.msra.mxu0 %v641_v37 }
  0x24   :  { %419 = vmatmul.mubr.bf16.vlgmr.msra.gmra.mrb[0].mxu1 %v638_v35  ;;  %591 = vmatprep.subr.bf16.mxu0 %v646_v33 }
  0x27   :  { %592 = vmatpush3.bf16.msra.mxu0 %v642_v38 }
  0x28   :  { %593 = vmatprep.subr.bf16.mxu0 %v646_v33 }
  0x2b   :  { %594 = vmatpush3.bf16.msra.mxu0 %v643_v39 }
  0x2c   :  { %595 = vmatprep.subr.bf16.mxu0 %v646_v33 }
  0x2f   :  { %596 = vmatpush3.bf16.msra.mxu0 %v644_v40 }
  0x32   :  { %598 = vmatmul.mubr.msk.bf16.vlgmr.msra.gmra.mrb[4].mxu0 %vm341_vm1, %v645_v41 }
  0xf5   :  { %v556_v42 = vpop.f32.mrb[0].mxu0 }
  0xf6   :  { %v557_v44 = vpop.f32.mrb[1].mxu0 }
  0xf7   :  { %v558_v45 = vadd.f32 %v557_v44, %v556_v42  ;;  %v559_v46 = vpop.f32.mrb[2].mxu0  ;;  %v578_v47 = vpop.f32.mrb[0].mxu1 }
  0xf8   :  { %v560_v48 = vpop.f32.mrb[3].mxu0  ;;  %v579_v51 = vpop.f32.mrb[1].mxu1 }
  0xf9   :  { %v380_v49 = vadd.f32 %v558_v45, %v488_v43  ;;  %v561_v50 = vadd.f32 %v560_v48, %v559_v46  ;;  %v580_v52 = vadd.f32 %v579_v51, %v578_v47  ;;  %v581_v53 = vpop.f32.mrb[2].mxu1 }
  0xfa   :  { %v582_v55 = vpop.f32.mrb[3].mxu1 }
  0xfb   :  { %v383_v54 = vadd.f32 %v561_v50, %v488_v43  ;;  %v583_v56 = vadd.f32 %v582_v55, %v581_v53  ;;  %v421_v57 = vadd.f32 %v580_v52, %v380_v49 }
  0xfd   :  { %v424_v58 = vadd.f32 %v583_v56, %v383_v54 }
 0x105   :  { %v461_v59 = vpop.f32.mrb[4].mxu0 }
 0x106   :  { %v462_v60 = vadd.f32 %v461_v59, %v421_v57  ;;  %v599_v61 = vpop.f32.mrb[5].mxu0 }
 0x107   :  { %v464_v62 = vpop.f32.mrb[6].mxu0 }
 0x108   :  { %v470_v63 = vmul.f32 0.01, %v462_v60  ;;  %v465_v0 = vadd.f32 %v464_v62, %v424_v58  ;;  %v600_v1 = vpop.f32.mrb[7].mxu0  ;;  %vm468_vm2 = vcmp.ge.f32.partialorder %v462_v60, 0.0 }
 0x10a   :  { %vm469_vm3 = vcmp.ge.f32.partialorder %v465_v0, 0.0  ;;  %v471_v2 = vmul.f32 0.01, %v465_v0  ;;  %v472_v3 = vsel %vm468_vm2, %v462_v60, %v470_v63 }
 0x10c   :  { %v473_v4 = vsel %vm469_vm3, %v465_v0, %v471_v2 }
 0x10d   :  { %v538_v5 = vpack.c.bf16 %v473_v4, %v472_v3 }
 0x10f   :  { %539 = vst [vmem:[%s800_s3] sm:$0xff] %v538_v5  }

// kernel: pilotnet_forward.11
= control target key start
LH: loop header
LB: loop body
LE: loop exit
PB: predicated region body
PF: predicated region fallthrough
CT: control target
= control target key end

     0   :  { %v945_v0 = vmov 0   ;;  %vm279_vm0 = vcmask 523264   ;;  %v946_v33 = vmov 0.0   ;;  %vm947_vm1 = vmmov 0   ;;  %s1217_s1 = inlined_call_operand.vmem [shape: bf16[448,128], index: 1, kind: input, shape index: {}]   ;;  %s1218_s0 = inlined_call_operand.vmem [shape: bf16[8,448], index: 0, kind: input, shape index: {}]   ;;  %s1219_s3 = inlined_call_operand.vmem [shape: bf16[128,128], index: 3, kind: input, shape index: {}]   ;;  %s1220_s5 = inlined_call_operand.vmem [shape: bf16[128,128], index: 5, kind: input, shape index: {}]   ;;  %s1221_s2 = inlined_call_operand.vmem [shape: f32[1,128], index: 2, kind: input, shape index: {}]   ;;  %s1222_s7 = inlined_call_operand.vmem [shape: bf16[128,128], index: 7, kind: input, shape index: {}]   ;;  %s1223_s4 = inlined_call_operand.vmem [shape: f32[1,128], index: 4, kind: input, shape index: {}]   ;;  %s1224_s6 = inlined_call_operand.vmem [shape: f32[1,128], index: 6, kind: input, shape index: {}]   ;;  %s1225_s8 = inlined_call_operand.vmem [shape: f32[1,128], index: 8, kind: input, shape index: {}]   ;;  %s1226_s9 = inlined_call_operand.vmem [shape: f32[8,128], index: 9, kind: output, shape index: {}]  }
   0x1   :  { %323 = vmatprep.subr.bf16.mxu1 %v945_v0  ;;  %v889_v1 = vld [vmem:[%s1217_s1 + $0x80] sm:$0xff]   ;;  %v890_v2 = vld [vmem:[%s1217_s1 + $0x88] sm:$0xff]   ;;  %v893_v5 = vld [vmem:[%s1217_s1 + $0x90] sm:$0xff]  }
   0x2   :  { %324 = vmatpush1.bf16.msra.mxu1 %v889_v1  ;;  %v891_v3 = vld [vmem:[%s1217_s1 + $0x40] sm:$0xff]   ;;  %v894_v6 = vld [vmem:[%s1217_s1 + $0x48] sm:$0xff]   ;;  %v897_v8 = vld [vmem:[%s1217_s1 + $0x50] sm:$0xff]  }
   0x3   :  { %325 = vmatprep.subr.bf16.mxu1 %v945_v0  ;;  %v892_v4 = vld [vmem:[%s1217_s1] sm:$0xff]   ;;  %777 = vmatprep.subr.bf16.mxu0 %v891_v3  ;;  %v895_v7 = vld [vmem:[%s1217_s1 + $0x8] sm:$0xff]   ;;  %v898_v9 = vld [vmem:[%s1217_s1 + $0x10] sm:$0xff]  }
   0x4   :  { %778 = vmatpush3.bf16.msra.mxu0 %v892_v4  ;;  %v896_v10 = vld [vmem:[%s1217_s1 + $0x98] sm:$0xff]   ;;  %v899_v12 = vld [vmem:[%s1217_s1 + $0xa0] sm:$0xff]   ;;  %v902_v15 = vld [vmem:[%s1217_s1 + $0xa8] sm:$0xff]  }
   0x5   :  { %779 = vmatprep.subr.bf16.mxu0 %v894_v6  ;;  %v900_v11 = vld [vmem:[%s1217_s1 + $0x58] sm:$0xff]   ;;  %v903_v14 = vld [vmem:[%s1217_s1 + $0x60] sm:$0xff]   ;;  %v906_v17 = vld [vmem:[%s1217_s1 + $0x68] sm:$0xff]  }
   0x6   :  { %326 = vmatpush1.bf16.msra.mxu1 %v890_v2  ;;  %v901_v13 = vld [vmem:[%s1217_s1 + $0x18] sm:$0xff]   ;;  %v904_v16 = vld [vmem:[%s1217_s1 + $0x20] sm:$0xff]   ;;  %v905_v18 = vld [vmem:[%s1217_s1 + $0xb0] sm:$0xff]  }
   0x7   :  { %327 = vmatprep.subr.bf16.mxu1 %v945_v0  ;;  %v907_v19 = vld [vmem:[%s1217_s1 + $0x28] sm:$0xff]   ;;  %v909_v20 = vld [vmem:[%s1217_s1 + $0x70] sm:$0xff]   ;;  %v908_v21 = vld [vmem:[%s1217_s1 + $0xb8] sm:$0xff]  }
   0x8   :  { %780 = vmatpush3.bf16.msra.mxu0 %v895_v7  ;;  %v910_v22 = vld [vmem:[%s1217_s1 + $0x30] sm:$0xff]   ;;  %v912_v23 = vld [vmem:[%s1217_s1 + $0x78] sm:$0xff]   ;;  %v33_v24 = vld [vmem:[%s1218_s0] sm:$0xff] }
   0x9   :  { %781 = vmatprep.subr.bf16.mxu0 %v897_v8  ;;  %v718_v25 = vcombine.high %v33_v24, %v33_v24  ;;  %v34_v26 = vld [vmem:[%s1218_s0 + $0x8] sm:$0xff]  ;;  %v913_v27 = vld [vmem:[%s1217_s1 + $0x38] sm:$0xff]   ;;  %v911_v29 = vld [vmem:[%s1217_s1 + $0xc0] sm:$0xff]   ;;  %v717_v31 = vcombine.low %v33_v24, %v33_v24 }
   0xa   :  { %328 = vmatpush1.bf16.msra.mxu1 %v893_v5  ;;  %v720_v28 = vcombine.high %v34_v26, %v34_v26  ;;  %v914_v30 = vld [vmem:[%s1217_s1 + $0xc8] sm:$0xff]   ;;  %v921_v32 = vld [vmem:[%s1219_s3] sm:$0xff]   ;;  %v917_v35 = vld [vmem:[%s1217_s1 + $0xd0] sm:$0xff]   ;;  %v719_v38 = vcombine.low %v34_v26, %v34_v26 }
   0xb   :  { %329 = vmatprep.subr.bf16.mxu1 %v945_v0  ;;  %315 = vmatprep.mubr.bf16.mxu0 %v718_v25  ;;  %v922_v34 = vld [vmem:[%s1219_s3 + $0x8] sm:$0xff]   ;;  %v923_v36 = vld [vmem:[%s1219_s3 + $0x10] sm:$0xff]   ;;  %v918_v37 = vld [vmem:[%s1217_s1 + $0xd8] sm:$0xff]  }
   0xc   :  { %782 = vmatpush3.bf16.msra.mxu0 %v898_v9  ;;  %749 = vmatprep.mubr.msk.bf16.mxu1 %vm279_vm0, %v720_v28  ;;  %v924_v39 = vld [vmem:[%s1219_s3 + $0x18] sm:$0xff]   ;;  %v925_v40 = vld [vmem:[%s1219_s3 + $0x20] sm:$0xff]   ;;  %v926_v41 = vld [vmem:[%s1219_s3 + $0x28] sm:$0xff]  }
   0xd   :  { %783 = vmatprep.subr.bf16.mxu0 %v900_v11  ;;  %v927_v42 = vld [vmem:[%s1219_s3 + $0x30] sm:$0xff]   ;;  %v928_v43 = vld [vmem:[%s1219_s3 + $0x38] sm:$0xff]   ;;  %v929_v44 = vld [vmem:[%s1220_s5] sm:$0xff]  }
   0xe   :  { %330 = vmatpush1.bf16.msra.mxu1 %v896_v10  ;;  %v930_v45 = vld [vmem:[%s1220_s5 + $0x8] sm:$0xff]   ;;  %v931_v46 = vld [vmem:[%s1220_s5 + $0x10] sm:$0xff]   ;;  %v932_v47 = vld [vmem:[%s1220_s5 + $0x18] sm:$0xff]  }
   0xf   :  { %331 = vmatprep.subr.bf16.mxu1 %v945_v0  ;;  %v933_v48 = vld [vmem:[%s1220_s5 + $0x20] sm:$0xff]   ;;  %v934_v49 = vld [vmem:[%s1220_s5 + $0x28] sm:$0xff]   ;;  %v935_v1 = vld [vmem:[%s1220_s5 + $0x30] sm:$0xff]  }
  0x10   :  { %784 = vmatpush3.bf16.msra.mxu0 %v901_v13  ;;  %v716_v55 = vld [vmem:[%s1221_s2] ss:$0 sm:$0xff]  ;;  %v936_v2 = vld [vmem:[%s1220_s5 + $0x38] sm:$0xff]   ;;  %v938_v4 = vld [vmem:[%s1222_s7 + $0x8] sm:$0xff]  }
  0x11   :  { %785 = vmatprep.subr.bf16.mxu0 %v903_v14  ;;  %v937_v3 = vld [vmem:[%s1222_s7] sm:$0xff]   ;;  %v939_v5 = vld [vmem:[%s1222_s7 + $0x10] sm:$0xff]   ;;  %v940_v6 = vld [vmem:[%s1222_s7 + $0x18] sm:$0xff]  }
  0x12   :  { %332 = vmatpush1.bf16.msra.mxu1 %v899_v12  ;;  %v941_v7 = vld [vmem:[%s1222_s7 + $0x20] sm:$0xff]   ;;  %v942_v8 = vld [vmem:[%s1222_s7 + $0x28] sm:$0xff]  }
  0x13   :  { %333 = vmatprep.subr.bf16.mxu1 %v945_v0  ;;  %v750_v9 = vld [vmem:[%s1223_s4] ss:$0 sm:$0xff] }
  0x14   :  { %786 = vmatpush3.bf16.msra.mxu0 %v904_v16 }
  0x15   :  { %787 = vmatprep.subr.bf16.mxu0 %v906_v17 }
  0x16   :  { %334 = vmatpush1.bf16.msra.mxu1 %v902_v15 }
  0x17   :  { %335 = vmatprep.subr.bf16.mxu1 %v945_v0 }
  0x18   :  { %788 = vmatpush3.bf16.msra.mxu0 %v907_v19  ;;  %v944_v19 = vld [vmem:[%s1222_s7 + $0x38] sm:$0xff]  }
  0x19   :  { %789 = vmatprep.subr.bf16.mxu0 %v909_v20  ;;  %v759_v20 = vld [vmem:[%s1224_s6] ss:$0 sm:$0xff] }
  0x1a   :  { %336 = vmatpush1.bf16.msra.mxu1 %v905_v18  ;;  %v943_v18 = vld [vmem:[%s1222_s7 + $0x30] sm:$0xff]  }
  0x1b   :  { %337 = vmatprep.subr.bf16.mxu1 %v945_v0 }
  0x1c   :  { %790 = vmatpush3.bf16.msra.mxu0 %v910_v22 }
  0x1d   :  { %791 = vmatprep.subr.bf16.mxu0 %v912_v23 }
  0x1e   :  { %338 = vmatpush1.bf16.msra.mxu1 %v908_v21 }
  0x1f   :  { %339 = vmatprep.subr.bf16.mxu1 %v945_v0 }
  0x20   :  { %792 = vmatpush3.bf16.msra.mxu0 %v913_v27 }
  0x21   :  { %826 = vmatprep.subr.bf16.mxu0 %v946_v33 }
  0x22   :  { %340 = vmatpush1.bf16.msra.mxu1 %v911_v29  ;;  %v768_v29 = vld [vmem:[%s1225_s8] ss:$0 sm:$0xff] }
  0x23   :  { %341 = vmatprep.subr.bf16.mxu1 %v945_v0  ;;  %316 = vmatmul.mubr.bf16.vlgmr.msra.gmra.mrb[0].mxu0 %v717_v31 }
  0x24   :  { %827 = vmatpush3.bf16.msra.mxu0 %v921_v32  ;;  %842 = vmatprep.mubr.msk.bf16.mxu0 %vm947_vm1, %v946_v33 }
  0x25   :  { %828 = vmatprep.subr.bf16.mxu0 %v946_v33 }
  0x26   :  { %342 = vmatpush1.bf16.msra.mxu1 %v914_v30 }
  0x27   :  { %343 = vmatprep.subr.bf16.mxu1 %v945_v0 }
  0x28   :  { %829 = vmatpush3.bf16.msra.mxu0 %v922_v34 }
  0x29   :  { %830 = vmatprep.subr.bf16.mxu0 %v946_v33 }
  0x2a   :  { %344 = vmatpush1.bf16.msra.mxu1 %v917_v35 }
  0x2b   :  { %345 = vmatprep.subr.bf16.mxu1 %v945_v0 }
  0x2c   :  { %831 = vmatpush3.bf16.msra.mxu0 %v923_v36 }
  0x2d   :  { %832 = vmatprep.subr.bf16.mxu0 %v946_v33 }
  0x2e   :  { %346 = vmatpush1.bf16.msra.mxu1 %v918_v37 }
  0x2f   :  { %846 = vmatprep.subr.bf16.mxu1 %v946_v33 }
  0x30   :  { %833 = vmatpush3.bf16.msra.mxu0 %v924_v39 }
  0x31   :  { %356 = vmatmul.mubr.bf16.vlgmr.msra.gmra.mrb[0].mxu1 %v719_v38  ;;  %834 = vmatprep.subr.bf16.mxu0 %v946_v33 }
  0x32   :  { %862 = vmatprep.mubr.msk.bf16.mxu1 %vm947_vm1, %v946_v33  ;;  %847 = vmatpush3.bf16.msra.mxu1 %v929_v44 }
  0x33   :  { %848 = vmatprep.subr.bf16.mxu1 %v946_v33 }
  0x34   :  { %835 = vmatpush3.bf16.msra.mxu0 %v925_v40 }
  0x35   :  { %836 = vmatprep.subr.bf16.mxu0 %v946_v33 }
  0x36   :  { %849 = vmatpush3.bf16.msra.mxu1 %v930_v45 }
  0x37   :  { %850 = vmatprep.subr.bf16.mxu1 %v946_v33 }
  0x38   :  { %837 = vmatpush3.bf16.msra.mxu0 %v926_v41 }
  0x39   :  { %838 = vmatprep.subr.bf16.mxu0 %v946_v33 }
  0x3a   :  { %851 = vmatpush3.bf16.msra.mxu1 %v931_v46 }
  0x3b   :  { %852 = vmatprep.subr.bf16.mxu1 %v946_v33 }
  0x3c   :  { %839 = vmatpush3.bf16.msra.mxu0 %v927_v42 }
  0x3d   :  { %840 = vmatprep.subr.bf16.mxu0 %v946_v33 }
  0x3e   :  { %853 = vmatpush3.bf16.msra.mxu1 %v932_v47 }
  0x3f   :  { %854 = vmatprep.subr.bf16.mxu1 %v946_v33 }
  0x40   :  { %841 = vmatpush3.bf16.msra.mxu0 %v928_v43 }
  0x41   :  { %866 = vmatprep.subr.bf16.mxu0 %v946_v33 }
  0x42   :  { %855 = vmatpush3.bf16.msra.mxu1 %v933_v48 }
  0x43   :  { %856 = vmatprep.subr.bf16.mxu1 %v946_v33 }
  0x46   :  { %857 = vmatpush3.bf16.msra.mxu1 %v934_v49 }
  0x47   :  { %858 = vmatprep.subr.bf16.mxu1 %v946_v33 }
  0x4a   :  { %859 = vmatpush3.bf16.msra.mxu1 %v935_v1 }
  0x4b   :  { %860 = vmatprep.subr.bf16.mxu1 %v946_v33 }
  0x4e   :  { %861 = vmatpush3.bf16.msra.mxu1 %v936_v2 }
  0xf6   :  { %v793_v50 = vpop.f32.mrb[0].mxu0 }
  0xf7   :  { %v794_v51 = vpop.f32.mrb[1].mxu0 }
  0xf8   :  { %v795_v52 = vadd.f32 %v794_v51, %v793_v50  ;;  %v796_v53 = vpop.f32.mrb[2].mxu0 }
  0xf9   :  { %v797_v54 = vpop.f32.mrb[3].mxu0 }
  0xfa   :  { %v318_v56 = vadd.f32 %v795_v52, %v716_v55 }
 0x104   :  { %v357_v57 = vpop.f32.mrb[0].mxu1 }
 0x105   :  { %v358_v58 = vadd.f32 %v357_v57, %v318_v56  ;;  %v359_v59 = vpop.f32.mrb[1].mxu1 }
 0x106   :  { %v360_v60 = vpop.f32.mrb[2].mxu1 }
 0x107   :  { %vm363_vm2 = vcmp.ge.f32.partialorder %v358_v58, 0.0  ;;  %v364_v61 = vmul.f32 0.01, %v358_v58  ;;  %v361_v62 = vpop.f32.mrb[3].mxu1 }
 0x109   :  { %v365_v63 = vsel %vm363_vm2, %v358_v58, %v364_v61 }
 0x10a   :  { %v366_v0 = vpack.c.bf16 %v365_v63, %v365_v63 }
 0x10c   :  { %843 = vmatmul.mubr.bf16.vlgmr.msra.gmra.mrb[4].mxu0 %v366_v0 }
 0x10d   :  { %882 = vmatprep.mubr.msk.bf16.mxu0 %vm947_vm1, %v946_v33  ;;  %867 = vmatpush3.bf16.msra.mxu0 %v937_v3 }
 0x10e   :  { %868 = vmatprep.subr.bf16.mxu0 %v946_v33 }
 0x111   :  { %869 = vmatpush3.bf16.msra.mxu0 %v938_v4 }
 0x112   :  { %870 = vmatprep.subr.bf16.mxu0 %v946_v33 }
 0x115   :  { %871 = vmatpush3.bf16.msra.mxu0 %v939_v5 }
 0x116   :  { %872 = vmatprep.subr.bf16.mxu0 %v946_v33 }
 0x119   :  { %873 = vmatpush3.bf16.msra.mxu0 %v940_v6 }
 0x11a   :  { %874 = vmatprep.subr.bf16.mxu0 %v946_v33 }
 0x11d   :  { %875 = vmatpush3.bf16.msra.mxu0 %v941_v7 }
 0x11e   :  { %876 = vmatprep.subr.bf16.mxu0 %v946_v33 }
 0x121   :  { %877 = vmatpush3.bf16.msra.mxu0 %v942_v8 }
 0x122   :  { %878 = vmatprep.subr.bf16.mxu0 %v946_v33 }
 0x125   :  { %879 = vmatpush3.bf16.msra.mxu0 %v943_v18 }
 0x126   :  { %880 = vmatprep.subr.bf16.mxu0 %v946_v33 }
 0x129   :  { %881 = vmatpush3.bf16.msra.mxu0 %v944_v19 }
 0x1df   :  { %v472_v10 = vpop.f32.mrb[4].mxu0 }
 0x1e0   :  { %v473_v11 = vadd.f32 %v750_v9, %v472_v10  ;;  %v844_v12 = vpop.f32.mrb[5].mxu0 }
 0x1e1   :  { %v475_v13 = vpop.f32.mrb[6].mxu0 }
 0x1e2   :  { %vm478_vm3 = vcmp.ge.f32.partialorder %v473_v11, 0.0  ;;  %v479_v14 = vmul.f32 0.01, %v473_v11  ;;  %v845_v15 = vpop.f32.mrb[7].mxu0 }
 0x1e4   :  { %v480_v16 = vsel %vm478_vm3, %v473_v11, %v479_v14 }
 0x1e5   :  { %v481_v17 = vpack.c.bf16 %v480_v16, %v480_v16 }
 0x1e7   :  { %863 = vmatmul.mubr.bf16.vlgmr.msra.gmra.mrb[4].mxu1 %v481_v17 }
 0x2ba   :  { %v587_v21 = vpop.f32.mrb[4].mxu1 }
 0x2bb   :  { %v588_v22 = vadd.f32 %v759_v20, %v587_v21  ;;  %v864_v23 = vpop.f32.mrb[5].mxu1 }
 0x2bc   :  { %v590_v24 = vpop.f32.mrb[6].mxu1 }
 0x2bd   :  { %vm593_vm4 = vcmp.ge.f32.partialorder %v588_v22, 0.0  ;;  %v594_v25 = vmul.f32 0.01, %v588_v22  ;;  %v865_v26 = vpop.f32.mrb[7].mxu1 }
 0x2bf   :  { %v595_v27 = vsel %vm593_vm4, %v588_v22, %v594_v25 }
 0x2c0   :  { %v596_v28 = vpack.c.bf16 %v595_v27, %v595_v27 }
 0x2c2   :  { %883 = vmatmul.mubr.bf16.vlgmr.msra.gmra.mrb[8].mxu0 %v596_v28 }
 0x395   :  { %v702_v30 = vpop.f32.mrb[8].mxu0 }
 0x396   :  { %v703_v31 = vadd.f32 %v768_v29, %v702_v30  ;;  %v884_v32 = vpop.f32.mrb[9].mxu0 }
 0x397   :  { %v705_v33 = vpop.f32.mrb[10].mxu0 }
 0x398   :  { %vm708_vm5 = vcmp.ge.f32.partialorder %v703_v31, 0.0  ;;  %v709_v34 = vmul.f32 0.01, %v703_v31  ;;  %v885_v35 = vpop.f32.mrb[11].mxu0 }
 0x39a   :  { %v710_v36 = vsel %vm708_vm5, %v703_v31, %v709_v34 }
 0x39b   :  { %711 = vst [vmem:[%s1226_s9] sm:$0xff] %v710_v36 }

</bundles_post_ra>
